<compile_context>
chip_gen: v7x
topology: tpu7x:2x2x1
jax: 0.10.0
libtpu: 0.0.40
codegen_flags: <defaults>
</compile_context>

<pallas_src>
import jax
import jax.numpy as jnp
from jax.experimental import pallas as pl
from jax.experimental.pallas import tpu as pltpu


# ----------------------------------------------------------------------------
# Pallas kernel (built per-configuration via closure)
# ----------------------------------------------------------------------------
def make_gru_att_kernel(num_layers, num_dirs, H, T, B, Din, C):
    n_rnn_refs = num_layers * num_dirs * 4

    def kernel(*refs):
        x_ref = refs[0]                                   # (T*B, Din)  t-major
        rnn_refs = refs[1:1 + n_rnn_refs]                 # per (l,d): wih_t, whh_t, bih, bhh
        aw_ref = refs[1 + n_rnn_refs]                     # (D, 1)
        fcw_ref = refs[2 + n_rnn_refs]                    # (D, C)
        fcb_ref = refs[3 + n_rnn_refs]                    # (1, C)
        out_ref = refs[4 + n_rnn_refs]                    # (B, C)
        seq_ref = refs[5 + n_rnn_refs]                    # (T*B, D) scratch (layer I/O)
        sc_ref = refs[6 + n_rnn_refs]                     # (T*B, 1) scratch (attn scores)
        gx_refs = refs[7 + n_rnn_refs:]                   # num_dirs x (T*B, 3H) scratch

        for l in range(num_layers):
            # ---- hoisted input projection: one big MXU matmul per direction ----
            if l == 0:
                x_flat = x_ref[...]                       # (T*B, Din)
            else:
                x_flat = seq_ref[...]                     # (T*B, D)  previous layer output
            whh_vals, bhh_vals = [], []
            for d in range(num_dirs):
                base = (l * num_dirs + d) * 4
                wih_ref, whh_ref, bih_ref, bhh_ref = rnn_refs[base:base + 4]
                gx = jnp.dot(x_flat, wih_ref[...],
                             preferred_element_type=jnp.float32) + bih_ref[...]
                gx_refs[d][...] = gx                      # (T*B, 3H)
                whh_vals.append(whh_ref[...])             # (H, 3H)
                bhh_vals.append(bhh_ref[...])             # (1, 3H)

            # ---- recurrence: fully unrolled, static indices everywhere ----
            hs = [jnp.zeros((B, H), jnp.float32) for _ in range(num_dirs)]
            for t in range(T):
                for d in range(num_dirs):
                    tt = t if d == 0 else T - 1 - t
                    gx_t = gx_refs[d][tt * B:(tt + 1) * B, :]          # (B, 3H)
                    gh = jnp.dot(hs[d], whh_vals[d],
                                 preferred_element_type=jnp.float32) + bhh_vals[d]
                    r = jax.nn.sigmoid(gx_t[:, 0:H] + gh[:, 0:H])
                    z = jax.nn.sigmoid(gx_t[:, H:2 * H] + gh[:, H:2 * H])
                    n = jnp.tanh(gx_t[:, 2 * H:3 * H] + r * gh[:, 2 * H:3 * H])
                    h_new = (1.0 - z) * n + z * hs[d]
                    hs[d] = h_new
                    seq_ref[tt * B:(tt + 1) * B, d * H:(d + 1) * H] = h_new
            # TODO(synk): inter-layer dropout (training mode) not applied — eval semantics.

        # ---- attention (softmax over time) + final Linear, VMEM-resident ----
        rnn = seq_ref[...]                                             # (T*B, D)
        # Score reduction as a matmul (MXU), attention bias dropped (softmax-invariant).
        sc_ref[...] = jnp.dot(rnn, aw_ref[...], preferred_element_type=jnp.float32)
        s = [sc_ref[t * B:(t + 1) * B, :] for t in range(T)]           # T x (B, 1)
        m = s[0]
        for t in range(1, T):
            m = jnp.maximum(m, s[t])
        e = [jnp.exp(s[t] - m) for t in range(T)]
        denom = e[0]
        for t in range(1, T):
            denom = denom + e[t]
        inv = 1.0 / denom                                              # (B, 1)
        context = (e[0] * inv) * seq_ref[0:B, :]                       # (B, D)
        for t in range(1, T):
            context = context + (e[t] * inv) * seq_ref[t * B:(t + 1) * B, :]
        out = jnp.dot(context, fcw_ref[...],
                      preferred_element_type=jnp.float32) + fcb_ref[...]
        out_ref[...] = out

    return kernel


# ----------------------------------------------------------------------------
# Wrapper
# ----------------------------------------------------------------------------
def _full_spec(shape):
    return pl.BlockSpec(shape, lambda: tuple(0 for _ in shape))


def gru_att_forward(X, params, *, num_layers, num_dirs):
    """Full GRU_att forward in a single fused Pallas call."""
    B, T, Din = X.shape
    H = params["rnn"][(0, 0)][1].shape[1]                 # w_hh is (3H, H)
    D = num_dirs * H
    C = params["fc_w"].shape[0]

    # Host-side layout plumbing: t-major flat input, pre-transposed (lane-dense) weights.
    x_tb = jnp.transpose(X, (1, 0, 2)).reshape(T * B, Din)

    flat_params = []
    for l in range(num_layers):
        for d in range(num_dirs):
            w_ih, w_hh, b_ih, b_hh = params["rnn"][(l, d)]
            flat_params += [w_ih.T, w_hh.T, b_ih.reshape(1, -1), b_hh.reshape(1, -1)]
    aw_t = params["attn_w"].T                             # (D, 1); bias dropped in-kernel
    fcw_t = params["fc_w"].T                              # (D, C)
    fcb = params["fc_b"].reshape(1, -1)                   # (1, C)

    inputs = [x_tb] + flat_params + [aw_t, fcw_t, fcb]
    in_specs = [_full_spec(a.shape) for a in inputs]
    scratch_shapes = (
        [pltpu.VMEM((T * B, D), jnp.float32),             # layer I/O sequence buffer
         pltpu.VMEM((T * B, 1), jnp.float32)]             # attention scores
        + [pltpu.VMEM((T * B, 3 * H), jnp.float32) for _ in range(num_dirs)]  # hoisted gx
    )

    kernel = make_gru_att_kernel(num_layers, num_dirs, H, T, B, Din, C)
    return pl.pallas_call(
        kernel,
        out_shape=jax.ShapeDtypeStruct((B, C), jnp.float32),
        in_specs=in_specs,
        out_specs=_full_spec((B, C)),
        scratch_shapes=scratch_shapes,
    )(*inputs)


# ----------------------------------------------------------------------------
# Pure-JAX reference (for correctness check only)
# ----------------------------------------------------------------------------
def gru_att_reference(X, params, *, num_layers, num_dirs, hidden):
    def cell_seq(x, w_ih, w_hh, b_ih, b_hh):
        B, T, _ = x.shape
        H = hidden
        h = jnp.zeros((B, H), jnp.float32)
        outs = []
        for t in range(T):
            x_t = x[:, t, :]
            gx = x_t @ w_ih.T + b_ih
            gh = h @ w_hh.T + b_hh
            r = jax.nn.sigmoid(gx[:, :H] + gh[:, :H])
            z = jax.nn.sigmoid(gx[:, H:2 * H] + gh[:, H:2 * H])
            n = jnp.tanh(gx[:, 2 * H:] + r * gh[:, 2 * H:])
            h = (1.0 - z) * n + z * h
            outs.append(h)
        return jnp.stack(outs, axis=1)

    layer_in = X
    for l in range(num_layers):
        dir_outs = []
        for d in range(num_dirs):
            w_ih, w_hh, b_ih, b_hh = params["rnn"][(l, d)]
            x_dir = layer_in if d == 0 else jnp.flip(layer_in, axis=1)
            out = cell_seq(x_dir, w_ih, w_hh, b_ih, b_hh)
            if d == 1:
                out = jnp.flip(out, axis=1)
            dir_outs.append(out)
        layer_in = dir_outs[0] if num_dirs == 1 else jnp.concatenate(dir_outs, axis=-1)

    scores = jnp.einsum("btd,d->bt", layer_in, params["attn_w"][0]) + params["attn_b"][0]
    w = jax.nn.softmax(scores, axis=1)[:, :, None]
    context = jnp.sum(w * layer_in, axis=1)
    return context @ params["fc_w"].T + params["fc_b"]


# ----------------------------------------------------------------------------
# Main
# ----------------------------------------------------------------------------
if __name__ == "__main__":
    input_size = 3
    hidden_size = 32
    num_layers = 2
    n_classes = 5
    bidirectional = True
    num_dirs = 2 if bidirectional else 1
    batch = 2
    seq = 8

    key = jax.random.PRNGKey(0)

    def nxt():
        global key
        key, sub = jax.random.split(key)
        return sub

    stdv = 1.0 / jnp.sqrt(hidden_size)

    params = {"rnn": {}}
    for l in range(num_layers):
        in_sz = input_size if l == 0 else hidden_size * num_dirs
        for d in range(num_dirs):
            w_ih = jax.random.uniform(nxt(), (3 * hidden_size, in_sz),
                                      jnp.float32, -stdv, stdv)
            w_hh = jax.random.uniform(nxt(), (3 * hidden_size, hidden_size),
                                      jnp.float32, -stdv, stdv)
            b_ih = jax.random.uniform(nxt(), (3 * hidden_size,),
                                      jnp.float32, -stdv, stdv)
            b_hh = jax.random.uniform(nxt(), (3 * hidden_size,),
                                      jnp.float32, -stdv, stdv)
            params["rnn"][(l, d)] = (w_ih, w_hh, b_ih, b_hh)

    D = hidden_size * num_dirs
    params["attn_w"] = jax.random.uniform(nxt(), (1, D), jnp.float32, -stdv, stdv)
    params["attn_b"] = jax.random.uniform(nxt(), (1,), jnp.float32, -stdv, stdv)
    params["fc_w"] = jax.random.uniform(nxt(), (n_classes, D), jnp.float32, -stdv, stdv)
    params["fc_b"] = jax.random.uniform(nxt(), (n_classes,), jnp.float32, -stdv, stdv)

    X = jax.random.normal(nxt(), (batch, seq, input_size), jnp.float32)

    out = gru_att_forward(X, params, num_layers=num_layers, num_dirs=num_dirs)
    out = jax.block_until_ready(out)

    ref = gru_att_reference(X, params, num_layers=num_layers,
                            num_dirs=num_dirs, hidden=hidden_size)
    assert out.shape == (batch, n_classes), out.shape
    assert jnp.allclose(out, ref, atol=1e-4, rtol=1e-4), (out, ref)

    print("KERNEL_OK")
</pallas_src>

<mosaic_0001>
module attributes {stable_mosaic.version = 11 : i64} {
  func.func @kernel(%arg0: memref<16x3xf32, #tpu.memory_space<vmem>>, %arg1: memref<3x96xf32, #tpu.memory_space<vmem>>, %arg2: memref<32x96xf32, #tpu.memory_space<vmem>>, %arg3: memref<1x96xf32, #tpu.memory_space<vmem>>, %arg4: memref<1x96xf32, #tpu.memory_space<vmem>>, %arg5: memref<3x96xf32, #tpu.memory_space<vmem>>, %arg6: memref<32x96xf32, #tpu.memory_space<vmem>>, %arg7: memref<1x96xf32, #tpu.memory_space<vmem>>, %arg8: memref<1x96xf32, #tpu.memory_space<vmem>>, %arg9: memref<64x96xf32, #tpu.memory_space<vmem>>, %arg10: memref<32x96xf32, #tpu.memory_space<vmem>>, %arg11: memref<1x96xf32, #tpu.memory_space<vmem>>, %arg12: memref<1x96xf32, #tpu.memory_space<vmem>>, %arg13: memref<64x96xf32, #tpu.memory_space<vmem>>, %arg14: memref<32x96xf32, #tpu.memory_space<vmem>>, %arg15: memref<1x96xf32, #tpu.memory_space<vmem>>, %arg16: memref<1x96xf32, #tpu.memory_space<vmem>>, %arg17: memref<64x1xf32, #tpu.memory_space<vmem>>, %arg18: memref<64x5xf32, #tpu.memory_space<vmem>>, %arg19: memref<1x5xf32, #tpu.memory_space<vmem>>, %arg20: memref<2x5xf32, #tpu.memory_space<vmem>>, %arg21: memref<16x64xf32, #tpu.memory_space<vmem>>, %arg22: memref<16x1xf32, #tpu.memory_space<vmem>>, %arg23: memref<16x96xf32, #tpu.memory_space<vmem>>, %arg24: memref<16x96xf32, #tpu.memory_space<vmem>>) attributes {dimension_semantics = [], scalar_prefetch = 0 : i64, scratch_operands = 4 : i64, tpu.core_type = #tpu.core_type<tc>} {
    %c0 = arith.constant 0 : index
    %c0_0 = arith.constant 0 : index
    %0 = vector.load %arg0[%c0, %c0_0] : memref<16x3xf32, #tpu.memory_space<vmem>>, vector<16x3xf32>
    %c0_1 = arith.constant 0 : index
    %c0_2 = arith.constant 0 : index
    %1 = vector.load %arg1[%c0_1, %c0_2] : memref<3x96xf32, #tpu.memory_space<vmem>>, vector<3x96xf32>
    %cst = arith.constant dense<0.000000e+00> : vector<16x96xf32>
    %2 = tpu.matmul %0, %1, %cst {dimension_numbers = #tpu.dot_dimension_numbers<[1], [0], [0], [1], [0, 0, 1, 1], [], []>} : vector<16x3xf32>, vector<3x96xf32>, vector<16x96xf32> -> vector<16x96xf32>
    %c0_3 = arith.constant 0 : index
    %c0_4 = arith.constant 0 : index
    %3 = vector.load %arg3[%c0_3, %c0_4] : memref<1x96xf32, #tpu.memory_space<vmem>>, vector<1x96xf32>
    %4 = vector.broadcast %3 : vector<1x96xf32> to vector<16x96xf32>
    %5 = arith.addf %2, %4 : vector<16x96xf32>
    %c0_5 = arith.constant 0 : index
    %c0_6 = arith.constant 0 : index
    %6 = vector.load %arg23[%c0_5, %c0_6] : memref<16x96xf32, #tpu.memory_space<vmem>>, vector<16x96xf32>
    tpu.vector_store %arg23[%c0_5, %c0_6], %5 {strides = array<i32>} : memref<16x96xf32, #tpu.memory_space<vmem>>, vector<16x96xf32>,
    %c0_7 = arith.constant 0 : index
    %c0_8 = arith.constant 0 : index
    %7 = vector.load %arg2[%c0_7, %c0_8] : memref<32x96xf32, #tpu.memory_space<vmem>>, vector<32x96xf32>
    %c0_9 = arith.constant 0 : index
    %c0_10 = arith.constant 0 : index
    %8 = vector.load %arg4[%c0_9, %c0_10] : memref<1x96xf32, #tpu.memory_space<vmem>>, vector<1x96xf32>
    %c0_11 = arith.constant 0 : index
    %c0_12 = arith.constant 0 : index
    %9 = vector.load %arg5[%c0_11, %c0_12] : memref<3x96xf32, #tpu.memory_space<vmem>>, vector<3x96xf32>
    %cst_13 = arith.constant dense<0.000000e+00> : vector<16x96xf32>
    %10 = tpu.matmul %0, %9, %cst_13 {dimension_numbers = #tpu.dot_dimension_numbers<[1], [0], [0], [1], [0, 0, 1, 1], [], []>} : vector<16x3xf32>, vector<3x96xf32>, vector<16x96xf32> -> vector<16x96xf32>
    %c0_14 = arith.constant 0 : index
    %c0_15 = arith.constant 0 : index
    %11 = vector.load %arg7[%c0_14, %c0_15] : memref<1x96xf32, #tpu.memory_space<vmem>>, vector<1x96xf32>
    %12 = vector.broadcast %11 : vector<1x96xf32> to vector<16x96xf32>
    %13 = arith.addf %10, %12 : vector<16x96xf32>
    %c0_16 = arith.constant 0 : index
    %c0_17 = arith.constant 0 : index
    %14 = vector.load %arg24[%c0_16, %c0_17] : memref<16x96xf32, #tpu.memory_space<vmem>>, vector<16x96xf32>
    tpu.vector_store %arg24[%c0_16, %c0_17], %13 {strides = array<i32>} : memref<16x96xf32, #tpu.memory_space<vmem>>, vector<16x96xf32>,
    %c0_18 = arith.constant 0 : index
    %c0_19 = arith.constant 0 : index
    %15 = vector.load %arg6[%c0_18, %c0_19] : memref<32x96xf32, #tpu.memory_space<vmem>>, vector<32x96xf32>
    %c0_20 = arith.constant 0 : index
    %c0_21 = arith.constant 0 : index
    %16 = vector.load %arg8[%c0_20, %c0_21] : memref<1x96xf32, #tpu.memory_space<vmem>>, vector<1x96xf32>
    %cst_22 = arith.constant 0.000000e+00 : f32
    %17 = vector.broadcast %cst_22 : f32 to vector<2x32xf32>
    %cst_23 = arith.constant 0.000000e+00 : f32
    %18 = vector.broadcast %cst_23 : f32 to vector<2x32xf32>
    %c0_24 = arith.constant 0 : index
    %c0_25 = arith.constant 0 : index
    %19 = vector.load %arg23[%c0_24, %c0_25] : memref<16x96xf32, #tpu.memory_space<vmem>>, vector<2x96xf32>
    %cst_26 = arith.constant dense<0.000000e+00> : vector<2x96xf32>
    %20 = tpu.matmul %17, %7, %cst_26 {dimension_numbers = #tpu.dot_dimension_numbers<[1], [0], [0], [1], [0, 0, 1, 1], [], []>} : vector<2x32xf32>, vector<32x96xf32>, vector<2x96xf32> -> vector<2x96xf32>
    %21 = vector.broadcast %8 : vector<1x96xf32> to vector<2x96xf32>
    %22 = arith.addf %20, %21 : vector<2x96xf32>
    %23 = vector.extract_strided_slice %19 {offsets = [0, 0], sizes = [2, 32], strides = [1, 1]} : vector<2x96xf32> to vector<2x32xf32>
    %24 = vector.extract_strided_slice %22 {offsets = [0, 0], sizes = [2, 32], strides = [1, 1]} : vector<2x96xf32> to vector<2x32xf32>
    %25 = arith.addf %23, %24 : vector<2x32xf32>
    %26 = arith.negf %25 : vector<2x32xf32>
    %27 = math.exp %26 : vector<2x32xf32>
    %cst_27 = arith.constant 1.000000e+00 : f32
    %28 = vector.broadcast %cst_27 : f32 to vector<2x32xf32>
    %29 = arith.addf %28, %27 : vector<2x32xf32>
    %30 = arith.divf %28, %29 : vector<2x32xf32>
    %31 = vector.extract_strided_slice %19 {offsets = [0, 32], sizes = [2, 32], strides = [1, 1]} : vector<2x96xf32> to vector<2x32xf32>
    %32 = vector.extract_strided_slice %22 {offsets = [0, 32], sizes = [2, 32], strides = [1, 1]} : vector<2x96xf32> to vector<2x32xf32>
    %33 = arith.addf %31, %32 : vector<2x32xf32>
    %34 = arith.negf %33 : vector<2x32xf32>
    %35 = math.exp %34 : vector<2x32xf32>
    %cst_28 = arith.constant 1.000000e+00 : f32
    %36 = vector.broadcast %cst_28 : f32 to vector<2x32xf32>
    %37 = arith.addf %36, %35 : vector<2x32xf32>
    %38 = arith.divf %36, %37 : vector<2x32xf32>
    %39 = vector.extract_strided_slice %19 {offsets = [0, 64], sizes = [2, 32], strides = [1, 1]} : vector<2x96xf32> to vector<2x32xf32>
    %40 = vector.extract_strided_slice %22 {offsets = [0, 64], sizes = [2, 32], strides = [1, 1]} : vector<2x96xf32> to vector<2x32xf32>
    %41 = arith.mulf %30, %40 : vector<2x32xf32>
    %42 = arith.addf %39, %41 : vector<2x32xf32>
    %43 = math.tanh %42 : vector<2x32xf32>
    %cst_29 = arith.constant 1.000000e+00 : f32
    %44 = vector.broadcast %cst_29 : f32 to vector<2x32xf32>
    %45 = arith.subf %44, %38 : vector<2x32xf32>
    %46 = arith.mulf %45, %43 : vector<2x32xf32>
    %47 = arith.mulf %38, %17 : vector<2x32xf32>
    %48 = arith.addf %46, %47 : vector<2x32xf32>
    %c0_30 = arith.constant 0 : index
    %c0_31 = arith.constant 0 : index
    %49 = vector.load %arg21[%c0_30, %c0_31] : memref<16x64xf32, #tpu.memory_space<vmem>>, vector<2x32xf32>
    tpu.vector_store %arg21[%c0_30, %c0_31], %48 {strides = array<i32>} : memref<16x64xf32, #tpu.memory_space<vmem>>, vector<2x32xf32>,
    %c14 = arith.constant 14 : index
    %c0_32 = arith.constant 0 : index
    %50 = vector.load %arg24[%c14, %c0_32] : memref<16x96xf32, #tpu.memory_space<vmem>>, vector<2x96xf32>
    %cst_33 = arith.constant dense<0.000000e+00> : vector<2x96xf32>
    %51 = tpu.matmul %18, %15, %cst_33 {dimension_numbers = #tpu.dot_dimension_numbers<[1], [0], [0], [1], [0, 0, 1, 1], [], []>} : vector<2x32xf32>, vector<32x96xf32>, vector<2x96xf32> -> vector<2x96xf32>
    %52 = vector.broadcast %16 : vector<1x96xf32> to vector<2x96xf32>
    %53 = arith.addf %51, %52 : vector<2x96xf32>
    %54 = vector.extract_strided_slice %50 {offsets = [0, 0], sizes = [2, 32], strides = [1, 1]} : vector<2x96xf32> to vector<2x32xf32>
    %55 = vector.extract_strided_slice %53 {offsets = [0, 0], sizes = [2, 32], strides = [1, 1]} : vector<2x96xf32> to vector<2x32xf32>
    %56 = arith.addf %54, %55 : vector<2x32xf32>
    %57 = arith.negf %56 : vector<2x32xf32>
    %58 = math.exp %57 : vector<2x32xf32>
    %cst_34 = arith.constant 1.000000e+00 : f32
    %59 = vector.broadcast %cst_34 : f32 to vector<2x32xf32>
    %60 = arith.addf %59, %58 : vector<2x32xf32>
    %61 = arith.divf %59, %60 : vector<2x32xf32>
    %62 = vector.extract_strided_slice %50 {offsets = [0, 32], sizes = [2, 32], strides = [1, 1]} : vector<2x96xf32> to vector<2x32xf32>
    %63 = vector.extract_strided_slice %53 {offsets = [0, 32], sizes = [2, 32], strides = [1, 1]} : vector<2x96xf32> to vector<2x32xf32>
    %64 = arith.addf %62, %63 : vector<2x32xf32>
    %65 = arith.negf %64 : vector<2x32xf32>
    %66 = math.exp %65 : vector<2x32xf32>
    %cst_35 = arith.constant 1.000000e+00 : f32
    %67 = vector.broadcast %cst_35 : f32 to vector<2x32xf32>
    %68 = arith.addf %67, %66 : vector<2x32xf32>
    %69 = arith.divf %67, %68 : vector<2x32xf32>
    %70 = vector.extract_strided_slice %50 {offsets = [0, 64], sizes = [2, 32], strides = [1, 1]} : vector<2x96xf32> to vector<2x32xf32>
    %71 = vector.extract_strided_slice %53 {offsets = [0, 64], sizes = [2, 32], strides = [1, 1]} : vector<2x96xf32> to vector<2x32xf32>
    %72 = arith.mulf %61, %71 : vector<2x32xf32>
    %73 = arith.addf %70, %72 : vector<2x32xf32>
    %74 = math.tanh %73 : vector<2x32xf32>
    %cst_36 = arith.constant 1.000000e+00 : f32
    %75 = vector.broadcast %cst_36 : f32 to vector<2x32xf32>
    %76 = arith.subf %75, %69 : vector<2x32xf32>
    %77 = arith.mulf %76, %74 : vector<2x32xf32>
    %78 = arith.mulf %69, %18 : vector<2x32xf32>
    %79 = arith.addf %77, %78 : vector<2x32xf32>
    %c14_37 = arith.constant 14 : index
    %c32 = arith.constant 32 : index
    %80 = vector.load %arg21[%c14_37, %c32] : memref<16x64xf32, #tpu.memory_space<vmem>>, vector<2x32xf32>
    tpu.vector_store %arg21[%c14_37, %c32], %79 {strides = array<i32>} : memref<16x64xf32, #tpu.memory_space<vmem>>, vector<2x32xf32>,
    %c2 = arith.constant 2 : index
    %c0_38 = arith.constant 0 : index
    %81 = vector.load %arg23[%c2, %c0_38] : memref<16x96xf32, #tpu.memory_space<vmem>>, vector<2x96xf32>
    %cst_39 = arith.constant dense<0.000000e+00> : vector<2x96xf32>
    %82 = tpu.matmul %48, %7, %cst_39 {dimension_numbers = #tpu.dot_dimension_numbers<[1], [0], [0], [1], [0, 0, 1, 1], [], []>} : vector<2x32xf32>, vector<32x96xf32>, vector<2x96xf32> -> vector<2x96xf32>
    %83 = vector.broadcast %8 : vector<1x96xf32> to vector<2x96xf32>
    %84 = arith.addf %82, %83 : vector<2x96xf32>
    %85 = vector.extract_strided_slice %81 {offsets = [0, 0], sizes = [2, 32], strides = [1, 1]} : vector<2x96xf32> to vector<2x32xf32>
    %86 = vector.extract_strided_slice %84 {offsets = [0, 0], sizes = [2, 32], strides = [1, 1]} : vector<2x96xf32> to vector<2x32xf32>
    %87 = arith.addf %85, %86 : vector<2x32xf32>
    %88 = arith.negf %87 : vector<2x32xf32>
    %89 = math.exp %88 : vector<2x32xf32>
    %cst_40 = arith.constant 1.000000e+00 : f32
    %90 = vector.broadcast %cst_40 : f32 to vector<2x32xf32>
    %91 = arith.addf %90, %89 : vector<2x32xf32>
    %92 = arith.divf %90, %91 : vector<2x32xf32>
    %93 = vector.extract_strided_slice %81 {offsets = [0, 32], sizes = [2, 32], strides = [1, 1]} : vector<2x96xf32> to vector<2x32xf32>
    %94 = vector.extract_strided_slice %84 {offsets = [0, 32], sizes = [2, 32], strides = [1, 1]} : vector<2x96xf32> to vector<2x32xf32>
    %95 = arith.addf %93, %94 : vector<2x32xf32>
    %96 = arith.negf %95 : vector<2x32xf32>
    %97 = math.exp %96 : vector<2x32xf32>
    %cst_41 = arith.constant 1.000000e+00 : f32
    %98 = vector.broadcast %cst_41 : f32 to vector<2x32xf32>
    %99 = arith.addf %98, %97 : vector<2x32xf32>
    %100 = arith.divf %98, %99 : vector<2x32xf32>
    %101 = vector.extract_strided_slice %81 {offsets = [0, 64], sizes = [2, 32], strides = [1, 1]} : vector<2x96xf32> to vector<2x32xf32>
    %102 = vector.extract_strided_slice %84 {offsets = [0, 64], sizes = [2, 32], strides = [1, 1]} : vector<2x96xf32> to vector<2x32xf32>
    %103 = arith.mulf %92, %102 : vector<2x32xf32>
    %104 = arith.addf %101, %103 : vector<2x32xf32>
    %105 = math.tanh %104 : vector<2x32xf32>
    %cst_42 = arith.constant 1.000000e+00 : f32
    %106 = vector.broadcast %cst_42 : f32 to vector<2x32xf32>
    %107 = arith.subf %106, %100 : vector<2x32xf32>
    %108 = arith.mulf %107, %105 : vector<2x32xf32>
    %109 = arith.mulf %100, %48 : vector<2x32xf32>
    %110 = arith.addf %108, %109 : vector<2x32xf32>
    %c2_43 = arith.constant 2 : index
    %c0_44 = arith.constant 0 : index
    %111 = vector.load %arg21[%c2_43, %c0_44] : memref<16x64xf32, #tpu.memory_space<vmem>>, vector<2x32xf32>
    tpu.vector_store %arg21[%c2_43, %c0_44], %110 {strides = array<i32>} : memref<16x64xf32, #tpu.memory_space<vmem>>, vector<2x32xf32>,
    %c12 = arith.constant 12 : index
    %c0_45 = arith.constant 0 : index
    %112 = vector.load %arg24[%c12, %c0_45] : memref<16x96xf32, #tpu.memory_space<vmem>>, vector<2x96xf32>
    %cst_46 = arith.constant dense<0.000000e+00> : vector<2x96xf32>
    %113 = tpu.matmul %79, %15, %cst_46 {dimension_numbers = #tpu.dot_dimension_numbers<[1], [0], [0], [1], [0, 0, 1, 1], [], []>} : vector<2x32xf32>, vector<32x96xf32>, vector<2x96xf32> -> vector<2x96xf32>
    %114 = vector.broadcast %16 : vector<1x96xf32> to vector<2x96xf32>
    %115 = arith.addf %113, %114 : vector<2x96xf32>
    %116 = vector.extract_strided_slice %112 {offsets = [0, 0], sizes = [2, 32], strides = [1, 1]} : vector<2x96xf32> to vector<2x32xf32>
    %117 = vector.extract_strided_slice %115 {offsets = [0, 0], sizes = [2, 32], strides = [1, 1]} : vector<2x96xf32> to vector<2x32xf32>
    %118 = arith.addf %116, %117 : vector<2x32xf32>
    %119 = arith.negf %118 : vector<2x32xf32>
    %120 = math.exp %119 : vector<2x32xf32>
    %cst_47 = arith.constant 1.000000e+00 : f32
    %121 = vector.broadcast %cst_47 : f32 to vector<2x32xf32>
    %122 = arith.addf %121, %120 : vector<2x32xf32>
    %123 = arith.divf %121, %122 : vector<2x32xf32>
    %124 = vector.extract_strided_slice %112 {offsets = [0, 32], sizes = [2, 32], strides = [1, 1]} : vector<2x96xf32> to vector<2x32xf32>
    %125 = vector.extract_strided_slice %115 {offsets = [0, 32], sizes = [2, 32], strides = [1, 1]} : vector<2x96xf32> to vector<2x32xf32>
    %126 = arith.addf %124, %125 : vector<2x32xf32>
    %127 = arith.negf %126 : vector<2x32xf32>
    %128 = math.exp %127 : vector<2x32xf32>
    %cst_48 = arith.constant 1.000000e+00 : f32
    %129 = vector.broadcast %cst_48 : f32 to vector<2x32xf32>
    %130 = arith.addf %129, %128 : vector<2x32xf32>
    %131 = arith.divf %129, %130 : vector<2x32xf32>
    %132 = vector.extract_strided_slice %112 {offsets = [0, 64], sizes = [2, 32], strides = [1, 1]} : vector<2x96xf32> to vector<2x32xf32>
    %133 = vector.extract_strided_slice %115 {offsets = [0, 64], sizes = [2, 32], strides = [1, 1]} : vector<2x96xf32> to vector<2x32xf32>
    %134 = arith.mulf %123, %133 : vector<2x32xf32>
    %135 = arith.addf %132, %134 : vector<2x32xf32>
    %136 = math.tanh %135 : vector<2x32xf32>
    %cst_49 = arith.constant 1.000000e+00 : f32
    %137 = vector.broadcast %cst_49 : f32 to vector<2x32xf32>
    %138 = arith.subf %137, %131 : vector<2x32xf32>
    %139 = arith.mulf %138, %136 : vector<2x32xf32>
    %140 = arith.mulf %131, %79 : vector<2x32xf32>
    %141 = arith.addf %139, %140 : vector<2x32xf32>
    %c12_50 = arith.constant 12 : index
    %c32_51 = arith.constant 32 : index
    %142 = vector.load %arg21[%c12_50, %c32_51] : memref<16x64xf32, #tpu.memory_space<vmem>>, vector<2x32xf32>
    tpu.vector_store %arg21[%c12_50, %c32_51], %141 {strides = array<i32>} : memref<16x64xf32, #tpu.memory_space<vmem>>, vector<2x32xf32>,
    %c4 = arith.constant 4 : index
    %c0_52 = arith.constant 0 : index
    %143 = vector.load %arg23[%c4, %c0_52] : memref<16x96xf32, #tpu.memory_space<vmem>>, vector<2x96xf32>
    %cst_53 = arith.constant dense<0.000000e+00> : vector<2x96xf32>
    %144 = tpu.matmul %110, %7, %cst_53 {dimension_numbers = #tpu.dot_dimension_numbers<[1], [0], [0], [1], [0, 0, 1, 1], [], []>} : vector<2x32xf32>, vector<32x96xf32>, vector<2x96xf32> -> vector<2x96xf32>
    %145 = vector.broadcast %8 : vector<1x96xf32> to vector<2x96xf32>
    %146 = arith.addf %144, %145 : vector<2x96xf32>
    %147 = vector.extract_strided_slice %143 {offsets = [0, 0], sizes = [2, 32], strides = [1, 1]} : vector<2x96xf32> to vector<2x32xf32>
    %148 = vector.extract_strided_slice %146 {offsets = [0, 0], sizes = [2, 32], strides = [1, 1]} : vector<2x96xf32> to vector<2x32xf32>
    %149 = arith.addf %147, %148 : vector<2x32xf32>
    %150 = arith.negf %149 : vector<2x32xf32>
    %151 = math.exp %150 : vector<2x32xf32>
    %cst_54 = arith.constant 1.000000e+00 : f32
    %152 = vector.broadcast %cst_54 : f32 to vector<2x32xf32>
    %153 = arith.addf %152, %151 : vector<2x32xf32>
    %154 = arith.divf %152, %153 : vector<2x32xf32>
    %155 = vector.extract_strided_slice %143 {offsets = [0, 32], sizes = [2, 32], strides = [1, 1]} : vector<2x96xf32> to vector<2x32xf32>
    %156 = vector.extract_strided_slice %146 {offsets = [0, 32], sizes = [2, 32], strides = [1, 1]} : vector<2x96xf32> to vector<2x32xf32>
    %157 = arith.addf %155, %156 : vector<2x32xf32>
    %158 = arith.negf %157 : vector<2x32xf32>
    %159 = math.exp %158 : vector<2x32xf32>
    %cst_55 = arith.constant 1.000000e+00 : f32
    %160 = vector.broadcast %cst_55 : f32 to vector<2x32xf32>
    %161 = arith.addf %160, %159 : vector<2x32xf32>
    %162 = arith.divf %160, %161 : vector<2x32xf32>
    %163 = vector.extract_strided_slice %143 {offsets = [0, 64], sizes = [2, 32], strides = [1, 1]} : vector<2x96xf32> to vector<2x32xf32>
    %164 = vector.extract_strided_slice %146 {offsets = [0, 64], sizes = [2, 32], strides = [1, 1]} : vector<2x96xf32> to vector<2x32xf32>
    %165 = arith.mulf %154, %164 : vector<2x32xf32>
    %166 = arith.addf %163, %165 : vector<2x32xf32>
    %167 = math.tanh %166 : vector<2x32xf32>
    %cst_56 = arith.constant 1.000000e+00 : f32
    %168 = vector.broadcast %cst_56 : f32 to vector<2x32xf32>
    %169 = arith.subf %168, %162 : vector<2x32xf32>
    %170 = arith.mulf %169, %167 : vector<2x32xf32>
    %171 = arith.mulf %162, %110 : vector<2x32xf32>
    %172 = arith.addf %170, %171 : vector<2x32xf32>
    %c4_57 = arith.constant 4 : index
    %c0_58 = arith.constant 0 : index
    %173 = vector.load %arg21[%c4_57, %c0_58] : memref<16x64xf32, #tpu.memory_space<vmem>>, vector<2x32xf32>
    tpu.vector_store %arg21[%c4_57, %c0_58], %172 {strides = array<i32>} : memref<16x64xf32, #tpu.memory_space<vmem>>, vector<2x32xf32>,
    %c10 = arith.constant 10 : index
    %c0_59 = arith.constant 0 : index
    %174 = vector.load %arg24[%c10, %c0_59] : memref<16x96xf32, #tpu.memory_space<vmem>>, vector<2x96xf32>
    %cst_60 = arith.constant dense<0.000000e+00> : vector<2x96xf32>
    %175 = tpu.matmul %141, %15, %cst_60 {dimension_numbers = #tpu.dot_dimension_numbers<[1], [0], [0], [1], [0, 0, 1, 1], [], []>} : vector<2x32xf32>, vector<32x96xf32>, vector<2x96xf32> -> vector<2x96xf32>
    %176 = vector.broadcast %16 : vector<1x96xf32> to vector<2x96xf32>
    %177 = arith.addf %175, %176 : vector<2x96xf32>
    %178 = vector.extract_strided_slice %174 {offsets = [0, 0], sizes = [2, 32], strides = [1, 1]} : vector<2x96xf32> to vector<2x32xf32>
    %179 = vector.extract_strided_slice %177 {offsets = [0, 0], sizes = [2, 32], strides = [1, 1]} : vector<2x96xf32> to vector<2x32xf32>
    %180 = arith.addf %178, %179 : vector<2x32xf32>
    %181 = arith.negf %180 : vector<2x32xf32>
    %182 = math.exp %181 : vector<2x32xf32>
    %cst_61 = arith.constant 1.000000e+00 : f32
    %183 = vector.broadcast %cst_61 : f32 to vector<2x32xf32>
    %184 = arith.addf %183, %182 : vector<2x32xf32>
    %185 = arith.divf %183, %184 : vector<2x32xf32>
    %186 = vector.extract_strided_slice %174 {offsets = [0, 32], sizes = [2, 32], strides = [1, 1]} : vector<2x96xf32> to vector<2x32xf32>
    %187 = vector.extract_strided_slice %177 {offsets = [0, 32], sizes = [2, 32], strides = [1, 1]} : vector<2x96xf32> to vector<2x32xf32>
    %188 = arith.addf %186, %187 : vector<2x32xf32>
    %189 = arith.negf %188 : vector<2x32xf32>
    %190 = math.exp %189 : vector<2x32xf32>
    %cst_62 = arith.constant 1.000000e+00 : f32
    %191 = vector.broadcast %cst_62 : f32 to vector<2x32xf32>
    %192 = arith.addf %191, %190 : vector<2x32xf32>
    %193 = arith.divf %191, %192 : vector<2x32xf32>
    %194 = vector.extract_strided_slice %174 {offsets = [0, 64], sizes = [2, 32], strides = [1, 1]} : vector<2x96xf32> to vector<2x32xf32>
    %195 = vector.extract_strided_slice %177 {offsets = [0, 64], sizes = [2, 32], strides = [1, 1]} : vector<2x96xf32> to vector<2x32xf32>
    %196 = arith.mulf %185, %195 : vector<2x32xf32>
    %197 = arith.addf %194, %196 : vector<2x32xf32>
    %198 = math.tanh %197 : vector<2x32xf32>
    %cst_63 = arith.constant 1.000000e+00 : f32
    %199 = vector.broadcast %cst_63 : f32 to vector<2x32xf32>
    %200 = arith.subf %199, %193 : vector<2x32xf32>
    %201 = arith.mulf %200, %198 : vector<2x32xf32>
    %202 = arith.mulf %193, %141 : vector<2x32xf32>
    %203 = arith.addf %201, %202 : vector<2x32xf32>
    %c10_64 = arith.constant 10 : index
    %c32_65 = arith.constant 32 : index
    %204 = vector.load %arg21[%c10_64, %c32_65] : memref<16x64xf32, #tpu.memory_space<vmem>>, vector<2x32xf32>
    tpu.vector_store %arg21[%c10_64, %c32_65], %203 {strides = array<i32>} : memref<16x64xf32, #tpu.memory_space<vmem>>, vector<2x32xf32>,
    %c6 = arith.constant 6 : index
    %c0_66 = arith.constant 0 : index
    %205 = vector.load %arg23[%c6, %c0_66] : memref<16x96xf32, #tpu.memory_space<vmem>>, vector<2x96xf32>
    %cst_67 = arith.constant dense<0.000000e+00> : vector<2x96xf32>
    %206 = tpu.matmul %172, %7, %cst_67 {dimension_numbers = #tpu.dot_dimension_numbers<[1], [0], [0], [1], [0, 0, 1, 1], [], []>} : vector<2x32xf32>, vector<32x96xf32>, vector<2x96xf32> -> vector<2x96xf32>
    %207 = vector.broadcast %8 : vector<1x96xf32> to vector<2x96xf32>
    %208 = arith.addf %206, %207 : vector<2x96xf32>
    %209 = vector.extract_strided_slice %205 {offsets = [0, 0], sizes = [2, 32], strides = [1, 1]} : vector<2x96xf32> to vector<2x32xf32>
    %210 = vector.extract_strided_slice %208 {offsets = [0, 0], sizes = [2, 32], strides = [1, 1]} : vector<2x96xf32> to vector<2x32xf32>
    %211 = arith.addf %209, %210 : vector<2x32xf32>
    %212 = arith.negf %211 : vector<2x32xf32>
    %213 = math.exp %212 : vector<2x32xf32>
    %cst_68 = arith.constant 1.000000e+00 : f32
    %214 = vector.broadcast %cst_68 : f32 to vector<2x32xf32>
    %215 = arith.addf %214, %213 : vector<2x32xf32>
    %216 = arith.divf %214, %215 : vector<2x32xf32>
    %217 = vector.extract_strided_slice %205 {offsets = [0, 32], sizes = [2, 32], strides = [1, 1]} : vector<2x96xf32> to vector<2x32xf32>
    %218 = vector.extract_strided_slice %208 {offsets = [0, 32], sizes = [2, 32], strides = [1, 1]} : vector<2x96xf32> to vector<2x32xf32>
    %219 = arith.addf %217, %218 : vector<2x32xf32>
    %220 = arith.negf %219 : vector<2x32xf32>
    %221 = math.exp %220 : vector<2x32xf32>
    %cst_69 = arith.constant 1.000000e+00 : f32
    %222 = vector.broadcast %cst_69 : f32 to vector<2x32xf32>
    %223 = arith.addf %222, %221 : vector<2x32xf32>
    %224 = arith.divf %222, %223 : vector<2x32xf32>
    %225 = vector.extract_strided_slice %205 {offsets = [0, 64], sizes = [2, 32], strides = [1, 1]} : vector<2x96xf32> to vector<2x32xf32>
    %226 = vector.extract_strided_slice %208 {offsets = [0, 64], sizes = [2, 32], strides = [1, 1]} : vector<2x96xf32> to vector<2x32xf32>
    %227 = arith.mulf %216, %226 : vector<2x32xf32>
    %228 = arith.addf %225, %227 : vector<2x32xf32>
    %229 = math.tanh %228 : vector<2x32xf32>
    %cst_70 = arith.constant 1.000000e+00 : f32
    %230 = vector.broadcast %cst_70 : f32 to vector<2x32xf32>
    %231 = arith.subf %230, %224 : vector<2x32xf32>
    %232 = arith.mulf %231, %229 : vector<2x32xf32>
    %233 = arith.mulf %224, %172 : vector<2x32xf32>
    %234 = arith.addf %232, %233 : vector<2x32xf32>
    %c6_71 = arith.constant 6 : index
    %c0_72 = arith.constant 0 : index
    %235 = vector.load %arg21[%c6_71, %c0_72] : memref<16x64xf32, #tpu.memory_space<vmem>>, vector<2x32xf32>
    tpu.vector_store %arg21[%c6_71, %c0_72], %234 {strides = array<i32>} : memref<16x64xf32, #tpu.memory_space<vmem>>, vector<2x32xf32>,
    %c8 = arith.constant 8 : index
    %c0_73 = arith.constant 0 : index
    %236 = vector.load %arg24[%c8, %c0_73] : memref<16x96xf32, #tpu.memory_space<vmem>>, vector<2x96xf32>
    %cst_74 = arith.constant dense<0.000000e+00> : vector<2x96xf32>
    %237 = tpu.matmul %203, %15, %cst_74 {dimension_numbers = #tpu.dot_dimension_numbers<[1], [0], [0], [1], [0, 0, 1, 1], [], []>} : vector<2x32xf32>, vector<32x96xf32>, vector<2x96xf32> -> vector<2x96xf32>
    %238 = vector.broadcast %16 : vector<1x96xf32> to vector<2x96xf32>
    %239 = arith.addf %237, %238 : vector<2x96xf32>
    %240 = vector.extract_strided_slice %236 {offsets = [0, 0], sizes = [2, 32], strides = [1, 1]} : vector<2x96xf32> to vector<2x32xf32>
    %241 = vector.extract_strided_slice %239 {offsets = [0, 0], sizes = [2, 32], strides = [1, 1]} : vector<2x96xf32> to vector<2x32xf32>
    %242 = arith.addf %240, %241 : vector<2x32xf32>
    %243 = arith.negf %242 : vector<2x32xf32>
    %244 = math.exp %243 : vector<2x32xf32>
    %cst_75 = arith.constant 1.000000e+00 : f32
    %245 = vector.broadcast %cst_75 : f32 to vector<2x32xf32>
    %246 = arith.addf %245, %244 : vector<2x32xf32>
    %247 = arith.divf %245, %246 : vector<2x32xf32>
    %248 = vector.extract_strided_slice %236 {offsets = [0, 32], sizes = [2, 32], strides = [1, 1]} : vector<2x96xf32> to vector<2x32xf32>
    %249 = vector.extract_strided_slice %239 {offsets = [0, 32], sizes = [2, 32], strides = [1, 1]} : vector<2x96xf32> to vector<2x32xf32>
    %250 = arith.addf %248, %249 : vector<2x32xf32>
    %251 = arith.negf %250 : vector<2x32xf32>
    %252 = math.exp %251 : vector<2x32xf32>
    %cst_76 = arith.constant 1.000000e+00 : f32
    %253 = vector.broadcast %cst_76 : f32 to vector<2x32xf32>
    %254 = arith.addf %253, %252 : vector<2x32xf32>
    %255 = arith.divf %253, %254 : vector<2x32xf32>
    %256 = vector.extract_strided_slice %236 {offsets = [0, 64], sizes = [2, 32], strides = [1, 1]} : vector<2x96xf32> to vector<2x32xf32>
    %257 = vector.extract_strided_slice %239 {offsets = [0, 64], sizes = [2, 32], strides = [1, 1]} : vector<2x96xf32> to vector<2x32xf32>
    %258 = arith.mulf %247, %257 : vector<2x32xf32>
    %259 = arith.addf %256, %258 : vector<2x32xf32>
    %260 = math.tanh %259 : vector<2x32xf32>
    %cst_77 = arith.constant 1.000000e+00 : f32
    %261 = vector.broadcast %cst_77 : f32 to vector<2x32xf32>
    %262 = arith.subf %261, %255 : vector<2x32xf32>
    %263 = arith.mulf %262, %260 : vector<2x32xf32>
    %264 = arith.mulf %255, %203 : vector<2x32xf32>
    %265 = arith.addf %263, %264 : vector<2x32xf32>
    %c8_78 = arith.constant 8 : index
    %c32_79 = arith.constant 32 : index
    %266 = vector.load %arg21[%c8_78, %c32_79] : memref<16x64xf32, #tpu.memory_space<vmem>>, vector<2x32xf32>
    tpu.vector_store %arg21[%c8_78, %c32_79], %265 {strides = array<i32>} : memref<16x64xf32, #tpu.memory_space<vmem>>, vector<2x32xf32>,
    %c8_80 = arith.constant 8 : index
    %c0_81 = arith.constant 0 : index
    %267 = vector.load %arg23[%c8_80, %c0_81] : memref<16x96xf32, #tpu.memory_space<vmem>>, vector<2x96xf32>
    %cst_82 = arith.constant dense<0.000000e+00> : vector<2x96xf32>
    %268 = tpu.matmul %234, %7, %cst_82 {dimension_numbers = #tpu.dot_dimension_numbers<[1], [0], [0], [1], [0, 0, 1, 1], [], []>} : vector<2x32xf32>, vector<32x96xf32>, vector<2x96xf32> -> vector<2x96xf32>
    %269 = vector.broadcast %8 : vector<1x96xf32> to vector<2x96xf32>
    %270 = arith.addf %268, %269 : vector<2x96xf32>
    %271 = vector.extract_strided_slice %267 {offsets = [0, 0], sizes = [2, 32], strides = [1, 1]} : vector<2x96xf32> to vector<2x32xf32>
    %272 = vector.extract_strided_slice %270 {offsets = [0, 0], sizes = [2, 32], strides = [1, 1]} : vector<2x96xf32> to vector<2x32xf32>
    %273 = arith.addf %271, %272 : vector<2x32xf32>
    %274 = arith.negf %273 : vector<2x32xf32>
    %275 = math.exp %274 : vector<2x32xf32>
    %cst_83 = arith.constant 1.000000e+00 : f32
    %276 = vector.broadcast %cst_83 : f32 to vector<2x32xf32>
    %277 = arith.addf %276, %275 : vector<2x32xf32>
    %278 = arith.divf %276, %277 : vector<2x32xf32>
    %279 = vector.extract_strided_slice %267 {offsets = [0, 32], sizes = [2, 32], strides = [1, 1]} : vector<2x96xf32> to vector<2x32xf32>
    %280 = vector.extract_strided_slice %270 {offsets = [0, 32], sizes = [2, 32], strides = [1, 1]} : vector<2x96xf32> to vector<2x32xf32>
    %281 = arith.addf %279, %280 : vector<2x32xf32>
    %282 = arith.negf %281 : vector<2x32xf32>
    %283 = math.exp %282 : vector<2x32xf32>
    %cst_84 = arith.constant 1.000000e+00 : f32
    %284 = vector.broadcast %cst_84 : f32 to vector<2x32xf32>
    %285 = arith.addf %284, %283 : vector<2x32xf32>
    %286 = arith.divf %284, %285 : vector<2x32xf32>
    %287 = vector.extract_strided_slice %267 {offsets = [0, 64], sizes = [2, 32], strides = [1, 1]} : vector<2x96xf32> to vector<2x32xf32>
    %288 = vector.extract_strided_slice %270 {offsets = [0, 64], sizes = [2, 32], strides = [1, 1]} : vector<2x96xf32> to vector<2x32xf32>
    %289 = arith.mulf %278, %288 : vector<2x32xf32>
    %290 = arith.addf %287, %289 : vector<2x32xf32>
    %291 = math.tanh %290 : vector<2x32xf32>
    %cst_85 = arith.constant 1.000000e+00 : f32
    %292 = vector.broadcast %cst_85 : f32 to vector<2x32xf32>
    %293 = arith.subf %292, %286 : vector<2x32xf32>
    %294 = arith.mulf %293, %291 : vector<2x32xf32>
    %295 = arith.mulf %286, %234 : vector<2x32xf32>
    %296 = arith.addf %294, %295 : vector<2x32xf32>
    %c8_86 = arith.constant 8 : index
    %c0_87 = arith.constant 0 : index
    %297 = vector.load %arg21[%c8_86, %c0_87] : memref<16x64xf32, #tpu.memory_space<vmem>>, vector<2x32xf32>
    tpu.vector_store %arg21[%c8_86, %c0_87], %296 {strides = array<i32>} : memref<16x64xf32, #tpu.memory_space<vmem>>, vector<2x32xf32>,
    %c6_88 = arith.constant 6 : index
    %c0_89 = arith.constant 0 : index
    %298 = vector.load %arg24[%c6_88, %c0_89] : memref<16x96xf32, #tpu.memory_space<vmem>>, vector<2x96xf32>
    %cst_90 = arith.constant dense<0.000000e+00> : vector<2x96xf32>
    %299 = tpu.matmul %265, %15, %cst_90 {dimension_numbers = #tpu.dot_dimension_numbers<[1], [0], [0], [1], [0, 0, 1, 1], [], []>} : vector<2x32xf32>, vector<32x96xf32>, vector<2x96xf32> -> vector<2x96xf32>
    %300 = vector.broadcast %16 : vector<1x96xf32> to vector<2x96xf32>
    %301 = arith.addf %299, %300 : vector<2x96xf32>
    %302 = vector.extract_strided_slice %298 {offsets = [0, 0], sizes = [2, 32], strides = [1, 1]} : vector<2x96xf32> to vector<2x32xf32>
    %303 = vector.extract_strided_slice %301 {offsets = [0, 0], sizes = [2, 32], strides = [1, 1]} : vector<2x96xf32> to vector<2x32xf32>
    %304 = arith.addf %302, %303 : vector<2x32xf32>
    %305 = arith.negf %304 : vector<2x32xf32>
    %306 = math.exp %305 : vector<2x32xf32>
    %cst_91 = arith.constant 1.000000e+00 : f32
    %307 = vector.broadcast %cst_91 : f32 to vector<2x32xf32>
    %308 = arith.addf %307, %306 : vector<2x32xf32>
    %309 = arith.divf %307, %308 : vector<2x32xf32>
    %310 = vector.extract_strided_slice %298 {offsets = [0, 32], sizes = [2, 32], strides = [1, 1]} : vector<2x96xf32> to vector<2x32xf32>
    %311 = vector.extract_strided_slice %301 {offsets = [0, 32], sizes = [2, 32], strides = [1, 1]} : vector<2x96xf32> to vector<2x32xf32>
    %312 = arith.addf %310, %311 : vector<2x32xf32>
    %313 = arith.negf %312 : vector<2x32xf32>
    %314 = math.exp %313 : vector<2x32xf32>
    %cst_92 = arith.constant 1.000000e+00 : f32
    %315 = vector.broadcast %cst_92 : f32 to vector<2x32xf32>
    %316 = arith.addf %315, %314 : vector<2x32xf32>
    %317 = arith.divf %315, %316 : vector<2x32xf32>
    %318 = vector.extract_strided_slice %298 {offsets = [0, 64], sizes = [2, 32], strides = [1, 1]} : vector<2x96xf32> to vector<2x32xf32>
    %319 = vector.extract_strided_slice %301 {offsets = [0, 64], sizes = [2, 32], strides = [1, 1]} : vector<2x96xf32> to vector<2x32xf32>
    %320 = arith.mulf %309, %319 : vector<2x32xf32>
    %321 = arith.addf %318, %320 : vector<2x32xf32>
    %322 = math.tanh %321 : vector<2x32xf32>
    %cst_93 = arith.constant 1.000000e+00 : f32
    %323 = vector.broadcast %cst_93 : f32 to vector<2x32xf32>
    %324 = arith.subf %323, %317 : vector<2x32xf32>
    %325 = arith.mulf %324, %322 : vector<2x32xf32>
    %326 = arith.mulf %317, %265 : vector<2x32xf32>
    %327 = arith.addf %325, %326 : vector<2x32xf32>
    %c6_94 = arith.constant 6 : index
    %c32_95 = arith.constant 32 : index
    %328 = vector.load %arg21[%c6_94, %c32_95] : memref<16x64xf32, #tpu.memory_space<vmem>>, vector<2x32xf32>
    tpu.vector_store %arg21[%c6_94, %c32_95], %327 {strides = array<i32>} : memref<16x64xf32, #tpu.memory_space<vmem>>, vector<2x32xf32>,
    %c10_96 = arith.constant 10 : index
    %c0_97 = arith.constant 0 : index
    %329 = vector.load %arg23[%c10_96, %c0_97] : memref<16x96xf32, #tpu.memory_space<vmem>>, vector<2x96xf32>
    %cst_98 = arith.constant dense<0.000000e+00> : vector<2x96xf32>
    %330 = tpu.matmul %296, %7, %cst_98 {dimension_numbers = #tpu.dot_dimension_numbers<[1], [0], [0], [1], [0, 0, 1, 1], [], []>} : vector<2x32xf32>, vector<32x96xf32>, vector<2x96xf32> -> vector<2x96xf32>
    %331 = vector.broadcast %8 : vector<1x96xf32> to vector<2x96xf32>
    %332 = arith.addf %330, %331 : vector<2x96xf32>
    %333 = vector.extract_strided_slice %329 {offsets = [0, 0], sizes = [2, 32], strides = [1, 1]} : vector<2x96xf32> to vector<2x32xf32>
    %334 = vector.extract_strided_slice %332 {offsets = [0, 0], sizes = [2, 32], strides = [1, 1]} : vector<2x96xf32> to vector<2x32xf32>
    %335 = arith.addf %333, %334 : vector<2x32xf32>
    %336 = arith.negf %335 : vector<2x32xf32>
    %337 = math.exp %336 : vector<2x32xf32>
    %cst_99 = arith.constant 1.000000e+00 : f32
    %338 = vector.broadcast %cst_99 : f32 to vector<2x32xf32>
    %339 = arith.addf %338, %337 : vector<2x32xf32>
    %340 = arith.divf %338, %339 : vector<2x32xf32>
    %341 = vector.extract_strided_slice %329 {offsets = [0, 32], sizes = [2, 32], strides = [1, 1]} : vector<2x96xf32> to vector<2x32xf32>
    %342 = vector.extract_strided_slice %332 {offsets = [0, 32], sizes = [2, 32], strides = [1, 1]} : vector<2x96xf32> to vector<2x32xf32>
    %343 = arith.addf %341, %342 : vector<2x32xf32>
    %344 = arith.negf %343 : vector<2x32xf32>
    %345 = math.exp %344 : vector<2x32xf32>
    %cst_100 = arith.constant 1.000000e+00 : f32
    %346 = vector.broadcast %cst_100 : f32 to vector<2x32xf32>
    %347 = arith.addf %346, %345 : vector<2x32xf32>
    %348 = arith.divf %346, %347 : vector<2x32xf32>
    %349 = vector.extract_strided_slice %329 {offsets = [0, 64], sizes = [2, 32], strides = [1, 1]} : vector<2x96xf32> to vector<2x32xf32>
    %350 = vector.extract_strided_slice %332 {offsets = [0, 64], sizes = [2, 32], strides = [1, 1]} : vector<2x96xf32> to vector<2x32xf32>
    %351 = arith.mulf %340, %350 : vector<2x32xf32>
    %352 = arith.addf %349, %351 : vector<2x32xf32>
    %353 = math.tanh %352 : vector<2x32xf32>
    %cst_101 = arith.constant 1.000000e+00 : f32
    %354 = vector.broadcast %cst_101 : f32 to vector<2x32xf32>
    %355 = arith.subf %354, %348 : vector<2x32xf32>
    %356 = arith.mulf %355, %353 : vector<2x32xf32>
    %357 = arith.mulf %348, %296 : vector<2x32xf32>
    %358 = arith.addf %356, %357 : vector<2x32xf32>
    %c10_102 = arith.constant 10 : index
    %c0_103 = arith.constant 0 : index
    %359 = vector.load %arg21[%c10_102, %c0_103] : memref<16x64xf32, #tpu.memory_space<vmem>>, vector<2x32xf32>
    tpu.vector_store %arg21[%c10_102, %c0_103], %358 {strides = array<i32>} : memref<16x64xf32, #tpu.memory_space<vmem>>, vector<2x32xf32>,
    %c4_104 = arith.constant 4 : index
    %c0_105 = arith.constant 0 : index
    %360 = vector.load %arg24[%c4_104, %c0_105] : memref<16x96xf32, #tpu.memory_space<vmem>>, vector<2x96xf32>
    %cst_106 = arith.constant dense<0.000000e+00> : vector<2x96xf32>
    %361 = tpu.matmul %327, %15, %cst_106 {dimension_numbers = #tpu.dot_dimension_numbers<[1], [0], [0], [1], [0, 0, 1, 1], [], []>} : vector<2x32xf32>, vector<32x96xf32>, vector<2x96xf32> -> vector<2x96xf32>
    %362 = vector.broadcast %16 : vector<1x96xf32> to vector<2x96xf32>
    %363 = arith.addf %361, %362 : vector<2x96xf32>
    %364 = vector.extract_strided_slice %360 {offsets = [0, 0], sizes = [2, 32], strides = [1, 1]} : vector<2x96xf32> to vector<2x32xf32>
    %365 = vector.extract_strided_slice %363 {offsets = [0, 0], sizes = [2, 32], strides = [1, 1]} : vector<2x96xf32> to vector<2x32xf32>
    %366 = arith.addf %364, %365 : vector<2x32xf32>
    %367 = arith.negf %366 : vector<2x32xf32>
    %368 = math.exp %367 : vector<2x32xf32>
    %cst_107 = arith.constant 1.000000e+00 : f32
    %369 = vector.broadcast %cst_107 : f32 to vector<2x32xf32>
    %370 = arith.addf %369, %368 : vector<2x32xf32>
    %371 = arith.divf %369, %370 : vector<2x32xf32>
    %372 = vector.extract_strided_slice %360 {offsets = [0, 32], sizes = [2, 32], strides = [1, 1]} : vector<2x96xf32> to vector<2x32xf32>
    %373 = vector.extract_strided_slice %363 {offsets = [0, 32], sizes = [2, 32], strides = [1, 1]} : vector<2x96xf32> to vector<2x32xf32>
    %374 = arith.addf %372, %373 : vector<2x32xf32>
    %375 = arith.negf %374 : vector<2x32xf32>
    %376 = math.exp %375 : vector<2x32xf32>
    %cst_108 = arith.constant 1.000000e+00 : f32
    %377 = vector.broadcast %cst_108 : f32 to vector<2x32xf32>
    %378 = arith.addf %377, %376 : vector<2x32xf32>
    %379 = arith.divf %377, %378 : vector<2x32xf32>
    %380 = vector.extract_strided_slice %360 {offsets = [0, 64], sizes = [2, 32], strides = [1, 1]} : vector<2x96xf32> to vector<2x32xf32>
    %381 = vector.extract_strided_slice %363 {offsets = [0, 64], sizes = [2, 32], strides = [1, 1]} : vector<2x96xf32> to vector<2x32xf32>
    %382 = arith.mulf %371, %381 : vector<2x32xf32>
    %383 = arith.addf %380, %382 : vector<2x32xf32>
    %384 = math.tanh %383 : vector<2x32xf32>
    %cst_109 = arith.constant 1.000000e+00 : f32
    %385 = vector.broadcast %cst_109 : f32 to vector<2x32xf32>
    %386 = arith.subf %385, %379 : vector<2x32xf32>
    %387 = arith.mulf %386, %384 : vector<2x32xf32>
    %388 = arith.mulf %379, %327 : vector<2x32xf32>
    %389 = arith.addf %387, %388 : vector<2x32xf32>
    %c4_110 = arith.constant 4 : index
    %c32_111 = arith.constant 32 : index
    %390 = vector.load %arg21[%c4_110, %c32_111] : memref<16x64xf32, #tpu.memory_space<vmem>>, vector<2x32xf32>
    tpu.vector_store %arg21[%c4_110, %c32_111], %389 {strides = array<i32>} : memref<16x64xf32, #tpu.memory_space<vmem>>, vector<2x32xf32>,
    %c12_112 = arith.constant 12 : index
    %c0_113 = arith.constant 0 : index
    %391 = vector.load %arg23[%c12_112, %c0_113] : memref<16x96xf32, #tpu.memory_space<vmem>>, vector<2x96xf32>
    %cst_114 = arith.constant dense<0.000000e+00> : vector<2x96xf32>
    %392 = tpu.matmul %358, %7, %cst_114 {dimension_numbers = #tpu.dot_dimension_numbers<[1], [0], [0], [1], [0, 0, 1, 1], [], []>} : vector<2x32xf32>, vector<32x96xf32>, vector<2x96xf32> -> vector<2x96xf32>
    %393 = vector.broadcast %8 : vector<1x96xf32> to vector<2x96xf32>
    %394 = arith.addf %392, %393 : vector<2x96xf32>
    %395 = vector.extract_strided_slice %391 {offsets = [0, 0], sizes = [2, 32], strides = [1, 1]} : vector<2x96xf32> to vector<2x32xf32>
    %396 = vector.extract_strided_slice %394 {offsets = [0, 0], sizes = [2, 32], strides = [1, 1]} : vector<2x96xf32> to vector<2x32xf32>
    %397 = arith.addf %395, %396 : vector<2x32xf32>
    %398 = arith.negf %397 : vector<2x32xf32>
    %399 = math.exp %398 : vector<2x32xf32>
    %cst_115 = arith.constant 1.000000e+00 : f32
    %400 = vector.broadcast %cst_115 : f32 to vector<2x32xf32>
    %401 = arith.addf %400, %399 : vector<2x32xf32>
    %402 = arith.divf %400, %401 : vector<2x32xf32>
    %403 = vector.extract_strided_slice %391 {offsets = [0, 32], sizes = [2, 32], strides = [1, 1]} : vector<2x96xf32> to vector<2x32xf32>
    %404 = vector.extract_strided_slice %394 {offsets = [0, 32], sizes = [2, 32], strides = [1, 1]} : vector<2x96xf32> to vector<2x32xf32>
    %405 = arith.addf %403, %404 : vector<2x32xf32>
    %406 = arith.negf %405 : vector<2x32xf32>
    %407 = math.exp %406 : vector<2x32xf32>
    %cst_116 = arith.constant 1.000000e+00 : f32
    %408 = vector.broadcast %cst_116 : f32 to vector<2x32xf32>
    %409 = arith.addf %408, %407 : vector<2x32xf32>
    %410 = arith.divf %408, %409 : vector<2x32xf32>
    %411 = vector.extract_strided_slice %391 {offsets = [0, 64], sizes = [2, 32], strides = [1, 1]} : vector<2x96xf32> to vector<2x32xf32>
    %412 = vector.extract_strided_slice %394 {offsets = [0, 64], sizes = [2, 32], strides = [1, 1]} : vector<2x96xf32> to vector<2x32xf32>
    %413 = arith.mulf %402, %412 : vector<2x32xf32>
    %414 = arith.addf %411, %413 : vector<2x32xf32>
    %415 = math.tanh %414 : vector<2x32xf32>
    %cst_117 = arith.constant 1.000000e+00 : f32
    %416 = vector.broadcast %cst_117 : f32 to vector<2x32xf32>
    %417 = arith.subf %416, %410 : vector<2x32xf32>
    %418 = arith.mulf %417, %415 : vector<2x32xf32>
    %419 = arith.mulf %410, %358 : vector<2x32xf32>
    %420 = arith.addf %418, %419 : vector<2x32xf32>
    %c12_118 = arith.constant 12 : index
    %c0_119 = arith.constant 0 : index
    %421 = vector.load %arg21[%c12_118, %c0_119] : memref<16x64xf32, #tpu.memory_space<vmem>>, vector<2x32xf32>
    tpu.vector_store %arg21[%c12_118, %c0_119], %420 {strides = array<i32>} : memref<16x64xf32, #tpu.memory_space<vmem>>, vector<2x32xf32>,
    %c2_120 = arith.constant 2 : index
    %c0_121 = arith.constant 0 : index
    %422 = vector.load %arg24[%c2_120, %c0_121] : memref<16x96xf32, #tpu.memory_space<vmem>>, vector<2x96xf32>
    %cst_122 = arith.constant dense<0.000000e+00> : vector<2x96xf32>
    %423 = tpu.matmul %389, %15, %cst_122 {dimension_numbers = #tpu.dot_dimension_numbers<[1], [0], [0], [1], [0, 0, 1, 1], [], []>} : vector<2x32xf32>, vector<32x96xf32>, vector<2x96xf32> -> vector<2x96xf32>
    %424 = vector.broadcast %16 : vector<1x96xf32> to vector<2x96xf32>
    %425 = arith.addf %423, %424 : vector<2x96xf32>
    %426 = vector.extract_strided_slice %422 {offsets = [0, 0], sizes = [2, 32], strides = [1, 1]} : vector<2x96xf32> to vector<2x32xf32>
    %427 = vector.extract_strided_slice %425 {offsets = [0, 0], sizes = [2, 32], strides = [1, 1]} : vector<2x96xf32> to vector<2x32xf32>
    %428 = arith.addf %426, %427 : vector<2x32xf32>
    %429 = arith.negf %428 : vector<2x32xf32>
    %430 = math.exp %429 : vector<2x32xf32>
    %cst_123 = arith.constant 1.000000e+00 : f32
    %431 = vector.broadcast %cst_123 : f32 to vector<2x32xf32>
    %432 = arith.addf %431, %430 : vector<2x32xf32>
    %433 = arith.divf %431, %432 : vector<2x32xf32>
    %434 = vector.extract_strided_slice %422 {offsets = [0, 32], sizes = [2, 32], strides = [1, 1]} : vector<2x96xf32> to vector<2x32xf32>
    %435 = vector.extract_strided_slice %425 {offsets = [0, 32], sizes = [2, 32], strides = [1, 1]} : vector<2x96xf32> to vector<2x32xf32>
    %436 = arith.addf %434, %435 : vector<2x32xf32>
    %437 = arith.negf %436 : vector<2x32xf32>
    %438 = math.exp %437 : vector<2x32xf32>
    %cst_124 = arith.constant 1.000000e+00 : f32
    %439 = vector.broadcast %cst_124 : f32 to vector<2x32xf32>
    %440 = arith.addf %439, %438 : vector<2x32xf32>
    %441 = arith.divf %439, %440 : vector<2x32xf32>
    %442 = vector.extract_strided_slice %422 {offsets = [0, 64], sizes = [2, 32], strides = [1, 1]} : vector<2x96xf32> to vector<2x32xf32>
    %443 = vector.extract_strided_slice %425 {offsets = [0, 64], sizes = [2, 32], strides = [1, 1]} : vector<2x96xf32> to vector<2x32xf32>
    %444 = arith.mulf %433, %443 : vector<2x32xf32>
    %445 = arith.addf %442, %444 : vector<2x32xf32>
    %446 = math.tanh %445 : vector<2x32xf32>
    %cst_125 = arith.constant 1.000000e+00 : f32
    %447 = vector.broadcast %cst_125 : f32 to vector<2x32xf32>
    %448 = arith.subf %447, %441 : vector<2x32xf32>
    %449 = arith.mulf %448, %446 : vector<2x32xf32>
    %450 = arith.mulf %441, %389 : vector<2x32xf32>
    %451 = arith.addf %449, %450 : vector<2x32xf32>
    %c2_126 = arith.constant 2 : index
    %c32_127 = arith.constant 32 : index
    %452 = vector.load %arg21[%c2_126, %c32_127] : memref<16x64xf32, #tpu.memory_space<vmem>>, vector<2x32xf32>
    tpu.vector_store %arg21[%c2_126, %c32_127], %451 {strides = array<i32>} : memref<16x64xf32, #tpu.memory_space<vmem>>, vector<2x32xf32>,
    %c14_128 = arith.constant 14 : index
    %c0_129 = arith.constant 0 : index
    %453 = vector.load %arg23[%c14_128, %c0_129] : memref<16x96xf32, #tpu.memory_space<vmem>>, vector<2x96xf32>
    %cst_130 = arith.constant dense<0.000000e+00> : vector<2x96xf32>
    %454 = tpu.matmul %420, %7, %cst_130 {dimension_numbers = #tpu.dot_dimension_numbers<[1], [0], [0], [1], [0, 0, 1, 1], [], []>} : vector<2x32xf32>, vector<32x96xf32>, vector<2x96xf32> -> vector<2x96xf32>
    %455 = vector.broadcast %8 : vector<1x96xf32> to vector<2x96xf32>
    %456 = arith.addf %454, %455 : vector<2x96xf32>
    %457 = vector.extract_strided_slice %453 {offsets = [0, 0], sizes = [2, 32], strides = [1, 1]} : vector<2x96xf32> to vector<2x32xf32>
    %458 = vector.extract_strided_slice %456 {offsets = [0, 0], sizes = [2, 32], strides = [1, 1]} : vector<2x96xf32> to vector<2x32xf32>
    %459 = arith.addf %457, %458 : vector<2x32xf32>
    %460 = arith.negf %459 : vector<2x32xf32>
    %461 = math.exp %460 : vector<2x32xf32>
    %cst_131 = arith.constant 1.000000e+00 : f32
    %462 = vector.broadcast %cst_131 : f32 to vector<2x32xf32>
    %463 = arith.addf %462, %461 : vector<2x32xf32>
    %464 = arith.divf %462, %463 : vector<2x32xf32>
    %465 = vector.extract_strided_slice %453 {offsets = [0, 32], sizes = [2, 32], strides = [1, 1]} : vector<2x96xf32> to vector<2x32xf32>
    %466 = vector.extract_strided_slice %456 {offsets = [0, 32], sizes = [2, 32], strides = [1, 1]} : vector<2x96xf32> to vector<2x32xf32>
    %467 = arith.addf %465, %466 : vector<2x32xf32>
    %468 = arith.negf %467 : vector<2x32xf32>
    %469 = math.exp %468 : vector<2x32xf32>
    %cst_132 = arith.constant 1.000000e+00 : f32
    %470 = vector.broadcast %cst_132 : f32 to vector<2x32xf32>
    %471 = arith.addf %470, %469 : vector<2x32xf32>
    %472 = arith.divf %470, %471 : vector<2x32xf32>
    %473 = vector.extract_strided_slice %453 {offsets = [0, 64], sizes = [2, 32], strides = [1, 1]} : vector<2x96xf32> to vector<2x32xf32>
    %474 = vector.extract_strided_slice %456 {offsets = [0, 64], sizes = [2, 32], strides = [1, 1]} : vector<2x96xf32> to vector<2x32xf32>
    %475 = arith.mulf %464, %474 : vector<2x32xf32>
    %476 = arith.addf %473, %475 : vector<2x32xf32>
    %477 = math.tanh %476 : vector<2x32xf32>
    %cst_133 = arith.constant 1.000000e+00 : f32
    %478 = vector.broadcast %cst_133 : f32 to vector<2x32xf32>
    %479 = arith.subf %478, %472 : vector<2x32xf32>
    %480 = arith.mulf %479, %477 : vector<2x32xf32>
    %481 = arith.mulf %472, %420 : vector<2x32xf32>
    %482 = arith.addf %480, %481 : vector<2x32xf32>
    %c14_134 = arith.constant 14 : index
    %c0_135 = arith.constant 0 : index
    %483 = vector.load %arg21[%c14_134, %c0_135] : memref<16x64xf32, #tpu.memory_space<vmem>>, vector<2x32xf32>
    tpu.vector_store %arg21[%c14_134, %c0_135], %482 {strides = array<i32>} : memref<16x64xf32, #tpu.memory_space<vmem>>, vector<2x32xf32>,
    %c0_136 = arith.constant 0 : index
    %c0_137 = arith.constant 0 : index
    %484 = vector.load %arg24[%c0_136, %c0_137] : memref<16x96xf32, #tpu.memory_space<vmem>>, vector<2x96xf32>
    %cst_138 = arith.constant dense<0.000000e+00> : vector<2x96xf32>
    %485 = tpu.matmul %451, %15, %cst_138 {dimension_numbers = #tpu.dot_dimension_numbers<[1], [0], [0], [1], [0, 0, 1, 1], [], []>} : vector<2x32xf32>, vector<32x96xf32>, vector<2x96xf32> -> vector<2x96xf32>
    %486 = vector.broadcast %16 : vector<1x96xf32> to vector<2x96xf32>
    %487 = arith.addf %485, %486 : vector<2x96xf32>
    %488 = vector.extract_strided_slice %484 {offsets = [0, 0], sizes = [2, 32], strides = [1, 1]} : vector<2x96xf32> to vector<2x32xf32>
    %489 = vector.extract_strided_slice %487 {offsets = [0, 0], sizes = [2, 32], strides = [1, 1]} : vector<2x96xf32> to vector<2x32xf32>
    %490 = arith.addf %488, %489 : vector<2x32xf32>
    %491 = arith.negf %490 : vector<2x32xf32>
    %492 = math.exp %491 : vector<2x32xf32>
    %cst_139 = arith.constant 1.000000e+00 : f32
    %493 = vector.broadcast %cst_139 : f32 to vector<2x32xf32>
    %494 = arith.addf %493, %492 : vector<2x32xf32>
    %495 = arith.divf %493, %494 : vector<2x32xf32>
    %496 = vector.extract_strided_slice %484 {offsets = [0, 32], sizes = [2, 32], strides = [1, 1]} : vector<2x96xf32> to vector<2x32xf32>
    %497 = vector.extract_strided_slice %487 {offsets = [0, 32], sizes = [2, 32], strides = [1, 1]} : vector<2x96xf32> to vector<2x32xf32>
    %498 = arith.addf %496, %497 : vector<2x32xf32>
    %499 = arith.negf %498 : vector<2x32xf32>
    %500 = math.exp %499 : vector<2x32xf32>
    %cst_140 = arith.constant 1.000000e+00 : f32
    %501 = vector.broadcast %cst_140 : f32 to vector<2x32xf32>
    %502 = arith.addf %501, %500 : vector<2x32xf32>
    %503 = arith.divf %501, %502 : vector<2x32xf32>
    %504 = vector.extract_strided_slice %484 {offsets = [0, 64], sizes = [2, 32], strides = [1, 1]} : vector<2x96xf32> to vector<2x32xf32>
    %505 = vector.extract_strided_slice %487 {offsets = [0, 64], sizes = [2, 32], strides = [1, 1]} : vector<2x96xf32> to vector<2x32xf32>
    %506 = arith.mulf %495, %505 : vector<2x32xf32>
    %507 = arith.addf %504, %506 : vector<2x32xf32>
    %508 = math.tanh %507 : vector<2x32xf32>
    %cst_141 = arith.constant 1.000000e+00 : f32
    %509 = vector.broadcast %cst_141 : f32 to vector<2x32xf32>
    %510 = arith.subf %509, %503 : vector<2x32xf32>
    %511 = arith.mulf %510, %508 : vector<2x32xf32>
    %512 = arith.mulf %503, %451 : vector<2x32xf32>
    %513 = arith.addf %511, %512 : vector<2x32xf32>
    %c0_142 = arith.constant 0 : index
    %c32_143 = arith.constant 32 : index
    %514 = vector.load %arg21[%c0_142, %c32_143] : memref<16x64xf32, #tpu.memory_space<vmem>>, vector<2x32xf32>
    tpu.vector_store %arg21[%c0_142, %c32_143], %513 {strides = array<i32>} : memref<16x64xf32, #tpu.memory_space<vmem>>, vector<2x32xf32>,
    %c0_144 = arith.constant 0 : index
    %c0_145 = arith.constant 0 : index
    %515 = vector.load %arg21[%c0_144, %c0_145] : memref<16x64xf32, #tpu.memory_space<vmem>>, vector<16x64xf32>
    %c0_146 = arith.constant 0 : index
    %c0_147 = arith.constant 0 : index
    %516 = vector.load %arg9[%c0_146, %c0_147] : memref<64x96xf32, #tpu.memory_space<vmem>>, vector<64x96xf32>
    %cst_148 = arith.constant dense<0.000000e+00> : vector<16x96xf32>
    %517 = tpu.matmul %515, %516, %cst_148 {dimension_numbers = #tpu.dot_dimension_numbers<[1], [0], [0], [1], [0, 0, 1, 1], [], []>} : vector<16x64xf32>, vector<64x96xf32>, vector<16x96xf32> -> vector<16x96xf32>
    %c0_149 = arith.constant 0 : index
    %c0_150 = arith.constant 0 : index
    %518 = vector.load %arg11[%c0_149, %c0_150] : memref<1x96xf32, #tpu.memory_space<vmem>>, vector<1x96xf32>
    %519 = vector.broadcast %518 : vector<1x96xf32> to vector<16x96xf32>
    %520 = arith.addf %517, %519 : vector<16x96xf32>
    %c0_151 = arith.constant 0 : index
    %c0_152 = arith.constant 0 : index
    %521 = vector.load %arg23[%c0_151, %c0_152] : memref<16x96xf32, #tpu.memory_space<vmem>>, vector<16x96xf32>
    tpu.vector_store %arg23[%c0_151, %c0_152], %520 {strides = array<i32>} : memref<16x96xf32, #tpu.memory_space<vmem>>, vector<16x96xf32>,
    %c0_153 = arith.constant 0 : index
    %c0_154 = arith.constant 0 : index
    %522 = vector.load %arg10[%c0_153, %c0_154] : memref<32x96xf32, #tpu.memory_space<vmem>>, vector<32x96xf32>
    %c0_155 = arith.constant 0 : index
    %c0_156 = arith.constant 0 : index
    %523 = vector.load %arg12[%c0_155, %c0_156] : memref<1x96xf32, #tpu.memory_space<vmem>>, vector<1x96xf32>
    %c0_157 = arith.constant 0 : index
    %c0_158 = arith.constant 0 : index
    %524 = vector.load %arg13[%c0_157, %c0_158] : memref<64x96xf32, #tpu.memory_space<vmem>>, vector<64x96xf32>
    %cst_159 = arith.constant dense<0.000000e+00> : vector<16x96xf32>
    %525 = tpu.matmul %515, %524, %cst_159 {dimension_numbers = #tpu.dot_dimension_numbers<[1], [0], [0], [1], [0, 0, 1, 1], [], []>} : vector<16x64xf32>, vector<64x96xf32>, vector<16x96xf32> -> vector<16x96xf32>
    %c0_160 = arith.constant 0 : index
    %c0_161 = arith.constant 0 : index
    %526 = vector.load %arg15[%c0_160, %c0_161] : memref<1x96xf32, #tpu.memory_space<vmem>>, vector<1x96xf32>
    %527 = vector.broadcast %526 : vector<1x96xf32> to vector<16x96xf32>
    %528 = arith.addf %525, %527 : vector<16x96xf32>
    %c0_162 = arith.constant 0 : index
    %c0_163 = arith.constant 0 : index
    %529 = vector.load %arg24[%c0_162, %c0_163] : memref<16x96xf32, #tpu.memory_space<vmem>>, vector<16x96xf32>
    tpu.vector_store %arg24[%c0_162, %c0_163], %528 {strides = array<i32>} : memref<16x96xf32, #tpu.memory_space<vmem>>, vector<16x96xf32>,
    %c0_164 = arith.constant 0 : index
    %c0_165 = arith.constant 0 : index
    %530 = vector.load %arg14[%c0_164, %c0_165] : memref<32x96xf32, #tpu.memory_space<vmem>>, vector<32x96xf32>
    %c0_166 = arith.constant 0 : index
    %c0_167 = arith.constant 0 : index
    %531 = vector.load %arg16[%c0_166, %c0_167] : memref<1x96xf32, #tpu.memory_space<vmem>>, vector<1x96xf32>
    %cst_168 = arith.constant 0.000000e+00 : f32
    %532 = vector.broadcast %cst_168 : f32 to vector<2x32xf32>
    %cst_169 = arith.constant 0.000000e+00 : f32
    %533 = vector.broadcast %cst_169 : f32 to vector<2x32xf32>
    %c0_170 = arith.constant 0 : index
    %c0_171 = arith.constant 0 : index
    %534 = vector.load %arg23[%c0_170, %c0_171] : memref<16x96xf32, #tpu.memory_space<vmem>>, vector<2x96xf32>
    %cst_172 = arith.constant dense<0.000000e+00> : vector<2x96xf32>
    %535 = tpu.matmul %532, %522, %cst_172 {dimension_numbers = #tpu.dot_dimension_numbers<[1], [0], [0], [1], [0, 0, 1, 1], [], []>} : vector<2x32xf32>, vector<32x96xf32>, vector<2x96xf32> -> vector<2x96xf32>
    %536 = vector.broadcast %523 : vector<1x96xf32> to vector<2x96xf32>
    %537 = arith.addf %535, %536 : vector<2x96xf32>
    %538 = vector.extract_strided_slice %534 {offsets = [0, 0], sizes = [2, 32], strides = [1, 1]} : vector<2x96xf32> to vector<2x32xf32>
    %539 = vector.extract_strided_slice %537 {offsets = [0, 0], sizes = [2, 32], strides = [1, 1]} : vector<2x96xf32> to vector<2x32xf32>
    %540 = arith.addf %538, %539 : vector<2x32xf32>
    %541 = arith.negf %540 : vector<2x32xf32>
    %542 = math.exp %541 : vector<2x32xf32>
    %cst_173 = arith.constant 1.000000e+00 : f32
    %543 = vector.broadcast %cst_173 : f32 to vector<2x32xf32>
    %544 = arith.addf %543, %542 : vector<2x32xf32>
    %545 = arith.divf %543, %544 : vector<2x32xf32>
    %546 = vector.extract_strided_slice %534 {offsets = [0, 32], sizes = [2, 32], strides = [1, 1]} : vector<2x96xf32> to vector<2x32xf32>
    %547 = vector.extract_strided_slice %537 {offsets = [0, 32], sizes = [2, 32], strides = [1, 1]} : vector<2x96xf32> to vector<2x32xf32>
    %548 = arith.addf %546, %547 : vector<2x32xf32>
    %549 = arith.negf %548 : vector<2x32xf32>
    %550 = math.exp %549 : vector<2x32xf32>
    %cst_174 = arith.constant 1.000000e+00 : f32
    %551 = vector.broadcast %cst_174 : f32 to vector<2x32xf32>
    %552 = arith.addf %551, %550 : vector<2x32xf32>
    %553 = arith.divf %551, %552 : vector<2x32xf32>
    %554 = vector.extract_strided_slice %534 {offsets = [0, 64], sizes = [2, 32], strides = [1, 1]} : vector<2x96xf32> to vector<2x32xf32>
    %555 = vector.extract_strided_slice %537 {offsets = [0, 64], sizes = [2, 32], strides = [1, 1]} : vector<2x96xf32> to vector<2x32xf32>
    %556 = arith.mulf %545, %555 : vector<2x32xf32>
    %557 = arith.addf %554, %556 : vector<2x32xf32>
    %558 = math.tanh %557 : vector<2x32xf32>
    %cst_175 = arith.constant 1.000000e+00 : f32
    %559 = vector.broadcast %cst_175 : f32 to vector<2x32xf32>
    %560 = arith.subf %559, %553 : vector<2x32xf32>
    %561 = arith.mulf %560, %558 : vector<2x32xf32>
    %562 = arith.mulf %553, %532 : vector<2x32xf32>
    %563 = arith.addf %561, %562 : vector<2x32xf32>
    %c0_176 = arith.constant 0 : index
    %c0_177 = arith.constant 0 : index
    %564 = vector.load %arg21[%c0_176, %c0_177] : memref<16x64xf32, #tpu.memory_space<vmem>>, vector<2x32xf32>
    tpu.vector_store %arg21[%c0_176, %c0_177], %563 {strides = array<i32>} : memref<16x64xf32, #tpu.memory_space<vmem>>, vector<2x32xf32>,
    %c14_178 = arith.constant 14 : index
    %c0_179 = arith.constant 0 : index
    %565 = vector.load %arg24[%c14_178, %c0_179] : memref<16x96xf32, #tpu.memory_space<vmem>>, vector<2x96xf32>
    %cst_180 = arith.constant dense<0.000000e+00> : vector<2x96xf32>
    %566 = tpu.matmul %533, %530, %cst_180 {dimension_numbers = #tpu.dot_dimension_numbers<[1], [0], [0], [1], [0, 0, 1, 1], [], []>} : vector<2x32xf32>, vector<32x96xf32>, vector<2x96xf32> -> vector<2x96xf32>
    %567 = vector.broadcast %531 : vector<1x96xf32> to vector<2x96xf32>
    %568 = arith.addf %566, %567 : vector<2x96xf32>
    %569 = vector.extract_strided_slice %565 {offsets = [0, 0], sizes = [2, 32], strides = [1, 1]} : vector<2x96xf32> to vector<2x32xf32>
    %570 = vector.extract_strided_slice %568 {offsets = [0, 0], sizes = [2, 32], strides = [1, 1]} : vector<2x96xf32> to vector<2x32xf32>
    %571 = arith.addf %569, %570 : vector<2x32xf32>
    %572 = arith.negf %571 : vector<2x32xf32>
    %573 = math.exp %572 : vector<2x32xf32>
    %cst_181 = arith.constant 1.000000e+00 : f32
    %574 = vector.broadcast %cst_181 : f32 to vector<2x32xf32>
    %575 = arith.addf %574, %573 : vector<2x32xf32>
    %576 = arith.divf %574, %575 : vector<2x32xf32>
    %577 = vector.extract_strided_slice %565 {offsets = [0, 32], sizes = [2, 32], strides = [1, 1]} : vector<2x96xf32> to vector<2x32xf32>
    %578 = vector.extract_strided_slice %568 {offsets = [0, 32], sizes = [2, 32], strides = [1, 1]} : vector<2x96xf32> to vector<2x32xf32>
    %579 = arith.addf %577, %578 : vector<2x32xf32>
    %580 = arith.negf %579 : vector<2x32xf32>
    %581 = math.exp %580 : vector<2x32xf32>
    %cst_182 = arith.constant 1.000000e+00 : f32
    %582 = vector.broadcast %cst_182 : f32 to vector<2x32xf32>
    %583 = arith.addf %582, %581 : vector<2x32xf32>
    %584 = arith.divf %582, %583 : vector<2x32xf32>
    %585 = vector.extract_strided_slice %565 {offsets = [0, 64], sizes = [2, 32], strides = [1, 1]} : vector<2x96xf32> to vector<2x32xf32>
    %586 = vector.extract_strided_slice %568 {offsets = [0, 64], sizes = [2, 32], strides = [1, 1]} : vector<2x96xf32> to vector<2x32xf32>
    %587 = arith.mulf %576, %586 : vector<2x32xf32>
    %588 = arith.addf %585, %587 : vector<2x32xf32>
    %589 = math.tanh %588 : vector<2x32xf32>
    %cst_183 = arith.constant 1.000000e+00 : f32
    %590 = vector.broadcast %cst_183 : f32 to vector<2x32xf32>
    %591 = arith.subf %590, %584 : vector<2x32xf32>
    %592 = arith.mulf %591, %589 : vector<2x32xf32>
    %593 = arith.mulf %584, %533 : vector<2x32xf32>
    %594 = arith.addf %592, %593 : vector<2x32xf32>
    %c14_184 = arith.constant 14 : index
    %c32_185 = arith.constant 32 : index
    %595 = vector.load %arg21[%c14_184, %c32_185] : memref<16x64xf32, #tpu.memory_space<vmem>>, vector<2x32xf32>
    tpu.vector_store %arg21[%c14_184, %c32_185], %594 {strides = array<i32>} : memref<16x64xf32, #tpu.memory_space<vmem>>, vector<2x32xf32>,
    %c2_186 = arith.constant 2 : index
    %c0_187 = arith.constant 0 : index
    %596 = vector.load %arg23[%c2_186, %c0_187] : memref<16x96xf32, #tpu.memory_space<vmem>>, vector<2x96xf32>
    %cst_188 = arith.constant dense<0.000000e+00> : vector<2x96xf32>
    %597 = tpu.matmul %563, %522, %cst_188 {dimension_numbers = #tpu.dot_dimension_numbers<[1], [0], [0], [1], [0, 0, 1, 1], [], []>} : vector<2x32xf32>, vector<32x96xf32>, vector<2x96xf32> -> vector<2x96xf32>
    %598 = vector.broadcast %523 : vector<1x96xf32> to vector<2x96xf32>
    %599 = arith.addf %597, %598 : vector<2x96xf32>
    %600 = vector.extract_strided_slice %596 {offsets = [0, 0], sizes = [2, 32], strides = [1, 1]} : vector<2x96xf32> to vector<2x32xf32>
    %601 = vector.extract_strided_slice %599 {offsets = [0, 0], sizes = [2, 32], strides = [1, 1]} : vector<2x96xf32> to vector<2x32xf32>
    %602 = arith.addf %600, %601 : vector<2x32xf32>
    %603 = arith.negf %602 : vector<2x32xf32>
    %604 = math.exp %603 : vector<2x32xf32>
    %cst_189 = arith.constant 1.000000e+00 : f32
    %605 = vector.broadcast %cst_189 : f32 to vector<2x32xf32>
    %606 = arith.addf %605, %604 : vector<2x32xf32>
    %607 = arith.divf %605, %606 : vector<2x32xf32>
    %608 = vector.extract_strided_slice %596 {offsets = [0, 32], sizes = [2, 32], strides = [1, 1]} : vector<2x96xf32> to vector<2x32xf32>
    %609 = vector.extract_strided_slice %599 {offsets = [0, 32], sizes = [2, 32], strides = [1, 1]} : vector<2x96xf32> to vector<2x32xf32>
    %610 = arith.addf %608, %609 : vector<2x32xf32>
    %611 = arith.negf %610 : vector<2x32xf32>
    %612 = math.exp %611 : vector<2x32xf32>
    %cst_190 = arith.constant 1.000000e+00 : f32
    %613 = vector.broadcast %cst_190 : f32 to vector<2x32xf32>
    %614 = arith.addf %613, %612 : vector<2x32xf32>
    %615 = arith.divf %613, %614 : vector<2x32xf32>
    %616 = vector.extract_strided_slice %596 {offsets = [0, 64], sizes = [2, 32], strides = [1, 1]} : vector<2x96xf32> to vector<2x32xf32>
    %617 = vector.extract_strided_slice %599 {offsets = [0, 64], sizes = [2, 32], strides = [1, 1]} : vector<2x96xf32> to vector<2x32xf32>
    %618 = arith.mulf %607, %617 : vector<2x32xf32>
    %619 = arith.addf %616, %618 : vector<2x32xf32>
    %620 = math.tanh %619 : vector<2x32xf32>
    %cst_191 = arith.constant 1.000000e+00 : f32
    %621 = vector.broadcast %cst_191 : f32 to vector<2x32xf32>
    %622 = arith.subf %621, %615 : vector<2x32xf32>
    %623 = arith.mulf %622, %620 : vector<2x32xf32>
    %624 = arith.mulf %615, %563 : vector<2x32xf32>
    %625 = arith.addf %623, %624 : vector<2x32xf32>
    %c2_192 = arith.constant 2 : index
    %c0_193 = arith.constant 0 : index
    %626 = vector.load %arg21[%c2_192, %c0_193] : memref<16x64xf32, #tpu.memory_space<vmem>>, vector<2x32xf32>
    tpu.vector_store %arg21[%c2_192, %c0_193], %625 {strides = array<i32>} : memref<16x64xf32, #tpu.memory_space<vmem>>, vector<2x32xf32>,
    %c12_194 = arith.constant 12 : index
    %c0_195 = arith.constant 0 : index
    %627 = vector.load %arg24[%c12_194, %c0_195] : memref<16x96xf32, #tpu.memory_space<vmem>>, vector<2x96xf32>
    %cst_196 = arith.constant dense<0.000000e+00> : vector<2x96xf32>
    %628 = tpu.matmul %594, %530, %cst_196 {dimension_numbers = #tpu.dot_dimension_numbers<[1], [0], [0], [1], [0, 0, 1, 1], [], []>} : vector<2x32xf32>, vector<32x96xf32>, vector<2x96xf32> -> vector<2x96xf32>
    %629 = vector.broadcast %531 : vector<1x96xf32> to vector<2x96xf32>
    %630 = arith.addf %628, %629 : vector<2x96xf32>
    %631 = vector.extract_strided_slice %627 {offsets = [0, 0], sizes = [2, 32], strides = [1, 1]} : vector<2x96xf32> to vector<2x32xf32>
    %632 = vector.extract_strided_slice %630 {offsets = [0, 0], sizes = [2, 32], strides = [1, 1]} : vector<2x96xf32> to vector<2x32xf32>
    %633 = arith.addf %631, %632 : vector<2x32xf32>
    %634 = arith.negf %633 : vector<2x32xf32>
    %635 = math.exp %634 : vector<2x32xf32>
    %cst_197 = arith.constant 1.000000e+00 : f32
    %636 = vector.broadcast %cst_197 : f32 to vector<2x32xf32>
    %637 = arith.addf %636, %635 : vector<2x32xf32>
    %638 = arith.divf %636, %637 : vector<2x32xf32>
    %639 = vector.extract_strided_slice %627 {offsets = [0, 32], sizes = [2, 32], strides = [1, 1]} : vector<2x96xf32> to vector<2x32xf32>
    %640 = vector.extract_strided_slice %630 {offsets = [0, 32], sizes = [2, 32], strides = [1, 1]} : vector<2x96xf32> to vector<2x32xf32>
    %641 = arith.addf %639, %640 : vector<2x32xf32>
    %642 = arith.negf %641 : vector<2x32xf32>
    %643 = math.exp %642 : vector<2x32xf32>
    %cst_198 = arith.constant 1.000000e+00 : f32
    %644 = vector.broadcast %cst_198 : f32 to vector<2x32xf32>
    %645 = arith.addf %644, %643 : vector<2x32xf32>
    %646 = arith.divf %644, %645 : vector<2x32xf32>
    %647 = vector.extract_strided_slice %627 {offsets = [0, 64], sizes = [2, 32], strides = [1, 1]} : vector<2x96xf32> to vector<2x32xf32>
    %648 = vector.extract_strided_slice %630 {offsets = [0, 64], sizes = [2, 32], strides = [1, 1]} : vector<2x96xf32> to vector<2x32xf32>
    %649 = arith.mulf %638, %648 : vector<2x32xf32>
    %650 = arith.addf %647, %649 : vector<2x32xf32>
    %651 = math.tanh %650 : vector<2x32xf32>
    %cst_199 = arith.constant 1.000000e+00 : f32
    %652 = vector.broadcast %cst_199 : f32 to vector<2x32xf32>
    %653 = arith.subf %652, %646 : vector<2x32xf32>
    %654 = arith.mulf %653, %651 : vector<2x32xf32>
    %655 = arith.mulf %646, %594 : vector<2x32xf32>
    %656 = arith.addf %654, %655 : vector<2x32xf32>
    %c12_200 = arith.constant 12 : index
    %c32_201 = arith.constant 32 : index
    %657 = vector.load %arg21[%c12_200, %c32_201] : memref<16x64xf32, #tpu.memory_space<vmem>>, vector<2x32xf32>
    tpu.vector_store %arg21[%c12_200, %c32_201], %656 {strides = array<i32>} : memref<16x64xf32, #tpu.memory_space<vmem>>, vector<2x32xf32>,
    %c4_202 = arith.constant 4 : index
    %c0_203 = arith.constant 0 : index
    %658 = vector.load %arg23[%c4_202, %c0_203] : memref<16x96xf32, #tpu.memory_space<vmem>>, vector<2x96xf32>
    %cst_204 = arith.constant dense<0.000000e+00> : vector<2x96xf32>
    %659 = tpu.matmul %625, %522, %cst_204 {dimension_numbers = #tpu.dot_dimension_numbers<[1], [0], [0], [1], [0, 0, 1, 1], [], []>} : vector<2x32xf32>, vector<32x96xf32>, vector<2x96xf32> -> vector<2x96xf32>
    %660 = vector.broadcast %523 : vector<1x96xf32> to vector<2x96xf32>
    %661 = arith.addf %659, %660 : vector<2x96xf32>
    %662 = vector.extract_strided_slice %658 {offsets = [0, 0], sizes = [2, 32], strides = [1, 1]} : vector<2x96xf32> to vector<2x32xf32>
    %663 = vector.extract_strided_slice %661 {offsets = [0, 0], sizes = [2, 32], strides = [1, 1]} : vector<2x96xf32> to vector<2x32xf32>
    %664 = arith.addf %662, %663 : vector<2x32xf32>
    %665 = arith.negf %664 : vector<2x32xf32>
    %666 = math.exp %665 : vector<2x32xf32>
    %cst_205 = arith.constant 1.000000e+00 : f32
    %667 = vector.broadcast %cst_205 : f32 to vector<2x32xf32>
    %668 = arith.addf %667, %666 : vector<2x32xf32>
    %669 = arith.divf %667, %668 : vector<2x32xf32>
    %670 = vector.extract_strided_slice %658 {offsets = [0, 32], sizes = [2, 32], strides = [1, 1]} : vector<2x96xf32> to vector<2x32xf32>
    %671 = vector.extract_strided_slice %661 {offsets = [0, 32], sizes = [2, 32], strides = [1, 1]} : vector<2x96xf32> to vector<2x32xf32>
    %672 = arith.addf %670, %671 : vector<2x32xf32>
    %673 = arith.negf %672 : vector<2x32xf32>
    %674 = math.exp %673 : vector<2x32xf32>
    %cst_206 = arith.constant 1.000000e+00 : f32
    %675 = vector.broadcast %cst_206 : f32 to vector<2x32xf32>
    %676 = arith.addf %675, %674 : vector<2x32xf32>
    %677 = arith.divf %675, %676 : vector<2x32xf32>
    %678 = vector.extract_strided_slice %658 {offsets = [0, 64], sizes = [2, 32], strides = [1, 1]} : vector<2x96xf32> to vector<2x32xf32>
    %679 = vector.extract_strided_slice %661 {offsets = [0, 64], sizes = [2, 32], strides = [1, 1]} : vector<2x96xf32> to vector<2x32xf32>
    %680 = arith.mulf %669, %679 : vector<2x32xf32>
    %681 = arith.addf %678, %680 : vector<2x32xf32>
    %682 = math.tanh %681 : vector<2x32xf32>
    %cst_207 = arith.constant 1.000000e+00 : f32
    %683 = vector.broadcast %cst_207 : f32 to vector<2x32xf32>
    %684 = arith.subf %683, %677 : vector<2x32xf32>
    %685 = arith.mulf %684, %682 : vector<2x32xf32>
    %686 = arith.mulf %677, %625 : vector<2x32xf32>
    %687 = arith.addf %685, %686 : vector<2x32xf32>
    %c4_208 = arith.constant 4 : index
    %c0_209 = arith.constant 0 : index
    %688 = vector.load %arg21[%c4_208, %c0_209] : memref<16x64xf32, #tpu.memory_space<vmem>>, vector<2x32xf32>
    tpu.vector_store %arg21[%c4_208, %c0_209], %687 {strides = array<i32>} : memref<16x64xf32, #tpu.memory_space<vmem>>, vector<2x32xf32>,
    %c10_210 = arith.constant 10 : index
    %c0_211 = arith.constant 0 : index
    %689 = vector.load %arg24[%c10_210, %c0_211] : memref<16x96xf32, #tpu.memory_space<vmem>>, vector<2x96xf32>
    %cst_212 = arith.constant dense<0.000000e+00> : vector<2x96xf32>
    %690 = tpu.matmul %656, %530, %cst_212 {dimension_numbers = #tpu.dot_dimension_numbers<[1], [0], [0], [1], [0, 0, 1, 1], [], []>} : vector<2x32xf32>, vector<32x96xf32>, vector<2x96xf32> -> vector<2x96xf32>
    %691 = vector.broadcast %531 : vector<1x96xf32> to vector<2x96xf32>
    %692 = arith.addf %690, %691 : vector<2x96xf32>
    %693 = vector.extract_strided_slice %689 {offsets = [0, 0], sizes = [2, 32], strides = [1, 1]} : vector<2x96xf32> to vector<2x32xf32>
    %694 = vector.extract_strided_slice %692 {offsets = [0, 0], sizes = [2, 32], strides = [1, 1]} : vector<2x96xf32> to vector<2x32xf32>
    %695 = arith.addf %693, %694 : vector<2x32xf32>
    %696 = arith.negf %695 : vector<2x32xf32>
    %697 = math.exp %696 : vector<2x32xf32>
    %cst_213 = arith.constant 1.000000e+00 : f32
    %698 = vector.broadcast %cst_213 : f32 to vector<2x32xf32>
    %699 = arith.addf %698, %697 : vector<2x32xf32>
    %700 = arith.divf %698, %699 : vector<2x32xf32>
    %701 = vector.extract_strided_slice %689 {offsets = [0, 32], sizes = [2, 32], strides = [1, 1]} : vector<2x96xf32> to vector<2x32xf32>
    %702 = vector.extract_strided_slice %692 {offsets = [0, 32], sizes = [2, 32], strides = [1, 1]} : vector<2x96xf32> to vector<2x32xf32>
    %703 = arith.addf %701, %702 : vector<2x32xf32>
    %704 = arith.negf %703 : vector<2x32xf32>
    %705 = math.exp %704 : vector<2x32xf32>
    %cst_214 = arith.constant 1.000000e+00 : f32
    %706 = vector.broadcast %cst_214 : f32 to vector<2x32xf32>
    %707 = arith.addf %706, %705 : vector<2x32xf32>
    %708 = arith.divf %706, %707 : vector<2x32xf32>
    %709 = vector.extract_strided_slice %689 {offsets = [0, 64], sizes = [2, 32], strides = [1, 1]} : vector<2x96xf32> to vector<2x32xf32>
    %710 = vector.extract_strided_slice %692 {offsets = [0, 64], sizes = [2, 32], strides = [1, 1]} : vector<2x96xf32> to vector<2x32xf32>
    %711 = arith.mulf %700, %710 : vector<2x32xf32>
    %712 = arith.addf %709, %711 : vector<2x32xf32>
    %713 = math.tanh %712 : vector<2x32xf32>
    %cst_215 = arith.constant 1.000000e+00 : f32
    %714 = vector.broadcast %cst_215 : f32 to vector<2x32xf32>
    %715 = arith.subf %714, %708 : vector<2x32xf32>
    %716 = arith.mulf %715, %713 : vector<2x32xf32>
    %717 = arith.mulf %708, %656 : vector<2x32xf32>
    %718 = arith.addf %716, %717 : vector<2x32xf32>
    %c10_216 = arith.constant 10 : index
    %c32_217 = arith.constant 32 : index
    %719 = vector.load %arg21[%c10_216, %c32_217] : memref<16x64xf32, #tpu.memory_space<vmem>>, vector<2x32xf32>
    tpu.vector_store %arg21[%c10_216, %c32_217], %718 {strides = array<i32>} : memref<16x64xf32, #tpu.memory_space<vmem>>, vector<2x32xf32>,
    %c6_218 = arith.constant 6 : index
    %c0_219 = arith.constant 0 : index
    %720 = vector.load %arg23[%c6_218, %c0_219] : memref<16x96xf32, #tpu.memory_space<vmem>>, vector<2x96xf32>
    %cst_220 = arith.constant dense<0.000000e+00> : vector<2x96xf32>
    %721 = tpu.matmul %687, %522, %cst_220 {dimension_numbers = #tpu.dot_dimension_numbers<[1], [0], [0], [1], [0, 0, 1, 1], [], []>} : vector<2x32xf32>, vector<32x96xf32>, vector<2x96xf32> -> vector<2x96xf32>
    %722 = vector.broadcast %523 : vector<1x96xf32> to vector<2x96xf32>
    %723 = arith.addf %721, %722 : vector<2x96xf32>
    %724 = vector.extract_strided_slice %720 {offsets = [0, 0], sizes = [2, 32], strides = [1, 1]} : vector<2x96xf32> to vector<2x32xf32>
    %725 = vector.extract_strided_slice %723 {offsets = [0, 0], sizes = [2, 32], strides = [1, 1]} : vector<2x96xf32> to vector<2x32xf32>
    %726 = arith.addf %724, %725 : vector<2x32xf32>
    %727 = arith.negf %726 : vector<2x32xf32>
    %728 = math.exp %727 : vector<2x32xf32>
    %cst_221 = arith.constant 1.000000e+00 : f32
    %729 = vector.broadcast %cst_221 : f32 to vector<2x32xf32>
    %730 = arith.addf %729, %728 : vector<2x32xf32>
    %731 = arith.divf %729, %730 : vector<2x32xf32>
    %732 = vector.extract_strided_slice %720 {offsets = [0, 32], sizes = [2, 32], strides = [1, 1]} : vector<2x96xf32> to vector<2x32xf32>
    %733 = vector.extract_strided_slice %723 {offsets = [0, 32], sizes = [2, 32], strides = [1, 1]} : vector<2x96xf32> to vector<2x32xf32>
    %734 = arith.addf %732, %733 : vector<2x32xf32>
    %735 = arith.negf %734 : vector<2x32xf32>
    %736 = math.exp %735 : vector<2x32xf32>
    %cst_222 = arith.constant 1.000000e+00 : f32
    %737 = vector.broadcast %cst_222 : f32 to vector<2x32xf32>
    %738 = arith.addf %737, %736 : vector<2x32xf32>
    %739 = arith.divf %737, %738 : vector<2x32xf32>
    %740 = vector.extract_strided_slice %720 {offsets = [0, 64], sizes = [2, 32], strides = [1, 1]} : vector<2x96xf32> to vector<2x32xf32>
    %741 = vector.extract_strided_slice %723 {offsets = [0, 64], sizes = [2, 32], strides = [1, 1]} : vector<2x96xf32> to vector<2x32xf32>
    %742 = arith.mulf %731, %741 : vector<2x32xf32>
    %743 = arith.addf %740, %742 : vector<2x32xf32>
    %744 = math.tanh %743 : vector<2x32xf32>
    %cst_223 = arith.constant 1.000000e+00 : f32
    %745 = vector.broadcast %cst_223 : f32 to vector<2x32xf32>
    %746 = arith.subf %745, %739 : vector<2x32xf32>
    %747 = arith.mulf %746, %744 : vector<2x32xf32>
    %748 = arith.mulf %739, %687 : vector<2x32xf32>
    %749 = arith.addf %747, %748 : vector<2x32xf32>
    %c6_224 = arith.constant 6 : index
    %c0_225 = arith.constant 0 : index
    %750 = vector.load %arg21[%c6_224, %c0_225] : memref<16x64xf32, #tpu.memory_space<vmem>>, vector<2x32xf32>
    tpu.vector_store %arg21[%c6_224, %c0_225], %749 {strides = array<i32>} : memref<16x64xf32, #tpu.memory_space<vmem>>, vector<2x32xf32>,
    %c8_226 = arith.constant 8 : index
    %c0_227 = arith.constant 0 : index
    %751 = vector.load %arg24[%c8_226, %c0_227] : memref<16x96xf32, #tpu.memory_space<vmem>>, vector<2x96xf32>
    %cst_228 = arith.constant dense<0.000000e+00> : vector<2x96xf32>
    %752 = tpu.matmul %718, %530, %cst_228 {dimension_numbers = #tpu.dot_dimension_numbers<[1], [0], [0], [1], [0, 0, 1, 1], [], []>} : vector<2x32xf32>, vector<32x96xf32>, vector<2x96xf32> -> vector<2x96xf32>
    %753 = vector.broadcast %531 : vector<1x96xf32> to vector<2x96xf32>
    %754 = arith.addf %752, %753 : vector<2x96xf32>
    %755 = vector.extract_strided_slice %751 {offsets = [0, 0], sizes = [2, 32], strides = [1, 1]} : vector<2x96xf32> to vector<2x32xf32>
    %756 = vector.extract_strided_slice %754 {offsets = [0, 0], sizes = [2, 32], strides = [1, 1]} : vector<2x96xf32> to vector<2x32xf32>
    %757 = arith.addf %755, %756 : vector<2x32xf32>
    %758 = arith.negf %757 : vector<2x32xf32>
    %759 = math.exp %758 : vector<2x32xf32>
    %cst_229 = arith.constant 1.000000e+00 : f32
    %760 = vector.broadcast %cst_229 : f32 to vector<2x32xf32>
    %761 = arith.addf %760, %759 : vector<2x32xf32>
    %762 = arith.divf %760, %761 : vector<2x32xf32>
    %763 = vector.extract_strided_slice %751 {offsets = [0, 32], sizes = [2, 32], strides = [1, 1]} : vector<2x96xf32> to vector<2x32xf32>
    %764 = vector.extract_strided_slice %754 {offsets = [0, 32], sizes = [2, 32], strides = [1, 1]} : vector<2x96xf32> to vector<2x32xf32>
    %765 = arith.addf %763, %764 : vector<2x32xf32>
    %766 = arith.negf %765 : vector<2x32xf32>
    %767 = math.exp %766 : vector<2x32xf32>
    %cst_230 = arith.constant 1.000000e+00 : f32
    %768 = vector.broadcast %cst_230 : f32 to vector<2x32xf32>
    %769 = arith.addf %768, %767 : vector<2x32xf32>
    %770 = arith.divf %768, %769 : vector<2x32xf32>
    %771 = vector.extract_strided_slice %751 {offsets = [0, 64], sizes = [2, 32], strides = [1, 1]} : vector<2x96xf32> to vector<2x32xf32>
    %772 = vector.extract_strided_slice %754 {offsets = [0, 64], sizes = [2, 32], strides = [1, 1]} : vector<2x96xf32> to vector<2x32xf32>
    %773 = arith.mulf %762, %772 : vector<2x32xf32>
    %774 = arith.addf %771, %773 : vector<2x32xf32>
    %775 = math.tanh %774 : vector<2x32xf32>
    %cst_231 = arith.constant 1.000000e+00 : f32
    %776 = vector.broadcast %cst_231 : f32 to vector<2x32xf32>
    %777 = arith.subf %776, %770 : vector<2x32xf32>
    %778 = arith.mulf %777, %775 : vector<2x32xf32>
    %779 = arith.mulf %770, %718 : vector<2x32xf32>
    %780 = arith.addf %778, %779 : vector<2x32xf32>
    %c8_232 = arith.constant 8 : index
    %c32_233 = arith.constant 32 : index
    %781 = vector.load %arg21[%c8_232, %c32_233] : memref<16x64xf32, #tpu.memory_space<vmem>>, vector<2x32xf32>
    tpu.vector_store %arg21[%c8_232, %c32_233], %780 {strides = array<i32>} : memref<16x64xf32, #tpu.memory_space<vmem>>, vector<2x32xf32>,
    %c8_234 = arith.constant 8 : index
    %c0_235 = arith.constant 0 : index
    %782 = vector.load %arg23[%c8_234, %c0_235] : memref<16x96xf32, #tpu.memory_space<vmem>>, vector<2x96xf32>
    %cst_236 = arith.constant dense<0.000000e+00> : vector<2x96xf32>
    %783 = tpu.matmul %749, %522, %cst_236 {dimension_numbers = #tpu.dot_dimension_numbers<[1], [0], [0], [1], [0, 0, 1, 1], [], []>} : vector<2x32xf32>, vector<32x96xf32>, vector<2x96xf32> -> vector<2x96xf32>
    %784 = vector.broadcast %523 : vector<1x96xf32> to vector<2x96xf32>
    %785 = arith.addf %783, %784 : vector<2x96xf32>
    %786 = vector.extract_strided_slice %782 {offsets = [0, 0], sizes = [2, 32], strides = [1, 1]} : vector<2x96xf32> to vector<2x32xf32>
    %787 = vector.extract_strided_slice %785 {offsets = [0, 0], sizes = [2, 32], strides = [1, 1]} : vector<2x96xf32> to vector<2x32xf32>
    %788 = arith.addf %786, %787 : vector<2x32xf32>
    %789 = arith.negf %788 : vector<2x32xf32>
    %790 = math.exp %789 : vector<2x32xf32>
    %cst_237 = arith.constant 1.000000e+00 : f32
    %791 = vector.broadcast %cst_237 : f32 to vector<2x32xf32>
    %792 = arith.addf %791, %790 : vector<2x32xf32>
    %793 = arith.divf %791, %792 : vector<2x32xf32>
    %794 = vector.extract_strided_slice %782 {offsets = [0, 32], sizes = [2, 32], strides = [1, 1]} : vector<2x96xf32> to vector<2x32xf32>
    %795 = vector.extract_strided_slice %785 {offsets = [0, 32], sizes = [2, 32], strides = [1, 1]} : vector<2x96xf32> to vector<2x32xf32>
    %796 = arith.addf %794, %795 : vector<2x32xf32>
    %797 = arith.negf %796 : vector<2x32xf32>
    %798 = math.exp %797 : vector<2x32xf32>
    %cst_238 = arith.constant 1.000000e+00 : f32
    %799 = vector.broadcast %cst_238 : f32 to vector<2x32xf32>
    %800 = arith.addf %799, %798 : vector<2x32xf32>
    %801 = arith.divf %799, %800 : vector<2x32xf32>
    %802 = vector.extract_strided_slice %782 {offsets = [0, 64], sizes = [2, 32], strides = [1, 1]} : vector<2x96xf32> to vector<2x32xf32>
    %803 = vector.extract_strided_slice %785 {offsets = [0, 64], sizes = [2, 32], strides = [1, 1]} : vector<2x96xf32> to vector<2x32xf32>
    %804 = arith.mulf %793, %803 : vector<2x32xf32>
    %805 = arith.addf %802, %804 : vector<2x32xf32>
    %806 = math.tanh %805 : vector<2x32xf32>
    %cst_239 = arith.constant 1.000000e+00 : f32
    %807 = vector.broadcast %cst_239 : f32 to vector<2x32xf32>
    %808 = arith.subf %807, %801 : vector<2x32xf32>
    %809 = arith.mulf %808, %806 : vector<2x32xf32>
    %810 = arith.mulf %801, %749 : vector<2x32xf32>
    %811 = arith.addf %809, %810 : vector<2x32xf32>
    %c8_240 = arith.constant 8 : index
    %c0_241 = arith.constant 0 : index
    %812 = vector.load %arg21[%c8_240, %c0_241] : memref<16x64xf32, #tpu.memory_space<vmem>>, vector<2x32xf32>
    tpu.vector_store %arg21[%c8_240, %c0_241], %811 {strides = array<i32>} : memref<16x64xf32, #tpu.memory_space<vmem>>, vector<2x32xf32>,
    %c6_242 = arith.constant 6 : index
    %c0_243 = arith.constant 0 : index
    %813 = vector.load %arg24[%c6_242, %c0_243] : memref<16x96xf32, #tpu.memory_space<vmem>>, vector<2x96xf32>
    %cst_244 = arith.constant dense<0.000000e+00> : vector<2x96xf32>
    %814 = tpu.matmul %780, %530, %cst_244 {dimension_numbers = #tpu.dot_dimension_numbers<[1], [0], [0], [1], [0, 0, 1, 1], [], []>} : vector<2x32xf32>, vector<32x96xf32>, vector<2x96xf32> -> vector<2x96xf32>
    %815 = vector.broadcast %531 : vector<1x96xf32> to vector<2x96xf32>
    %816 = arith.addf %814, %815 : vector<2x96xf32>
    %817 = vector.extract_strided_slice %813 {offsets = [0, 0], sizes = [2, 32], strides = [1, 1]} : vector<2x96xf32> to vector<2x32xf32>
    %818 = vector.extract_strided_slice %816 {offsets = [0, 0], sizes = [2, 32], strides = [1, 1]} : vector<2x96xf32> to vector<2x32xf32>
    %819 = arith.addf %817, %818 : vector<2x32xf32>
    %820 = arith.negf %819 : vector<2x32xf32>
    %821 = math.exp %820 : vector<2x32xf32>
    %cst_245 = arith.constant 1.000000e+00 : f32
    %822 = vector.broadcast %cst_245 : f32 to vector<2x32xf32>
    %823 = arith.addf %822, %821 : vector<2x32xf32>
    %824 = arith.divf %822, %823 : vector<2x32xf32>
    %825 = vector.extract_strided_slice %813 {offsets = [0, 32], sizes = [2, 32], strides = [1, 1]} : vector<2x96xf32> to vector<2x32xf32>
    %826 = vector.extract_strided_slice %816 {offsets = [0, 32], sizes = [2, 32], strides = [1, 1]} : vector<2x96xf32> to vector<2x32xf32>
    %827 = arith.addf %825, %826 : vector<2x32xf32>
    %828 = arith.negf %827 : vector<2x32xf32>
    %829 = math.exp %828 : vector<2x32xf32>
    %cst_246 = arith.constant 1.000000e+00 : f32
    %830 = vector.broadcast %cst_246 : f32 to vector<2x32xf32>
    %831 = arith.addf %830, %829 : vector<2x32xf32>
    %832 = arith.divf %830, %831 : vector<2x32xf32>
    %833 = vector.extract_strided_slice %813 {offsets = [0, 64], sizes = [2, 32], strides = [1, 1]} : vector<2x96xf32> to vector<2x32xf32>
    %834 = vector.extract_strided_slice %816 {offsets = [0, 64], sizes = [2, 32], strides = [1, 1]} : vector<2x96xf32> to vector<2x32xf32>
    %835 = arith.mulf %824, %834 : vector<2x32xf32>
    %836 = arith.addf %833, %835 : vector<2x32xf32>
    %837 = math.tanh %836 : vector<2x32xf32>
    %cst_247 = arith.constant 1.000000e+00 : f32
    %838 = vector.broadcast %cst_247 : f32 to vector<2x32xf32>
    %839 = arith.subf %838, %832 : vector<2x32xf32>
    %840 = arith.mulf %839, %837 : vector<2x32xf32>
    %841 = arith.mulf %832, %780 : vector<2x32xf32>
    %842 = arith.addf %840, %841 : vector<2x32xf32>
    %c6_248 = arith.constant 6 : index
    %c32_249 = arith.constant 32 : index
    %843 = vector.load %arg21[%c6_248, %c32_249] : memref<16x64xf32, #tpu.memory_space<vmem>>, vector<2x32xf32>
    tpu.vector_store %arg21[%c6_248, %c32_249], %842 {strides = array<i32>} : memref<16x64xf32, #tpu.memory_space<vmem>>, vector<2x32xf32>,
    %c10_250 = arith.constant 10 : index
    %c0_251 = arith.constant 0 : index
    %844 = vector.load %arg23[%c10_250, %c0_251] : memref<16x96xf32, #tpu.memory_space<vmem>>, vector<2x96xf32>
    %cst_252 = arith.constant dense<0.000000e+00> : vector<2x96xf32>
    %845 = tpu.matmul %811, %522, %cst_252 {dimension_numbers = #tpu.dot_dimension_numbers<[1], [0], [0], [1], [0, 0, 1, 1], [], []>} : vector<2x32xf32>, vector<32x96xf32>, vector<2x96xf32> -> vector<2x96xf32>
    %846 = vector.broadcast %523 : vector<1x96xf32> to vector<2x96xf32>
    %847 = arith.addf %845, %846 : vector<2x96xf32>
    %848 = vector.extract_strided_slice %844 {offsets = [0, 0], sizes = [2, 32], strides = [1, 1]} : vector<2x96xf32> to vector<2x32xf32>
    %849 = vector.extract_strided_slice %847 {offsets = [0, 0], sizes = [2, 32], strides = [1, 1]} : vector<2x96xf32> to vector<2x32xf32>
    %850 = arith.addf %848, %849 : vector<2x32xf32>
    %851 = arith.negf %850 : vector<2x32xf32>
    %852 = math.exp %851 : vector<2x32xf32>
    %cst_253 = arith.constant 1.000000e+00 : f32
    %853 = vector.broadcast %cst_253 : f32 to vector<2x32xf32>
    %854 = arith.addf %853, %852 : vector<2x32xf32>
    %855 = arith.divf %853, %854 : vector<2x32xf32>
    %856 = vector.extract_strided_slice %844 {offsets = [0, 32], sizes = [2, 32], strides = [1, 1]} : vector<2x96xf32> to vector<2x32xf32>
    %857 = vector.extract_strided_slice %847 {offsets = [0, 32], sizes = [2, 32], strides = [1, 1]} : vector<2x96xf32> to vector<2x32xf32>
    %858 = arith.addf %856, %857 : vector<2x32xf32>
    %859 = arith.negf %858 : vector<2x32xf32>
    %860 = math.exp %859 : vector<2x32xf32>
    %cst_254 = arith.constant 1.000000e+00 : f32
    %861 = vector.broadcast %cst_254 : f32 to vector<2x32xf32>
    %862 = arith.addf %861, %860 : vector<2x32xf32>
    %863 = arith.divf %861, %862 : vector<2x32xf32>
    %864 = vector.extract_strided_slice %844 {offsets = [0, 64], sizes = [2, 32], strides = [1, 1]} : vector<2x96xf32> to vector<2x32xf32>
    %865 = vector.extract_strided_slice %847 {offsets = [0, 64], sizes = [2, 32], strides = [1, 1]} : vector<2x96xf32> to vector<2x32xf32>
    %866 = arith.mulf %855, %865 : vector<2x32xf32>
    %867 = arith.addf %864, %866 : vector<2x32xf32>
    %868 = math.tanh %867 : vector<2x32xf32>
    %cst_255 = arith.constant 1.000000e+00 : f32
    %869 = vector.broadcast %cst_255 : f32 to vector<2x32xf32>
    %870 = arith.subf %869, %863 : vector<2x32xf32>
    %871 = arith.mulf %870, %868 : vector<2x32xf32>
    %872 = arith.mulf %863, %811 : vector<2x32xf32>
    %873 = arith.addf %871, %872 : vector<2x32xf32>
    %c10_256 = arith.constant 10 : index
    %c0_257 = arith.constant 0 : index
    %874 = vector.load %arg21[%c10_256, %c0_257] : memref<16x64xf32, #tpu.memory_space<vmem>>, vector<2x32xf32>
    tpu.vector_store %arg21[%c10_256, %c0_257], %873 {strides = array<i32>} : memref<16x64xf32, #tpu.memory_space<vmem>>, vector<2x32xf32>,
    %c4_258 = arith.constant 4 : index
    %c0_259 = arith.constant 0 : index
    %875 = vector.load %arg24[%c4_258, %c0_259] : memref<16x96xf32, #tpu.memory_space<vmem>>, vector<2x96xf32>
    %cst_260 = arith.constant dense<0.000000e+00> : vector<2x96xf32>
    %876 = tpu.matmul %842, %530, %cst_260 {dimension_numbers = #tpu.dot_dimension_numbers<[1], [0], [0], [1], [0, 0, 1, 1], [], []>} : vector<2x32xf32>, vector<32x96xf32>, vector<2x96xf32> -> vector<2x96xf32>
    %877 = vector.broadcast %531 : vector<1x96xf32> to vector<2x96xf32>
    %878 = arith.addf %876, %877 : vector<2x96xf32>
    %879 = vector.extract_strided_slice %875 {offsets = [0, 0], sizes = [2, 32], strides = [1, 1]} : vector<2x96xf32> to vector<2x32xf32>
    %880 = vector.extract_strided_slice %878 {offsets = [0, 0], sizes = [2, 32], strides = [1, 1]} : vector<2x96xf32> to vector<2x32xf32>
    %881 = arith.addf %879, %880 : vector<2x32xf32>
    %882 = arith.negf %881 : vector<2x32xf32>
    %883 = math.exp %882 : vector<2x32xf32>
    %cst_261 = arith.constant 1.000000e+00 : f32
    %884 = vector.broadcast %cst_261 : f32 to vector<2x32xf32>
    %885 = arith.addf %884, %883 : vector<2x32xf32>
    %886 = arith.divf %884, %885 : vector<2x32xf32>
    %887 = vector.extract_strided_slice %875 {offsets = [0, 32], sizes = [2, 32], strides = [1, 1]} : vector<2x96xf32> to vector<2x32xf32>
    %888 = vector.extract_strided_slice %878 {offsets = [0, 32], sizes = [2, 32], strides = [1, 1]} : vector<2x96xf32> to vector<2x32xf32>
    %889 = arith.addf %887, %888 : vector<2x32xf32>
    %890 = arith.negf %889 : vector<2x32xf32>
    %891 = math.exp %890 : vector<2x32xf32>
    %cst_262 = arith.constant 1.000000e+00 : f32
    %892 = vector.broadcast %cst_262 : f32 to vector<2x32xf32>
    %893 = arith.addf %892, %891 : vector<2x32xf32>
    %894 = arith.divf %892, %893 : vector<2x32xf32>
    %895 = vector.extract_strided_slice %875 {offsets = [0, 64], sizes = [2, 32], strides = [1, 1]} : vector<2x96xf32> to vector<2x32xf32>
    %896 = vector.extract_strided_slice %878 {offsets = [0, 64], sizes = [2, 32], strides = [1, 1]} : vector<2x96xf32> to vector<2x32xf32>
    %897 = arith.mulf %886, %896 : vector<2x32xf32>
    %898 = arith.addf %895, %897 : vector<2x32xf32>
    %899 = math.tanh %898 : vector<2x32xf32>
    %cst_263 = arith.constant 1.000000e+00 : f32
    %900 = vector.broadcast %cst_263 : f32 to vector<2x32xf32>
    %901 = arith.subf %900, %894 : vector<2x32xf32>
    %902 = arith.mulf %901, %899 : vector<2x32xf32>
    %903 = arith.mulf %894, %842 : vector<2x32xf32>
    %904 = arith.addf %902, %903 : vector<2x32xf32>
    %c4_264 = arith.constant 4 : index
    %c32_265 = arith.constant 32 : index
    %905 = vector.load %arg21[%c4_264, %c32_265] : memref<16x64xf32, #tpu.memory_space<vmem>>, vector<2x32xf32>
    tpu.vector_store %arg21[%c4_264, %c32_265], %904 {strides = array<i32>} : memref<16x64xf32, #tpu.memory_space<vmem>>, vector<2x32xf32>,
    %c12_266 = arith.constant 12 : index
    %c0_267 = arith.constant 0 : index
    %906 = vector.load %arg23[%c12_266, %c0_267] : memref<16x96xf32, #tpu.memory_space<vmem>>, vector<2x96xf32>
    %cst_268 = arith.constant dense<0.000000e+00> : vector<2x96xf32>
    %907 = tpu.matmul %873, %522, %cst_268 {dimension_numbers = #tpu.dot_dimension_numbers<[1], [0], [0], [1], [0, 0, 1, 1], [], []>} : vector<2x32xf32>, vector<32x96xf32>, vector<2x96xf32> -> vector<2x96xf32>
    %908 = vector.broadcast %523 : vector<1x96xf32> to vector<2x96xf32>
    %909 = arith.addf %907, %908 : vector<2x96xf32>
    %910 = vector.extract_strided_slice %906 {offsets = [0, 0], sizes = [2, 32], strides = [1, 1]} : vector<2x96xf32> to vector<2x32xf32>
    %911 = vector.extract_strided_slice %909 {offsets = [0, 0], sizes = [2, 32], strides = [1, 1]} : vector<2x96xf32> to vector<2x32xf32>
    %912 = arith.addf %910, %911 : vector<2x32xf32>
    %913 = arith.negf %912 : vector<2x32xf32>
    %914 = math.exp %913 : vector<2x32xf32>
    %cst_269 = arith.constant 1.000000e+00 : f32
    %915 = vector.broadcast %cst_269 : f32 to vector<2x32xf32>
    %916 = arith.addf %915, %914 : vector<2x32xf32>
    %917 = arith.divf %915, %916 : vector<2x32xf32>
    %918 = vector.extract_strided_slice %906 {offsets = [0, 32], sizes = [2, 32], strides = [1, 1]} : vector<2x96xf32> to vector<2x32xf32>
    %919 = vector.extract_strided_slice %909 {offsets = [0, 32], sizes = [2, 32], strides = [1, 1]} : vector<2x96xf32> to vector<2x32xf32>
    %920 = arith.addf %918, %919 : vector<2x32xf32>
    %921 = arith.negf %920 : vector<2x32xf32>
    %922 = math.exp %921 : vector<2x32xf32>
    %cst_270 = arith.constant 1.000000e+00 : f32
    %923 = vector.broadcast %cst_270 : f32 to vector<2x32xf32>
    %924 = arith.addf %923, %922 : vector<2x32xf32>
    %925 = arith.divf %923, %924 : vector<2x32xf32>
    %926 = vector.extract_strided_slice %906 {offsets = [0, 64], sizes = [2, 32], strides = [1, 1]} : vector<2x96xf32> to vector<2x32xf32>
    %927 = vector.extract_strided_slice %909 {offsets = [0, 64], sizes = [2, 32], strides = [1, 1]} : vector<2x96xf32> to vector<2x32xf32>
    %928 = arith.mulf %917, %927 : vector<2x32xf32>
    %929 = arith.addf %926, %928 : vector<2x32xf32>
    %930 = math.tanh %929 : vector<2x32xf32>
    %cst_271 = arith.constant 1.000000e+00 : f32
    %931 = vector.broadcast %cst_271 : f32 to vector<2x32xf32>
    %932 = arith.subf %931, %925 : vector<2x32xf32>
    %933 = arith.mulf %932, %930 : vector<2x32xf32>
    %934 = arith.mulf %925, %873 : vector<2x32xf32>
    %935 = arith.addf %933, %934 : vector<2x32xf32>
    %c12_272 = arith.constant 12 : index
    %c0_273 = arith.constant 0 : index
    %936 = vector.load %arg21[%c12_272, %c0_273] : memref<16x64xf32, #tpu.memory_space<vmem>>, vector<2x32xf32>
    tpu.vector_store %arg21[%c12_272, %c0_273], %935 {strides = array<i32>} : memref<16x64xf32, #tpu.memory_space<vmem>>, vector<2x32xf32>,
    %c2_274 = arith.constant 2 : index
    %c0_275 = arith.constant 0 : index
    %937 = vector.load %arg24[%c2_274, %c0_275] : memref<16x96xf32, #tpu.memory_space<vmem>>, vector<2x96xf32>
    %cst_276 = arith.constant dense<0.000000e+00> : vector<2x96xf32>
    %938 = tpu.matmul %904, %530, %cst_276 {dimension_numbers = #tpu.dot_dimension_numbers<[1], [0], [0], [1], [0, 0, 1, 1], [], []>} : vector<2x32xf32>, vector<32x96xf32>, vector<2x96xf32> -> vector<2x96xf32>
    %939 = vector.broadcast %531 : vector<1x96xf32> to vector<2x96xf32>
    %940 = arith.addf %938, %939 : vector<2x96xf32>
    %941 = vector.extract_strided_slice %937 {offsets = [0, 0], sizes = [2, 32], strides = [1, 1]} : vector<2x96xf32> to vector<2x32xf32>
    %942 = vector.extract_strided_slice %940 {offsets = [0, 0], sizes = [2, 32], strides = [1, 1]} : vector<2x96xf32> to vector<2x32xf32>
    %943 = arith.addf %941, %942 : vector<2x32xf32>
    %944 = arith.negf %943 : vector<2x32xf32>
    %945 = math.exp %944 : vector<2x32xf32>
    %cst_277 = arith.constant 1.000000e+00 : f32
    %946 = vector.broadcast %cst_277 : f32 to vector<2x32xf32>
    %947 = arith.addf %946, %945 : vector<2x32xf32>
    %948 = arith.divf %946, %947 : vector<2x32xf32>
    %949 = vector.extract_strided_slice %937 {offsets = [0, 32], sizes = [2, 32], strides = [1, 1]} : vector<2x96xf32> to vector<2x32xf32>
    %950 = vector.extract_strided_slice %940 {offsets = [0, 32], sizes = [2, 32], strides = [1, 1]} : vector<2x96xf32> to vector<2x32xf32>
    %951 = arith.addf %949, %950 : vector<2x32xf32>
    %952 = arith.negf %951 : vector<2x32xf32>
    %953 = math.exp %952 : vector<2x32xf32>
    %cst_278 = arith.constant 1.000000e+00 : f32
    %954 = vector.broadcast %cst_278 : f32 to vector<2x32xf32>
    %955 = arith.addf %954, %953 : vector<2x32xf32>
    %956 = arith.divf %954, %955 : vector<2x32xf32>
    %957 = vector.extract_strided_slice %937 {offsets = [0, 64], sizes = [2, 32], strides = [1, 1]} : vector<2x96xf32> to vector<2x32xf32>
    %958 = vector.extract_strided_slice %940 {offsets = [0, 64], sizes = [2, 32], strides = [1, 1]} : vector<2x96xf32> to vector<2x32xf32>
    %959 = arith.mulf %948, %958 : vector<2x32xf32>
    %960 = arith.addf %957, %959 : vector<2x32xf32>
    %961 = math.tanh %960 : vector<2x32xf32>
    %cst_279 = arith.constant 1.000000e+00 : f32
    %962 = vector.broadcast %cst_279 : f32 to vector<2x32xf32>
    %963 = arith.subf %962, %956 : vector<2x32xf32>
    %964 = arith.mulf %963, %961 : vector<2x32xf32>
    %965 = arith.mulf %956, %904 : vector<2x32xf32>
    %966 = arith.addf %964, %965 : vector<2x32xf32>
    %c2_280 = arith.constant 2 : index
    %c32_281 = arith.constant 32 : index
    %967 = vector.load %arg21[%c2_280, %c32_281] : memref<16x64xf32, #tpu.memory_space<vmem>>, vector<2x32xf32>
    tpu.vector_store %arg21[%c2_280, %c32_281], %966 {strides = array<i32>} : memref<16x64xf32, #tpu.memory_space<vmem>>, vector<2x32xf32>,
    %c14_282 = arith.constant 14 : index
    %c0_283 = arith.constant 0 : index
    %968 = vector.load %arg23[%c14_282, %c0_283] : memref<16x96xf32, #tpu.memory_space<vmem>>, vector<2x96xf32>
    %cst_284 = arith.constant dense<0.000000e+00> : vector<2x96xf32>
    %969 = tpu.matmul %935, %522, %cst_284 {dimension_numbers = #tpu.dot_dimension_numbers<[1], [0], [0], [1], [0, 0, 1, 1], [], []>} : vector<2x32xf32>, vector<32x96xf32>, vector<2x96xf32> -> vector<2x96xf32>
    %970 = vector.broadcast %523 : vector<1x96xf32> to vector<2x96xf32>
    %971 = arith.addf %969, %970 : vector<2x96xf32>
    %972 = vector.extract_strided_slice %968 {offsets = [0, 0], sizes = [2, 32], strides = [1, 1]} : vector<2x96xf32> to vector<2x32xf32>
    %973 = vector.extract_strided_slice %971 {offsets = [0, 0], sizes = [2, 32], strides = [1, 1]} : vector<2x96xf32> to vector<2x32xf32>
    %974 = arith.addf %972, %973 : vector<2x32xf32>
    %975 = arith.negf %974 : vector<2x32xf32>
    %976 = math.exp %975 : vector<2x32xf32>
    %cst_285 = arith.constant 1.000000e+00 : f32
    %977 = vector.broadcast %cst_285 : f32 to vector<2x32xf32>
    %978 = arith.addf %977, %976 : vector<2x32xf32>
    %979 = arith.divf %977, %978 : vector<2x32xf32>
    %980 = vector.extract_strided_slice %968 {offsets = [0, 32], sizes = [2, 32], strides = [1, 1]} : vector<2x96xf32> to vector<2x32xf32>
    %981 = vector.extract_strided_slice %971 {offsets = [0, 32], sizes = [2, 32], strides = [1, 1]} : vector<2x96xf32> to vector<2x32xf32>
    %982 = arith.addf %980, %981 : vector<2x32xf32>
    %983 = arith.negf %982 : vector<2x32xf32>
    %984 = math.exp %983 : vector<2x32xf32>
    %cst_286 = arith.constant 1.000000e+00 : f32
    %985 = vector.broadcast %cst_286 : f32 to vector<2x32xf32>
    %986 = arith.addf %985, %984 : vector<2x32xf32>
    %987 = arith.divf %985, %986 : vector<2x32xf32>
    %988 = vector.extract_strided_slice %968 {offsets = [0, 64], sizes = [2, 32], strides = [1, 1]} : vector<2x96xf32> to vector<2x32xf32>
    %989 = vector.extract_strided_slice %971 {offsets = [0, 64], sizes = [2, 32], strides = [1, 1]} : vector<2x96xf32> to vector<2x32xf32>
    %990 = arith.mulf %979, %989 : vector<2x32xf32>
    %991 = arith.addf %988, %990 : vector<2x32xf32>
    %992 = math.tanh %991 : vector<2x32xf32>
    %cst_287 = arith.constant 1.000000e+00 : f32
    %993 = vector.broadcast %cst_287 : f32 to vector<2x32xf32>
    %994 = arith.subf %993, %987 : vector<2x32xf32>
    %995 = arith.mulf %994, %992 : vector<2x32xf32>
    %996 = arith.mulf %987, %935 : vector<2x32xf32>
    %997 = arith.addf %995, %996 : vector<2x32xf32>
    %c14_288 = arith.constant 14 : index
    %c0_289 = arith.constant 0 : index
    %998 = vector.load %arg21[%c14_288, %c0_289] : memref<16x64xf32, #tpu.memory_space<vmem>>, vector<2x32xf32>
    tpu.vector_store %arg21[%c14_288, %c0_289], %997 {strides = array<i32>} : memref<16x64xf32, #tpu.memory_space<vmem>>, vector<2x32xf32>,
    %c0_290 = arith.constant 0 : index
    %c0_291 = arith.constant 0 : index
    %999 = vector.load %arg24[%c0_290, %c0_291] : memref<16x96xf32, #tpu.memory_space<vmem>>, vector<2x96xf32>
    %cst_292 = arith.constant dense<0.000000e+00> : vector<2x96xf32>
    %1000 = tpu.matmul %966, %530, %cst_292 {dimension_numbers = #tpu.dot_dimension_numbers<[1], [0], [0], [1], [0, 0, 1, 1], [], []>} : vector<2x32xf32>, vector<32x96xf32>, vector<2x96xf32> -> vector<2x96xf32>
    %1001 = vector.broadcast %531 : vector<1x96xf32> to vector<2x96xf32>
    %1002 = arith.addf %1000, %1001 : vector<2x96xf32>
    %1003 = vector.extract_strided_slice %999 {offsets = [0, 0], sizes = [2, 32], strides = [1, 1]} : vector<2x96xf32> to vector<2x32xf32>
    %1004 = vector.extract_strided_slice %1002 {offsets = [0, 0], sizes = [2, 32], strides = [1, 1]} : vector<2x96xf32> to vector<2x32xf32>
    %1005 = arith.addf %1003, %1004 : vector<2x32xf32>
    %1006 = arith.negf %1005 : vector<2x32xf32>
    %1007 = math.exp %1006 : vector<2x32xf32>
    %cst_293 = arith.constant 1.000000e+00 : f32
    %1008 = vector.broadcast %cst_293 : f32 to vector<2x32xf32>
    %1009 = arith.addf %1008, %1007 : vector<2x32xf32>
    %1010 = arith.divf %1008, %1009 : vector<2x32xf32>
    %1011 = vector.extract_strided_slice %999 {offsets = [0, 32], sizes = [2, 32], strides = [1, 1]} : vector<2x96xf32> to vector<2x32xf32>
    %1012 = vector.extract_strided_slice %1002 {offsets = [0, 32], sizes = [2, 32], strides = [1, 1]} : vector<2x96xf32> to vector<2x32xf32>
    %1013 = arith.addf %1011, %1012 : vector<2x32xf32>
    %1014 = arith.negf %1013 : vector<2x32xf32>
    %1015 = math.exp %1014 : vector<2x32xf32>
    %cst_294 = arith.constant 1.000000e+00 : f32
    %1016 = vector.broadcast %cst_294 : f32 to vector<2x32xf32>
    %1017 = arith.addf %1016, %1015 : vector<2x32xf32>
    %1018 = arith.divf %1016, %1017 : vector<2x32xf32>
    %1019 = vector.extract_strided_slice %999 {offsets = [0, 64], sizes = [2, 32], strides = [1, 1]} : vector<2x96xf32> to vector<2x32xf32>
    %1020 = vector.extract_strided_slice %1002 {offsets = [0, 64], sizes = [2, 32], strides = [1, 1]} : vector<2x96xf32> to vector<2x32xf32>
    %1021 = arith.mulf %1010, %1020 : vector<2x32xf32>
    %1022 = arith.addf %1019, %1021 : vector<2x32xf32>
    %1023 = math.tanh %1022 : vector<2x32xf32>
    %cst_295 = arith.constant 1.000000e+00 : f32
    %1024 = vector.broadcast %cst_295 : f32 to vector<2x32xf32>
    %1025 = arith.subf %1024, %1018 : vector<2x32xf32>
    %1026 = arith.mulf %1025, %1023 : vector<2x32xf32>
    %1027 = arith.mulf %1018, %966 : vector<2x32xf32>
    %1028 = arith.addf %1026, %1027 : vector<2x32xf32>
    %c0_296 = arith.constant 0 : index
    %c32_297 = arith.constant 32 : index
    %1029 = vector.load %arg21[%c0_296, %c32_297] : memref<16x64xf32, #tpu.memory_space<vmem>>, vector<2x32xf32>
    tpu.vector_store %arg21[%c0_296, %c32_297], %1028 {strides = array<i32>} : memref<16x64xf32, #tpu.memory_space<vmem>>, vector<2x32xf32>,
    %c0_298 = arith.constant 0 : index
    %c0_299 = arith.constant 0 : index
    %1030 = vector.load %arg21[%c0_298, %c0_299] : memref<16x64xf32, #tpu.memory_space<vmem>>, vector<16x64xf32>
    %c0_300 = arith.constant 0 : index
    %c0_301 = arith.constant 0 : index
    %1031 = vector.load %arg17[%c0_300, %c0_301] : memref<64x1xf32, #tpu.memory_space<vmem>>, vector<64x1xf32>
    %cst_302 = arith.constant dense<0.000000e+00> : vector<16x1xf32>
    %1032 = tpu.matmul %1030, %1031, %cst_302 {dimension_numbers = #tpu.dot_dimension_numbers<[1], [0], [0], [1], [0, 0, 1, 1], [], []>} : vector<16x64xf32>, vector<64x1xf32>, vector<16x1xf32> -> vector<16x1xf32>
    %c0_303 = arith.constant 0 : index
    %c0_304 = arith.constant 0 : index
    %1033 = vector.load %arg22[%c0_303, %c0_304] : memref<16x1xf32, #tpu.memory_space<vmem>>, vector<16x1xf32>
    tpu.vector_store %arg22[%c0_303, %c0_304], %1032 {strides = array<i32>} : memref<16x1xf32, #tpu.memory_space<vmem>>, vector<16x1xf32>,
    %c0_305 = arith.constant 0 : index
    %c0_306 = arith.constant 0 : index
    %1034 = vector.load %arg22[%c0_305, %c0_306] : memref<16x1xf32, #tpu.memory_space<vmem>>, vector<2x1xf32>
    %c2_307 = arith.constant 2 : index
    %c0_308 = arith.constant 0 : index
    %1035 = vector.load %arg22[%c2_307, %c0_308] : memref<16x1xf32, #tpu.memory_space<vmem>>, vector<2x1xf32>
    %c4_309 = arith.constant 4 : index
    %c0_310 = arith.constant 0 : index
    %1036 = vector.load %arg22[%c4_309, %c0_310] : memref<16x1xf32, #tpu.memory_space<vmem>>, vector<2x1xf32>
    %c6_311 = arith.constant 6 : index
    %c0_312 = arith.constant 0 : index
    %1037 = vector.load %arg22[%c6_311, %c0_312] : memref<16x1xf32, #tpu.memory_space<vmem>>, vector<2x1xf32>
    %c8_313 = arith.constant 8 : index
    %c0_314 = arith.constant 0 : index
    %1038 = vector.load %arg22[%c8_313, %c0_314] : memref<16x1xf32, #tpu.memory_space<vmem>>, vector<2x1xf32>
    %c10_315 = arith.constant 10 : index
    %c0_316 = arith.constant 0 : index
    %1039 = vector.load %arg22[%c10_315, %c0_316] : memref<16x1xf32, #tpu.memory_space<vmem>>, vector<2x1xf32>
    %c12_317 = arith.constant 12 : index
    %c0_318 = arith.constant 0 : index
    %1040 = vector.load %arg22[%c12_317, %c0_318] : memref<16x1xf32, #tpu.memory_space<vmem>>, vector<2x1xf32>
    %c14_319 = arith.constant 14 : index
    %c0_320 = arith.constant 0 : index
    %1041 = vector.load %arg22[%c14_319, %c0_320] : memref<16x1xf32, #tpu.memory_space<vmem>>, vector<2x1xf32>
    %1042 = arith.maximumf %1034, %1035 : vector<2x1xf32>
    %1043 = arith.maximumf %1042, %1036 : vector<2x1xf32>
    %1044 = arith.maximumf %1043, %1037 : vector<2x1xf32>
    %1045 = arith.maximumf %1044, %1038 : vector<2x1xf32>
    %1046 = arith.maximumf %1045, %1039 : vector<2x1xf32>
    %1047 = arith.maximumf %1046, %1040 : vector<2x1xf32>
    %1048 = arith.maximumf %1047, %1041 : vector<2x1xf32>
    %1049 = arith.subf %1034, %1048 : vector<2x1xf32>
    %1050 = math.exp %1049 : vector<2x1xf32>
    %1051 = arith.subf %1035, %1048 : vector<2x1xf32>
    %1052 = math.exp %1051 : vector<2x1xf32>
    %1053 = arith.subf %1036, %1048 : vector<2x1xf32>
    %1054 = math.exp %1053 : vector<2x1xf32>
    %1055 = arith.subf %1037, %1048 : vector<2x1xf32>
    %1056 = math.exp %1055 : vector<2x1xf32>
    %1057 = arith.subf %1038, %1048 : vector<2x1xf32>
    %1058 = math.exp %1057 : vector<2x1xf32>
    %1059 = arith.subf %1039, %1048 : vector<2x1xf32>
    %1060 = math.exp %1059 : vector<2x1xf32>
    %1061 = arith.subf %1040, %1048 : vector<2x1xf32>
    %1062 = math.exp %1061 : vector<2x1xf32>
    %1063 = arith.subf %1041, %1048 : vector<2x1xf32>
    %1064 = math.exp %1063 : vector<2x1xf32>
    %1065 = arith.addf %1050, %1052 : vector<2x1xf32>
    %1066 = arith.addf %1065, %1054 : vector<2x1xf32>
    %1067 = arith.addf %1066, %1056 : vector<2x1xf32>
    %1068 = arith.addf %1067, %1058 : vector<2x1xf32>
    %1069 = arith.addf %1068, %1060 : vector<2x1xf32>
    %1070 = arith.addf %1069, %1062 : vector<2x1xf32>
    %1071 = arith.addf %1070, %1064 : vector<2x1xf32>
    %cst_321 = arith.constant 1.000000e+00 : f32
    %1072 = vector.broadcast %cst_321 : f32 to vector<2x1xf32>
    %1073 = arith.divf %1072, %1071 : vector<2x1xf32>
    %1074 = arith.mulf %1050, %1073 : vector<2x1xf32>
    %c0_322 = arith.constant 0 : index
    %c0_323 = arith.constant 0 : index
    %1075 = vector.load %arg21[%c0_322, %c0_323] : memref<16x64xf32, #tpu.memory_space<vmem>>, vector<2x64xf32>
    %1076 = vector.broadcast %1074 : vector<2x1xf32> to vector<2x64xf32>
    %1077 = arith.mulf %1076, %1075 : vector<2x64xf32>
    %1078 = arith.mulf %1052, %1073 : vector<2x1xf32>
    %c2_324 = arith.constant 2 : index
    %c0_325 = arith.constant 0 : index
    %1079 = vector.load %arg21[%c2_324, %c0_325] : memref<16x64xf32, #tpu.memory_space<vmem>>, vector<2x64xf32>
    %1080 = vector.broadcast %1078 : vector<2x1xf32> to vector<2x64xf32>
    %1081 = arith.mulf %1080, %1079 : vector<2x64xf32>
    %1082 = arith.addf %1077, %1081 : vector<2x64xf32>
    %1083 = arith.mulf %1054, %1073 : vector<2x1xf32>
    %c4_326 = arith.constant 4 : index
    %c0_327 = arith.constant 0 : index
    %1084 = vector.load %arg21[%c4_326, %c0_327] : memref<16x64xf32, #tpu.memory_space<vmem>>, vector<2x64xf32>
    %1085 = vector.broadcast %1083 : vector<2x1xf32> to vector<2x64xf32>
    %1086 = arith.mulf %1085, %1084 : vector<2x64xf32>
    %1087 = arith.addf %1082, %1086 : vector<2x64xf32>
    %1088 = arith.mulf %1056, %1073 : vector<2x1xf32>
    %c6_328 = arith.constant 6 : index
    %c0_329 = arith.constant 0 : index
    %1089 = vector.load %arg21[%c6_328, %c0_329] : memref<16x64xf32, #tpu.memory_space<vmem>>, vector<2x64xf32>
    %1090 = vector.broadcast %1088 : vector<2x1xf32> to vector<2x64xf32>
    %1091 = arith.mulf %1090, %1089 : vector<2x64xf32>
    %1092 = arith.addf %1087, %1091 : vector<2x64xf32>
    %1093 = arith.mulf %1058, %1073 : vector<2x1xf32>
    %c8_330 = arith.constant 8 : index
    %c0_331 = arith.constant 0 : index
    %1094 = vector.load %arg21[%c8_330, %c0_331] : memref<16x64xf32, #tpu.memory_space<vmem>>, vector<2x64xf32>
    %1095 = vector.broadcast %1093 : vector<2x1xf32> to vector<2x64xf32>
    %1096 = arith.mulf %1095, %1094 : vector<2x64xf32>
    %1097 = arith.addf %1092, %1096 : vector<2x64xf32>
    %1098 = arith.mulf %1060, %1073 : vector<2x1xf32>
    %c10_332 = arith.constant 10 : index
    %c0_333 = arith.constant 0 : index
    %1099 = vector.load %arg21[%c10_332, %c0_333] : memref<16x64xf32, #tpu.memory_space<vmem>>, vector<2x64xf32>
    %1100 = vector.broadcast %1098 : vector<2x1xf32> to vector<2x64xf32>
    %1101 = arith.mulf %1100, %1099 : vector<2x64xf32>
    %1102 = arith.addf %1097, %1101 : vector<2x64xf32>
    %1103 = arith.mulf %1062, %1073 : vector<2x1xf32>
    %c12_334 = arith.constant 12 : index
    %c0_335 = arith.constant 0 : index
    %1104 = vector.load %arg21[%c12_334, %c0_335] : memref<16x64xf32, #tpu.memory_space<vmem>>, vector<2x64xf32>
    %1105 = vector.broadcast %1103 : vector<2x1xf32> to vector<2x64xf32>
    %1106 = arith.mulf %1105, %1104 : vector<2x64xf32>
    %1107 = arith.addf %1102, %1106 : vector<2x64xf32>
    %1108 = arith.mulf %1064, %1073 : vector<2x1xf32>
    %c14_336 = arith.constant 14 : index
    %c0_337 = arith.constant 0 : index
    %1109 = vector.load %arg21[%c14_336, %c0_337] : memref<16x64xf32, #tpu.memory_space<vmem>>, vector<2x64xf32>
    %1110 = vector.broadcast %1108 : vector<2x1xf32> to vector<2x64xf32>
    %1111 = arith.mulf %1110, %1109 : vector<2x64xf32>
    %1112 = arith.addf %1107, %1111 : vector<2x64xf32>
    %c0_338 = arith.constant 0 : index
    %c0_339 = arith.constant 0 : index
    %1113 = vector.load %arg18[%c0_338, %c0_339] : memref<64x5xf32, #tpu.memory_space<vmem>>, vector<64x5xf32>
    %cst_340 = arith.constant dense<0.000000e+00> : vector<2x5xf32>
    %1114 = tpu.matmul %1112, %1113, %cst_340 {dimension_numbers = #tpu.dot_dimension_numbers<[1], [0], [0], [1], [0, 0, 1, 1], [], []>} : vector<2x64xf32>, vector<64x5xf32>, vector<2x5xf32> -> vector<2x5xf32>
    %c0_341 = arith.constant 0 : index
    %c0_342 = arith.constant 0 : index
    %1115 = vector.load %arg19[%c0_341, %c0_342] : memref<1x5xf32, #tpu.memory_space<vmem>>, vector<1x5xf32>
    %1116 = vector.broadcast %1115 : vector<1x5xf32> to vector<2x5xf32>
    %1117 = arith.addf %1114, %1116 : vector<2x5xf32>
    %c0_343 = arith.constant 0 : index
    %c0_344 = arith.constant 0 : index
    %1118 = vector.load %arg20[%c0_343, %c0_344] : memref<2x5xf32, #tpu.memory_space<vmem>>, vector<2x5xf32>
    tpu.vector_store %arg20[%c0_343, %c0_344], %1117 {strides = array<i32>} : memref<2x5xf32, #tpu.memory_space<vmem>>, vector<2x5xf32>,
    return
  }
}

</mosaic_0001>

<bundles_post_ra>
// kernel: tpu_custom_call.1
= control target key start
LH: loop header
LB: loop body
LE: loop exit
PB: predicated region body
PF: predicated region fallthrough
CT: control target
= control target key end

     0   :  { %s6655_s0 = inlined_call_operand.vmem [shape: f32[16,3], index: 0, kind: input, shape index: {}]   ;;  %s6656_s1 = inlined_call_operand.hbm [shape: f32[3,96], index: 1, kind: input, shape index: {}]   ;;  %s6657_s2 = inlined_call_operand.vmem [shape: f32[32,96], index: 2, kind: input, shape index: {}]   ;;  %s6658_s3 = inlined_call_operand.vmem [shape: f32[1,96], index: 3, kind: input, shape index: {}]   ;;  %s6659_s4 = inlined_call_operand.hbm [shape: f32[1,96], index: 4, kind: input, shape index: {}]   ;;  %s6660_s5 = inlined_call_operand.hbm [shape: f32[3,96], index: 5, kind: input, shape index: {}]   ;;  %s6661_s6 = inlined_call_operand.hbm [shape: f32[32,96], index: 6, kind: input, shape index: {}]   ;;  %s6662_s7 = inlined_call_operand.hbm [shape: f32[1,96], index: 7, kind: input, shape index: {}]   ;;  %s6663_s8 = inlined_call_operand.hbm [shape: f32[1,96], index: 8, kind: input, shape index: {}]   ;;  %s6664_s9 = inlined_call_operand.vmem [shape: f32[64,96], index: 9, kind: input, shape index: {}]   ;;  %s6665_s10 = inlined_call_operand.vmem [shape: f32[32,96], index: 10, kind: input, shape index: {}]   ;;  %s6666_s11 = inlined_call_operand.hbm [shape: f32[1,96], index: 11, kind: input, shape index: {}]   ;;  %s6667_s12 = inlined_call_operand.hbm [shape: f32[1,96], index: 12, kind: input, shape index: {}]   ;;  %s6668_s13 = inlined_call_operand.vmem [shape: f32[64,96], index: 13, kind: input, shape index: {}]   ;;  %s6669_s14 = inlined_call_operand.hbm [shape: f32[32,96], index: 14, kind: input, shape index: {}]   ;;  %s6670_s15 = inlined_call_operand.vmem [shape: f32[1,96], index: 15, kind: input, shape index: {}]   ;;  %s6671_s16 = inlined_call_operand.vmem [shape: f32[1,96], index: 16, kind: input, shape index: {}]   ;;  %s6672_s17 = inlined_call_operand.vmem [shape: f32[64,1], index: 17, kind: input, shape index: {}]   ;;  %s6673_s18 = inlined_call_operand.vmem [shape: f32[64,5], index: 18, kind: input, shape index: {}]   ;;  %s6674_s19 = inlined_call_operand.vmem [shape: f32[1,5], index: 19, kind: input, shape index: {}]   ;;  %s6675_s20 = inlined_call_operand.hbm [shape: f32[2,5], index: 20, kind: output, shape index: {}]  }
   0x1   :  { %6681 = sst [smem:[#allocation28_spill]] %s6655_s0 }
   0x2   :  { %6682 = sst [smem:[#allocation29_spill]] %s6656_s1 }
   0x3   :  { %6683 = sst [smem:[#allocation30_spill]] %s6657_s2 }
   0x4   :  { %6684 = sst [smem:[#allocation31_spill]] %s6658_s3 }
   0x5   :  { %6685 = sst [smem:[#allocation32_spill]] %s6659_s4 }
   0x6   :  { %6686 = sst [smem:[#allocation33_spill]] %s6675_s20 }
   0x7   :  { %25 = vsyncpa [#allocation7], 0 }
   0x8   :  { %26 = vsyncpa [#allocation10], 0 }
   0x9   :  { %27 = vsyncpa [#allocation13], 0 }
   0xa   :  { %28 = vsyncpa [#allocation16], 0 }
   0xb   :  { %29 = vsyncpa [#allocation19], 0 }
   0xc   :  { %30 = vsyncpa [#allocation8], 0  ;;  %s5663_s1 = smov [#allocation9]   ;;  %s5664_s23 = smov [#allocation12]  }
   0xd   :  { %s53_s22 = sshll.u32 %s5663_s1, 4  ;;  %s72_s24 = sshll.u32 %s5664_s23, 4  ;;  %s54_s22 = int_to_ptr.vmem [resolvable:$true] %s53_s22  ;;  %s5786_s24 = int_to_ptr.vmem [resolvable:$true] %s72_s24 }
   0xe   :  { %s6687_s3 = sld [smem:[#allocation32_spill]] }
  0x14   :  { %s5431_s26 = scalar_lea.hbm %s6687_s3, 16 }
  0x15   :  { %p5432_p0 = scmp.ne.s32.totalorder %s6687_s3, %s5431_s26  ;;  %p5435_p1 = scmp.lt.u32.totalorder %s5431_s26, %s6687_s3 }
  0x17   :  { %p5437_p2 = pnand %p5435_p1, %p5432_p0 }
  0x19   :  { %5440 = shalt.err (!%p5437_p2)
}
  0x1a   :  { %s5441_s30 = scalar_lea.vmem %s54_s22, 16  ;;  %s5445_s0 = scalar_lea.vmem %s54_s22, 32 }
  0x1b   :  { %p5442_p3 = scmp.ne.s32.totalorder %s54_s22, %s5441_s30  ;;  %p5446_p4 = scmp.lt.s32.totalorder %s54_s22, %s54_s22 }
  0x1c   :  { %p5447_p5 = scmp.lt.s32.totalorder %s5445_s0, %s5441_s30 }
  0x1e   :  { %p5448_p6 = por %p5447_p5, %p5446_p4 }
  0x20   :  { %p5449_p7 = pnand %p5448_p6, %p5442_p3 }
  0x22   :  { %5452 = shalt.err (!%p5449_p7)
}
  0x23   :  { %56 = dma.hbm_to_vmem [thread:$0]  %s6687_s3, 16, %s54_s22, [#allocation10]  }
  0x24   :  { %s5453_s25 = scalar_lea.hbm %s6661_s6, 512 }
  0x25   :  { %p5454_p8 = scmp.ne.s32.totalorder %s6661_s6, %s5453_s25  ;;  %p5457_p9 = scmp.lt.u32.totalorder %s5453_s25, %s6661_s6 }
  0x27   :  { %p5459_p10 = pnand %p5457_p9, %p5454_p8 }
  0x29   :  { %5462 = shalt.err (!%p5459_p10)
}
  0x2a   :  { %s5463_s29 = scalar_lea.vmem %s5786_s24, 512  ;;  %p5468_p12 = scmp.lt.s32.totalorder %s5786_s24, %s5786_s24 }
  0x2b   :  { %p5464_p11 = scmp.ne.s32.totalorder %s5786_s24, %s5463_s29  ;;  %p5469_p13 = scmp.lt.s32.totalorder %s5463_s29, %s5463_s29 }
  0x2d   :  { %p5470_p0 = por %p5469_p13, %p5468_p12 }
  0x2f   :  { %p5471_p1 = pnand %p5470_p0, %p5464_p11 }
  0x31   :  { %5474 = shalt.err (!%p5471_p1)
}
  0x32   :  { %s5665_s22 = smov 128   ;;  %s5666_s3 = smov 8  }
  0x33   :  { %78 = dma.hbm_to_vmem [thread:$0]  %s6661_s6, 512, %s5786_s24, [#allocation13], %s5665_s22, %s5665_s22, %s5666_s3  }
  0x34   :  { %s5667_s21 = smov [#allocation15]   ;;  %s5668_s23 = smov [#allocation18]  }
  0x35   :  { %s95_s1 = sshll.u32 %s5667_s21, 4  ;;  %s119_s2 = sshll.u32 %s5668_s23, 4  ;;  %s96_s1 = int_to_ptr.vmem [resolvable:$true] %s95_s1  ;;  %s120_s2 = int_to_ptr.vmem [resolvable:$true] %s119_s2 }
  0x36   :  { %s5475_s26 = scalar_lea.hbm %s6663_s8, 16 }
  0x37   :  { %p5476_p2 = scmp.ne.s32.totalorder %s6663_s8, %s5475_s26  ;;  %p5479_p3 = scmp.lt.u32.totalorder %s5475_s26, %s6663_s8 }
  0x39   :  { %p5481_p4 = pnand %p5479_p3, %p5476_p2 }
  0x3b   :  { %5484 = shalt.err (!%p5481_p4)
}
  0x3c   :  { %s5485_s6 = scalar_lea.vmem %s96_s1, 16  ;;  %s5489_s24 = scalar_lea.vmem %s96_s1, 32 }
  0x3d   :  { %p5486_p5 = scmp.ne.s32.totalorder %s96_s1, %s5485_s6  ;;  %p5490_p6 = scmp.lt.s32.totalorder %s96_s1, %s96_s1 }
  0x3e   :  { %p5491_p7 = scmp.lt.s32.totalorder %s5489_s24, %s5485_s6 }
  0x40   :  { %p5492_p8 = por %p5491_p7, %p5490_p6 }
  0x42   :  { %p5493_p9 = pnand %p5492_p8, %p5486_p5 }
  0x44   :  { %5496 = shalt.err (!%p5493_p9)
}
  0x45   :  { %98 = dma.hbm_to_vmem [thread:$0]  %s6663_s8, 16, %s96_s1, [#allocation16]  }
  0x46   :  { %s5497_s25 = scalar_lea.hbm %s6667_s12, 16 }
  0x47   :  { %p5498_p10 = scmp.ne.s32.totalorder %s6667_s12, %s5497_s25  ;;  %p5501_p11 = scmp.lt.u32.totalorder %s5497_s25, %s6667_s12 }
  0x49   :  { %p5503_p12 = pnand %p5501_p11, %p5498_p10 }
  0x4b   :  { %5506 = shalt.err (!%p5503_p12)
}
  0x4c   :  { %s5507_s4 = scalar_lea.vmem %s120_s2, 16  ;;  %s5511_s29 = scalar_lea.vmem %s120_s2, 32 }
  0x4d   :  { %p5508_p13 = scmp.ne.s32.totalorder %s120_s2, %s5507_s4  ;;  %p5512_p0 = scmp.lt.s32.totalorder %s120_s2, %s120_s2 }
  0x4e   :  { %p5513_p1 = scmp.lt.s32.totalorder %s5511_s29, %s5507_s4 }
  0x50   :  { %p5514_p2 = por %p5513_p1, %p5512_p0 }
  0x52   :  { %p5515_p3 = pnand %p5514_p2, %p5508_p13 }
  0x54   :  { %5518 = shalt.err (!%p5515_p3)
}
  0x55   :  { %122 = dma.hbm_to_vmem [thread:$0]  %s6667_s12, 16, %s120_s2, [#allocation19]  }
  0x56   :  { %s5669_s6 = smov [#allocation6]   ;;  %s5670_s30 = smov [#allocation11]  }
  0x57   :  { %s39_s24 = sshll.u32 %s5669_s6, 4  ;;  %s63_s0 = sshll.u32 %s5670_s30, 4  ;;  %s40_s24 = int_to_ptr.vmem [resolvable:$true] %s39_s24  ;;  %s64_s0 = int_to_ptr.vmem [resolvable:$true] %s63_s0 }
  0x58   :  { %s6688_s25 = sld [smem:[#allocation29_spill]] }
  0x5e   :  { %s5519_s20 = scalar_lea.hbm %s6688_s25, 64 }
  0x5f   :  { %p5520_p4 = scmp.ne.s32.totalorder %s6688_s25, %s5519_s20  ;;  %p5523_p5 = scmp.lt.u32.totalorder %s5519_s20, %s6688_s25 }
  0x61   :  { %p5525_p6 = pnand %p5523_p5, %p5520_p4 }
  0x63   :  { %5528 = shalt.err (!%p5525_p6)
}
  0x64   :  { %s5529_s12 = scalar_lea.vmem %s40_s24, 64  ;;  %p5534_p8 = scmp.lt.s32.totalorder %s40_s24, %s40_s24 }
  0x65   :  { %p5530_p7 = scmp.ne.s32.totalorder %s40_s24, %s5529_s12  ;;  %p5535_p9 = scmp.lt.s32.totalorder %s5529_s12, %s5529_s12 }
  0x67   :  { %p5536_p10 = por %p5535_p9, %p5534_p8 }
  0x69   :  { %p5537_p11 = pnand %p5536_p10, %p5530_p7 }
  0x6b   :  { %5540 = shalt.err (!%p5537_p11)
}
  0x6c   :  { %42 = dma.hbm_to_vmem [thread:$0]  %s6688_s25, 64, %s40_s24, [#allocation7]  }
  0x6d   :  { %s5541_s6 = scalar_lea.hbm %s6660_s5, 64 }
  0x6e   :  { %p5542_p12 = scmp.ne.s32.totalorder %s6660_s5, %s5541_s6  ;;  %p5545_p13 = scmp.lt.u32.totalorder %s5541_s6, %s6660_s5 }
  0x70   :  { %p5547_p0 = pnand %p5545_p13, %p5542_p12 }
  0x72   :  { %5550 = shalt.err (!%p5547_p0)
}
  0x73   :  { %s5551_s27 = scalar_lea.vmem %s64_s0, 64  ;;  %p5556_p2 = scmp.lt.s32.totalorder %s64_s0, %s64_s0 }
  0x74   :  { %p5552_p1 = scmp.ne.s32.totalorder %s64_s0, %s5551_s27  ;;  %p5557_p3 = scmp.lt.s32.totalorder %s5551_s27, %s5551_s27 }
  0x76   :  { %p5558_p4 = por %p5557_p3, %p5556_p2 }
  0x78   :  { %p5559_p5 = pnand %p5558_p4, %p5552_p1 }
  0x7a   :  { %5562 = shalt.err (!%p5559_p5)
}
  0x7b   :  { %66 = dma.hbm_to_vmem [thread:$0]  %s6660_s5, 64, %s64_s0, [#allocation10]  }
  0x7c   :  { %s5671_s26 = smov [#allocation14]   ;;  %s5672_s4 = smov [#allocation17]  }
  0x7d   :  { %s85_s28 = sshll.u32 %s5671_s26, 4  ;;  %s109_s12 = sshll.u32 %s5672_s4, 4  ;;  %s86_s28 = int_to_ptr.vmem [resolvable:$true] %s85_s28  ;;  %s110_s12 = int_to_ptr.vmem [resolvable:$true] %s109_s12 }
  0x7e   :  { %s5563_s8 = scalar_lea.hbm %s6662_s7, 16 }
  0x7f   :  { %p5564_p6 = scmp.ne.s32.totalorder %s6662_s7, %s5563_s8  ;;  %p5567_p7 = scmp.lt.u32.totalorder %s5563_s8, %s6662_s7 }
  0x81   :  { %p5569_p8 = pnand %p5567_p7, %p5564_p6 }
  0x83   :  { %5572 = shalt.err (!%p5569_p8)
}
  0x84   :  { %s5573_s5 = scalar_lea.vmem %s86_s28, 16  ;;  %s5577_s0 = scalar_lea.vmem %s86_s28, 32 }
  0x85   :  { %p5574_p9 = scmp.ne.s32.totalorder %s86_s28, %s5573_s5  ;;  %p5578_p10 = scmp.lt.s32.totalorder %s86_s28, %s86_s28 }
  0x86   :  { %p5579_p11 = scmp.lt.s32.totalorder %s5577_s0, %s5573_s5 }
  0x88   :  { %p5580_p12 = por %p5579_p11, %p5578_p10 }
  0x8a   :  { %p5581_p13 = pnand %p5580_p12, %p5574_p9 }
  0x8c   :  { %5584 = shalt.err (!%p5581_p13)
}
  0x8d   :  { %88 = dma.hbm_to_vmem [thread:$0]  %s6662_s7, 16, %s86_s28, [#allocation13]  }
  0x8e   :  { %s5585_s25 = scalar_lea.hbm %s6666_s11, 16 }
  0x8f   :  { %p5586_p0 = scmp.ne.s32.totalorder %s6666_s11, %s5585_s25  ;;  %p5589_p1 = scmp.lt.u32.totalorder %s5585_s25, %s6666_s11 }
  0x91   :  { %p5591_p2 = pnand %p5589_p1, %p5586_p0 }
  0x93   :  { %5594 = shalt.err (!%p5591_p2)
}
  0x94   :  { %s5595_s8 = scalar_lea.vmem %s110_s12, 16  ;;  %s5599_s1 = scalar_lea.vmem %s110_s12, 32 }
  0x95   :  { %p5596_p3 = scmp.ne.s32.totalorder %s110_s12, %s5595_s8  ;;  %p5600_p4 = scmp.lt.s32.totalorder %s110_s12, %s110_s12 }
  0x96   :  { %p5601_p5 = scmp.lt.s32.totalorder %s5599_s1, %s5595_s8 }
  0x98   :  { %p5602_p6 = por %p5601_p5, %p5600_p4 }
  0x9a   :  { %p5603_p7 = pnand %p5602_p6, %p5596_p3 }
  0x9c   :  { %5606 = shalt.err (!%p5603_p7)
}
  0x9d   :  { %112 = dma.hbm_to_vmem [thread:$0]  %s6666_s11, 16, %s110_s12, [#allocation16]  }
  0x9e   :  { %s5673_s6 = smov [#allocation20]   ;;  %s5607_s0 = scalar_lea.hbm %s6669_s14, 512 }
  0x9f   :  { %s130_s30 = sshll.u32 %s5673_s6, 4  ;;  %p5608_p8 = scmp.ne.s32.totalorder %s6669_s14, %s5607_s0  ;;  %s131_s30 = int_to_ptr.vmem [resolvable:$true] %s130_s30 }
  0xa0   :  { %p5611_p9 = scmp.lt.u32.totalorder %s5607_s0, %s6669_s14 }
  0xa2   :  { %p5613_p10 = pnand %p5611_p9, %p5608_p8 }
  0xa4   :  { %5616 = shalt.err (!%p5613_p10)
}
  0xa5   :  { %s5617_s25 = scalar_lea.vmem %s131_s30, 512  ;;  %p5622_p12 = scmp.lt.s32.totalorder %s131_s30, %s131_s30 }
  0xa6   :  { %p5618_p11 = scmp.ne.s32.totalorder %s131_s30, %s5617_s25  ;;  %p5623_p13 = scmp.lt.s32.totalorder %s5617_s25, %s5617_s25 }
  0xa8   :  { %p5624_p0 = por %p5623_p13, %p5622_p12 }
  0xaa   :  { %p5625_p1 = pnand %p5624_p0, %p5618_p11 }
  0xac   :  { %5628 = shalt.err (!%p5625_p1)
}
  0xad   :  { %136 = dma.hbm_to_vmem [thread:$0]  %s6669_s14, 512, %s131_s30, [#allocation19], %s5665_s22, %s5665_s22, %s5666_s3  }
  0xae   :  { %5651 = dma.done.wait [#allocation7], 64  }
  0xaf   :  { %5652 = vsyncadd [#allocation7], 4294967232 }
  0xb0   :  { %5653 = dma.done.wait [#allocation10], 80  }
  0xb1   :  { %5654 = vsyncadd [#allocation10], 4294967216 }
  0xb2   :  { %5655 = dma.done.wait [#allocation13], 528  }
  0xb3   :  { %5656 = vsyncadd [#allocation13], 4294966768 }
  0xb4   :  { %5657 = dma.done.wait [#allocation16], 32  }
  0xb5   :  { %5658 = vsyncadd [#allocation16], 4294967264 }
  0xb6   :  { %5659 = dma.done.wait [#allocation19], 528  }
  0xb7   :  { %5660 = vsyncadd [#allocation19], 4294966768  ;;  %vm191_vm0 = vcmask 1042432   ;;  %vm184_vm1 = vcmask 23552   ;;  %v176_v0 = vld [vmem:[#allocation6] sm:$0x7] }
  0xb8   :  { %s6689_s2 = sld [smem:[#allocation28_spill]]  ;;  %4511 = vmatprep.subr.msk.mxu0 %vm191_vm0, %v176_v0  ;;  %s6690_s3 = sld [smem:[#allocation30_spill]]  ;;  %v278_v5 = vld [vmem:[#allocation11] sm:$0x7]  ;;  %v366_v9 = vld [vmem:[#allocation12] sm:$0xff]  ;;  %v5674_v10 = vmov 0.0|0.0  }
  0xb9   :  { %4512 = vmatpush3.msk.msra.mxu0 %vm191_vm0, %v176_v0  ;;  %4516 = vmatprep.subr.msk.mxu1 %vm191_vm0, %v278_v5  ;;  %v367_v11 = vld [vmem:[#allocation12 + $0x8] sm:$0xff]  ;;  %v368_v14 = vld [vmem:[#allocation12 + $0x10] sm:$0xff]  ;;  %v369_v15 = vld [vmem:[#allocation12 + $0x18] sm:$0xff]  ;;  %vm5675_vm2 = vmmov 0   ;;  %v5676_v16 = vmov 0.0   ;;  %s6691_s23 = sld [smem:[#allocation31_spill]] }
  0xba   :  { %4949 = vmatprep.subr.bf16.mxu0 %v5674_v10  ;;  %4517 = vmatpush3.msk.msra.mxu1 %vm191_vm0, %v278_v5  ;;  %v5937_v13 = vpack.c.bf16 %v367_v11, %v366_v9  ;;  %v5946_v17 = vpack.c.bf16 %v369_v15, %v368_v14  ;;  %vm270_vm3 = vcmask 785408   ;;  %v4228_v22 = vld [vmem:[#allocation14] ss:$0 sm:$0xff]  ;;  %v5974_v28 = vld [vmem:[#allocation9] ss:$0 sm:$0xff]  ;;  %s5677_s20 = smov 64  }
  0xbb   :  { %4955 = vmatprep.subr.bf16.mxu1 %v5674_v10  ;;  %v5979_v32 = vld [vmem:[#allocation15] ss:$0 sm:$0xff]  ;;  %s5678_s27 = smov 96   ;;  %vm587_vm4 = vcmask 517376   ;;  %vm482_vm5 = vcmask 254976   ;;  %vm378_vm6 = vcmask 261120  }
  0xbc   :  { %vm2055_vm7 = vcmask 523264   ;;  %vm3993_vm8 = vcmask 7168   ;;  %s5680_s25 = smov [#allocation21]   ;;  %vm4203_vm9 = vcmask 33792  }
  0xbd   :  { %s4211_s11 = sshll.u32 %s5680_s25, 4  ;;  %s4212_s11 = int_to_ptr.vmem [resolvable:$true] %s4211_s11 }
  0xbe   :  { %v174_v1 = vld [vmem:[%s6689_s2] sm:$0xff]  ;;  %v175_v2 = vld [vmem:[%s6689_s2 + $0x8] sm:$0xff]  ;;  %v275_v7 = vld [vmem:[%s6690_s3 + $0x10] sm:$0xff]  ;;  %p5634_p3 = scmp.lt.s32.totalorder %s4212_s11, %s4212_s11 }
  0xbf   :  { %4513 = vmatprep.mubr.msk.f32.mxu0 %vm184_vm1, %v174_v1  ;;  %v273_v3 = vld [vmem:[%s6690_s3] sm:$0xff]  ;;  %v274_v4 = vld [vmem:[%s6690_s3 + $0x8] sm:$0xff]  ;;  %v276_v8 = vld [vmem:[%s6690_s3 + $0x18] sm:$0xff]  ;;  %4518 = vmatprep.mubr.msk.f32.mxu1 %vm184_vm1, %v174_v1 }
  0xc0   :  { %v5922_v6 = vpack.c.bf16 %v274_v4, %v273_v3  ;;  %4514 = vmatmul.mubr.msk.f32.vlgmr.msra.gmra.mrb[0].mxu0 %vm184_vm1, %v175_v2  ;;  %v5935_v12 = vpack.c.bf16 %v276_v8, %v275_v7  ;;  %4519 = vmatmul.mubr.msk.f32.vlgmr.msra.gmra.mrb[0].mxu1 %vm184_vm1, %v175_v2  ;;  %v4224_v18 = vld [vmem:[%s6691_s23] ss:$0 sm:$0xff] }
  0xc1   :  { %4957 = vmatpush3.bf16.msra.mxu1 %v5937_v13  ;;  %4529 = vmatprep.mubr.msk.f32.mxu0 %vm5675_vm2, %v5676_v16 }
  0xc2   :  { %4951 = vmatpush3.bf16.msra.mxu0 %v5922_v6  ;;  %4958 = vmatprep.subr.bf16.mxu1 %v5674_v10 }
  0xc3   :  { %4952 = vmatprep.subr.bf16.mxu0 %v5674_v10  ;;  %4540 = vmatprep.mubr.msk.f32.mxu1 %vm5675_vm2, %v5676_v16 }
  0xc5   :  { %4960 = vmatpush3.bf16.msra.mxu1 %v5946_v17 }
  0xc6   :  { %4954 = vmatpush3.bf16.msra.mxu0 %v5935_v12  ;;  %4967 = vmatprep.subr.bf16.mxu1 %v5674_v10 }
  0xc7   :  { %4961 = vmatprep.subr.bf16.mxu0 %v5674_v10 }
  0xc8   :  { %4541 = vmatmul.mubr.f32.vlgmr.msra.gmra.mrb[2].mxu1 %v5676_v16 }
  0xc9   :  { %4530 = vmatmul.mubr.f32.vlgmr.msra.gmra.mrb[2].mxu0 %v5676_v16  ;;  %4969 = vmatpush3.bf16.msra.mxu1 %v5937_v13 }
  0xca   :  { %4963 = vmatpush3.bf16.msra.mxu0 %v5922_v6  ;;  %4551 = vmatprep.mubr.msk.f32.mxu0 %vm5675_vm2, %v5676_v16 }
  0xcb   :  { %4964 = vmatprep.subr.bf16.mxu0 %v5674_v10  ;;  %4562 = vmatprep.mubr.msk.f32.mxu1 %vm5675_vm2, %v5676_v16 }
  0xcc   :  { %4970 = vmatprep.subr.bf16.mxu1 %v5674_v10 }
  0xcd   :  { %4972 = vmatpush3.bf16.msra.mxu1 %v5946_v17 }
  0xce   :  { %4966 = vmatpush3.bf16.msra.mxu0 %v5935_v12  ;;  %4979 = vmatprep.subr.bf16.mxu1 %v5674_v10 }
  0xcf   :  { %4973 = vmatprep.subr.bf16.mxu0 %v5674_v10 }
 0x193   :  { %v4515_v19 = vpop.f32.mrb[0].mxu0  ;;  %v4520_v24 = vpop.f32.mrb[0].mxu1 }
 0x194   :  { %v267_v20 = vadd.f32 %v4515_v19, %v4224_v18  ;;  %v261_v21 = vpop.f32.mrb[1].mxu0  ;;  %v361_v25 = vadd.f32 %v4520_v24, %v4228_v22  ;;  %v355_v26 = vpop.f32.mrb[1].mxu1 }
 0x195   :  { %v262_v23 = vadd.f32 %v4224_v18, %v261_v21  ;;  %v356_v27 = vadd.f32 %v4228_v22, %v355_v26 }
 0x196   :  { %272 = vst.msk [vmem:[#allocation4 + $0x8] sm:$0xff] %vm270_vm3, %v267_v20  ;;  %365 = vst.msk [vmem:[#allocation5 + $0x8] sm:$0xff] %vm270_vm3, %v361_v25 }
 0x197   :  { %271 = vst.msk [vmem:[#allocation4] sm:$0xff] %vm270_vm3, %v262_v23  ;;  %364 = vst.msk [vmem:[#allocation5] sm:$0xff] %vm270_vm3, %v356_v27 }
 0x19b   :  { %v557_v33 = vpop.f32.mrb[2].mxu1 }
 0x19c   :  { %v448_v29 = vpop.f32.mrb[2].mxu0  ;;  %v558_v34 = vadd.f32 %v5979_v32, %v557_v33  ;;  %v4542_v35 = vpop.f32.mrb[3].mxu1 }
 0x19d   :  { %v449_v30 = vadd.f32 %v5974_v28, %v448_v29  ;;  %v4531_v31 = vpop.f32.mrb[3].mxu0  ;;  %v484_v37 = vld [vmem:[#allocation5 + $0xe] sm:$0x3]  ;;  %v693_v20 = vld [vmem:[#allocation5 + $0xc] sm:$0x3] }
 0x19e   :  { %v371_v36 = vld [vmem:[#allocation4] sm:$0x3]  ;;  %v561_v39 = vadd.f32 %v558_v34, %v484_v37  ;;  %v589_v18 = vld [vmem:[#allocation4 + $0x2] sm:$0x3] }
 0x19f   :  { %460 = vrot.lane.b32.xlu0 %v449_v30, %s5677_s20  ;;  %v452_v38 = vadd.f32 %v449_v30, %v371_v36 }
 0x1a0   :  { %v4235_v41 = vmul.f32 -1.442695, %v561_v39 }
 0x1a1   :  { %v4233_v40 = vmul.f32 -1.442695, %v452_v38 }
 0x1a3   :  { %569 = vrot.lane.b32.xlu0 %v558_v34, %s5677_s20  ;;  %5221 = vpow2.f32 %v4233_v40 }
 0x1a4   :  { %5223 = vpow2.f32 %v4235_v41 }
 0x1ad   :  { %v5222_v42 = vpop.eup %5221 }
 0x1ae   :  { %v5224_v43 = vpop.eup %5223  ;;  %v456_v44 = vadd.f32 1.0, %v5222_v42 }
 0x1af   :  { %v565_v45 = vadd.f32 1.0, %v5224_v43 }
 0x1b0   :  { %5225 = vrcp.f32 %v456_v44 }
 0x1b1   :  { %5227 = vrcp.f32 %v565_v45 }
 0x1ba   :  { %v5226_v46 = vpop.eup %5225 }
 0x1bb   :  { %v5228_v49 = vpop.eup %5227  ;;  %v470_v58 = vsub.f32 1.0, %v5226_v46  ;;  %v476_v60 = vmul.f32 0.0, %v5226_v46 }
 0x1bc   :  { %v579_v63 = vsub.f32 1.0, %v5228_v49  ;;  %v585_v1 = vmul.f32 0.0, %v5228_v49 }
 0x211   :  { %v461_v47 = vpop.permute.xlu0 %460 }
 0x212   :  { %v463_v48 = vmul.f32 %v5226_v46, %v461_v47 }
 0x214   :  { %465 = vrot.lane.b32.xlu1 %v463_v48, %s5677_s20 }
 0x215   :  { %v570_v50 = vpop.permute.xlu0 %569 }
 0x216   :  { %v572_v51 = vmul.f32 %v5228_v49, %v570_v50 }
 0x218   :  { %574 = vrot.lane.b32.xlu1 %v572_v51, %s5677_s20 }
 0x286   :  { %v466_v52 = vpop.permute.xlu1 %465 }
 0x287   :  { %v468_v53 = vadd.f32 %v466_v52, %v371_v36 }
 0x289   :  { %5229 = vtanh.f32 %v468_v53 }
 0x28a   :  { %v575_v54 = vpop.permute.xlu1 %574 }
 0x28b   :  { %v577_v55 = vadd.f32 %v575_v54, %v484_v37 }
 0x28d   :  { %5231 = vtanh.f32 %v577_v55 }
 0x293   :  { %v5230_v56 = vpop.eup %5229 }
 0x294   :  { %472 = vrot.lane.b32.xlu0 %v5230_v56, %s5678_s27 }
 0x297   :  { %v5232_v57 = vpop.eup %5231 }
 0x298   :  { %581 = vrot.lane.b32.xlu1 %v5232_v57, %s5678_s27 }
 0x306   :  { %v473_v59 = vpop.permute.xlu0 %472 }
 0x307   :  { %v475_v61 = vmul.f32 %v473_v59, %v470_v58 }
 0x309   :  { %v5988_v62 = vadd.f32 %v476_v60, %v475_v61  ;;  %v796_v60 = vld [vmem:[#allocation4 + $0x4] sm:$0x3] }
 0x30a   :  { %v582_v0 = vpop.permute.xlu1 %581 }
 0x30b   :  { %v584_v2 = vmul.f32 %v582_v0, %v579_v63  ;;  %479 = vrot.lane.b32.xlu0 %v5988_v62, %s5678_s27 }
 0x30d   :  { %v5992_v3 = vadd.f32 %v585_v1, %v584_v2 }
 0x30f   :  { %695 = vrot.lane.b32.xlu1 %v5992_v3, %s5678_s27  ;;  %588 = vst.msk [vmem:[#allocation2 + $0xe] sm:$0x3] %vm587_vm4, %v5992_v3 }
 0x37d   :  { %v480_v4 = vpop.permute.xlu0 %479 }
 0x37e   :  { %483 = vst.msk [vmem:[#allocation2] sm:$0x3] %vm482_vm5, %v480_v4  ;;  %4552 = vmatmul.mubr.msk.f32.vlgmr.msra.gmra.mrb[4].mxu0 %vm378_vm6, %v480_v4 }
 0x37f   :  { %4975 = vmatpush3.bf16.msra.mxu0 %v5922_v6  ;;  %4573 = vmatprep.mubr.msk.f32.mxu0 %vm5675_vm2, %v5676_v16 }
 0x380   :  { %4976 = vmatprep.subr.bf16.mxu0 %v5674_v10 }
 0x381   :  { %v696_v5 = vpop.permute.xlu1 %695 }
 0x382   :  { %4563 = vmatmul.mubr.msk.f32.vlgmr.msra.gmra.mrb[4].mxu1 %vm378_vm6, %v696_v5 }
 0x383   :  { %4978 = vmatpush3.bf16.msra.mxu0 %v5935_v12  ;;  %4981 = vmatpush3.bf16.msra.mxu1 %v5937_v13 }
 0x384   :  { %4982 = vmatprep.subr.bf16.mxu1 %v5674_v10  ;;  %4584 = vmatprep.mubr.msk.f32.mxu1 %vm5675_vm2, %v5676_v16 }
 0x385   :  { %4985 = vmatprep.subr.bf16.mxu0 %v5674_v10 }
 0x387   :  { %4984 = vmatpush3.bf16.msra.mxu1 %v5946_v17 }
 0x388   :  { %4991 = vmatprep.subr.bf16.mxu1 %v5674_v10 }
 0x451   :  { %v658_v7 = vpop.f32.mrb[4].mxu0 }
 0x452   :  { %v659_v8 = vadd.f32 %v5974_v28, %v658_v7  ;;  %v4553_v9 = vpop.f32.mrb[5].mxu0 }
 0x454   :  { %670 = vrot.lane.b32.xlu0 %v659_v8, %s5677_s20  ;;  %v662_v19 = vadd.f32 %v659_v8, %v589_v18 }
 0x455   :  { %v765_v11 = vpop.f32.mrb[4].mxu1 }
 0x456   :  { %v766_v14 = vadd.f32 %v5979_v32, %v765_v11  ;;  %v4564_v15 = vpop.f32.mrb[5].mxu1  ;;  %v4237_v21 = vmul.f32 -1.442695, %v662_v19 }
 0x458   :  { %777 = vrot.lane.b32.xlu1 %v766_v14, %s5677_s20  ;;  %v769_v22 = vadd.f32 %v766_v14, %v693_v20  ;;  %5233 = vpow2.f32 %v4237_v21 }
 0x45a   :  { %v4239_v23 = vmul.f32 -1.442695, %v769_v22 }
 0x45c   :  { %5235 = vpow2.f32 %v4239_v23 }
 0x462   :  { %v5234_v24 = vpop.eup %5233 }
 0x463   :  { %v666_v25 = vadd.f32 1.0, %v5234_v24 }
 0x465   :  { %5237 = vrcp.f32 %v666_v25 }
 0x466   :  { %v5236_v26 = vpop.eup %5235 }
 0x467   :  { %v773_v27 = vadd.f32 1.0, %v5236_v26 }
 0x469   :  { %5239 = vrcp.f32 %v773_v27 }
 0x46f   :  { %v5238_v29 = vpop.eup %5237 }
 0x470   :  { %v680_v42 = vsub.f32 1.0, %v5238_v29  ;;  %v686_v44 = vmul.f32 %v5238_v29, %v5988_v62  ;;  %v900_v62 = vld [vmem:[#allocation5 + $0xa] sm:$0x3] }
 0x473   :  { %v5240_v33 = vpop.eup %5239 }
 0x474   :  { %v787_v47 = vsub.f32 1.0, %v5240_v33  ;;  %v793_v49 = vmul.f32 %v5240_v33, %v5992_v3 }
 0x4c6   :  { %v671_v30 = vpop.permute.xlu0 %670 }
 0x4c7   :  { %v673_v31 = vmul.f32 %v5238_v29, %v671_v30 }
 0x4c9   :  { %675 = vrot.lane.b32.xlu0 %v673_v31, %s5677_s20 }
 0x4ca   :  { %v778_v34 = vpop.permute.xlu1 %777 }
 0x4cb   :  { %v780_v35 = vmul.f32 %v5240_v33, %v778_v34 }
 0x4cd   :  { %782 = vrot.lane.b32.xlu1 %v780_v35, %s5677_s20 }
 0x53b   :  { %v676_v36 = vpop.permute.xlu0 %675 }
 0x53c   :  { %v678_v37 = vadd.f32 %v676_v36, %v589_v18 }
 0x53e   :  { %5241 = vtanh.f32 %v678_v37 }
 0x53f   :  { %v783_v38 = vpop.permute.xlu1 %782 }
 0x540   :  { %v785_v39 = vadd.f32 %v783_v38, %v693_v20 }
 0x542   :  { %5243 = vtanh.f32 %v785_v39 }
 0x548   :  { %v5242_v40 = vpop.eup %5241 }
 0x549   :  { %682 = vrot.lane.b32.xlu0 %v5242_v40, %s5678_s27 }
 0x54c   :  { %v5244_v41 = vpop.eup %5243 }
 0x54d   :  { %789 = vrot.lane.b32.xlu1 %v5244_v41, %s5678_s27 }
 0x5bb   :  { %v683_v43 = vpop.permute.xlu0 %682 }
 0x5bc   :  { %v685_v45 = vmul.f32 %v683_v43, %v680_v42 }
 0x5be   :  { %v6022_v46 = vadd.f32 %v686_v44, %v685_v45  ;;  %v1003_v44 = vld [vmem:[#allocation4 + $0x6] sm:$0x3] }
 0x5bf   :  { %v790_v48 = vpop.permute.xlu1 %789 }
 0x5c0   :  { %v792_v50 = vmul.f32 %v790_v48, %v787_v47  ;;  %689 = vrot.lane.b32.xlu0 %v6022_v46, %s5678_s27 }
 0x5c2   :  { %v6027_v51 = vadd.f32 %v793_v49, %v792_v50 }
 0x5c4   :  { %902 = vrot.lane.b32.xlu1 %v6027_v51, %s5678_s27  ;;  %795 = vst.msk [vmem:[#allocation2 + $0xc] sm:$0x3] %vm587_vm4, %v6027_v51 }
 0x632   :  { %v690_v52 = vpop.permute.xlu0 %689 }
 0x633   :  { %692 = vst.msk [vmem:[#allocation2 + $0x2] sm:$0x3] %vm482_vm5, %v690_v52  ;;  %4574 = vmatmul.mubr.msk.f32.vlgmr.msra.gmra.mrb[6].mxu0 %vm378_vm6, %v690_v52 }
 0x634   :  { %4987 = vmatpush3.bf16.msra.mxu0 %v5922_v6  ;;  %4595 = vmatprep.mubr.msk.f32.mxu0 %vm5675_vm2, %v5676_v16 }
 0x635   :  { %4988 = vmatprep.subr.bf16.mxu0 %v5674_v10 }
 0x636   :  { %v903_v53 = vpop.permute.xlu1 %902 }
 0x637   :  { %4585 = vmatmul.mubr.msk.f32.vlgmr.msra.gmra.mrb[6].mxu1 %vm378_vm6, %v903_v53 }
 0x638   :  { %4990 = vmatpush3.bf16.msra.mxu0 %v5935_v12  ;;  %4993 = vmatpush3.bf16.msra.mxu1 %v5937_v13 }
 0x639   :  { %4994 = vmatprep.subr.bf16.mxu1 %v5674_v10  ;;  %4606 = vmatprep.mubr.msk.f32.mxu1 %vm5675_vm2, %v5676_v16 }
 0x63a   :  { %4997 = vmatprep.subr.bf16.mxu0 %v5674_v10 }
 0x63c   :  { %4996 = vmatpush3.bf16.msra.mxu1 %v5946_v17 }
 0x63d   :  { %5003 = vmatprep.subr.bf16.mxu1 %v5674_v10 }
 0x706   :  { %v865_v54 = vpop.f32.mrb[6].mxu0 }
 0x707   :  { %v866_v55 = vadd.f32 %v5974_v28, %v865_v54  ;;  %v4575_v56 = vpop.f32.mrb[7].mxu0 }
 0x709   :  { %877 = vrot.lane.b32.xlu0 %v866_v55, %s5677_s20  ;;  %v869_v61 = vadd.f32 %v866_v55, %v796_v60 }
 0x70a   :  { %v972_v57 = vpop.f32.mrb[6].mxu1 }
 0x70b   :  { %v973_v58 = vadd.f32 %v5979_v32, %v972_v57  ;;  %v4586_v59 = vpop.f32.mrb[7].mxu1  ;;  %v4241_v63 = vmul.f32 -1.442695, %v869_v61 }
 0x70d   :  { %984 = vrot.lane.b32.xlu1 %v973_v58, %s5677_s20  ;;  %v976_v0 = vadd.f32 %v973_v58, %v900_v62  ;;  %5245 = vpow2.f32 %v4241_v63 }
 0x70f   :  { %v4243_v1 = vmul.f32 -1.442695, %v976_v0 }
 0x711   :  { %5247 = vpow2.f32 %v4243_v1 }
 0x717   :  { %v5246_v2 = vpop.eup %5245 }
 0x718   :  { %v873_v3 = vadd.f32 1.0, %v5246_v2 }
 0x71a   :  { %5249 = vrcp.f32 %v873_v3 }
 0x71b   :  { %v5248_v4 = vpop.eup %5247 }
 0x71c   :  { %v980_v5 = vadd.f32 1.0, %v5248_v4 }
 0x71e   :  { %5251 = vrcp.f32 %v980_v5 }
 0x724   :  { %v5250_v7 = vpop.eup %5249 }
 0x725   :  { %v887_v24 = vsub.f32 1.0, %v5250_v7  ;;  %v893_v26 = vmul.f32 %v5250_v7, %v6022_v46  ;;  %v1107_v46 = vld [vmem:[#allocation5 + $0x8] sm:$0x3] }
 0x728   :  { %v5252_v11 = vpop.eup %5251 }
 0x729   :  { %v994_v30 = vsub.f32 1.0, %v5252_v11  ;;  %v1000_v33 = vmul.f32 %v5252_v11, %v6027_v51 }
 0x77b   :  { %v878_v8 = vpop.permute.xlu0 %877 }
 0x77c   :  { %v880_v9 = vmul.f32 %v5250_v7, %v878_v8 }
 0x77e   :  { %882 = vrot.lane.b32.xlu0 %v880_v9, %s5677_s20 }
 0x77f   :  { %v985_v14 = vpop.permute.xlu1 %984 }
 0x780   :  { %v987_v15 = vmul.f32 %v5252_v11, %v985_v14 }
 0x782   :  { %989 = vrot.lane.b32.xlu1 %v987_v15, %s5677_s20 }
 0x7f0   :  { %v883_v18 = vpop.permute.xlu0 %882 }
 0x7f1   :  { %v885_v19 = vadd.f32 %v883_v18, %v796_v60 }
 0x7f3   :  { %5253 = vtanh.f32 %v885_v19 }
 0x7f4   :  { %v990_v20 = vpop.permute.xlu1 %989 }
 0x7f5   :  { %v992_v21 = vadd.f32 %v990_v20, %v900_v62 }
 0x7f7   :  { %5255 = vtanh.f32 %v992_v21 }
 0x7fd   :  { %v5254_v22 = vpop.eup %5253 }
 0x7fe   :  { %889 = vrot.lane.b32.xlu0 %v5254_v22, %s5678_s27 }
 0x801   :  { %v5256_v23 = vpop.eup %5255 }
 0x802   :  { %996 = vrot.lane.b32.xlu1 %v5256_v23, %s5678_s27 }
 0x870   :  { %v890_v25 = vpop.permute.xlu0 %889 }
 0x871   :  { %v892_v27 = vmul.f32 %v890_v25, %v887_v24 }
 0x873   :  { %v6057_v29 = vadd.f32 %v893_v26, %v892_v27  ;;  %v1210_v26 = vld [vmem:[#allocation4 + $0x8] sm:$0x3] }
 0x874   :  { %v997_v31 = vpop.permute.xlu1 %996 }
 0x875   :  { %v999_v34 = vmul.f32 %v997_v31, %v994_v30  ;;  %896 = vrot.lane.b32.xlu0 %v6057_v29, %s5678_s27 }
 0x877   :  { %v6062_v35 = vadd.f32 %v1000_v33, %v999_v34 }
 0x879   :  { %1109 = vrot.lane.b32.xlu1 %v6062_v35, %s5678_s27  ;;  %1002 = vst.msk [vmem:[#allocation2 + $0xa] sm:$0x3] %vm587_vm4, %v6062_v35 }
 0x8e7   :  { %v897_v36 = vpop.permute.xlu0 %896 }
 0x8e8   :  { %899 = vst.msk [vmem:[#allocation2 + $0x4] sm:$0x3] %vm482_vm5, %v897_v36  ;;  %4596 = vmatmul.mubr.msk.f32.vlgmr.msra.gmra.mrb[8].mxu0 %vm378_vm6, %v897_v36 }
 0x8e9   :  { %4999 = vmatpush3.bf16.msra.mxu0 %v5922_v6  ;;  %4617 = vmatprep.mubr.msk.f32.mxu0 %vm5675_vm2, %v5676_v16 }
 0x8ea   :  { %5000 = vmatprep.subr.bf16.mxu0 %v5674_v10 }
 0x8eb   :  { %v1110_v37 = vpop.permute.xlu1 %1109 }
 0x8ec   :  { %4607 = vmatmul.mubr.msk.f32.vlgmr.msra.gmra.mrb[8].mxu1 %vm378_vm6, %v1110_v37 }
 0x8ed   :  { %5002 = vmatpush3.bf16.msra.mxu0 %v5935_v12  ;;  %5005 = vmatpush3.bf16.msra.mxu1 %v5937_v13 }
 0x8ee   :  { %5006 = vmatprep.subr.bf16.mxu1 %v5674_v10  ;;  %4628 = vmatprep.mubr.msk.f32.mxu1 %vm5675_vm2, %v5676_v16 }
 0x8ef   :  { %5009 = vmatprep.subr.bf16.mxu0 %v5674_v10 }
 0x8f1   :  { %5008 = vmatpush3.bf16.msra.mxu1 %v5946_v17 }
 0x8f2   :  { %5015 = vmatprep.subr.bf16.mxu1 %v5674_v10 }
 0x9bb   :  { %v1072_v38 = vpop.f32.mrb[8].mxu0 }
 0x9bc   :  { %v1073_v39 = vadd.f32 %v5974_v28, %v1072_v38  ;;  %v4597_v40 = vpop.f32.mrb[9].mxu0 }
 0x9be   :  { %1084 = vrot.lane.b32.xlu0 %v1073_v39, %s5677_s20  ;;  %v1076_v45 = vadd.f32 %v1073_v39, %v1003_v44 }
 0x9bf   :  { %v1179_v41 = vpop.f32.mrb[8].mxu1 }
 0x9c0   :  { %v1180_v42 = vadd.f32 %v5979_v32, %v1179_v41  ;;  %v4608_v43 = vpop.f32.mrb[9].mxu1  ;;  %v4245_v47 = vmul.f32 -1.442695, %v1076_v45 }
 0x9c2   :  { %1191 = vrot.lane.b32.xlu1 %v1180_v42, %s5677_s20  ;;  %v1183_v48 = vadd.f32 %v1180_v42, %v1107_v46  ;;  %5257 = vpow2.f32 %v4245_v47 }
 0x9c4   :  { %v4247_v49 = vmul.f32 -1.442695, %v1183_v48 }
 0x9c6   :  { %5259 = vpow2.f32 %v4247_v49 }
 0x9cc   :  { %v5258_v50 = vpop.eup %5257 }
 0x9cd   :  { %v1080_v51 = vadd.f32 1.0, %v5258_v50 }
 0x9cf   :  { %5261 = vrcp.f32 %v1080_v51 }
 0x9d0   :  { %v5260_v52 = vpop.eup %5259 }
 0x9d1   :  { %v1187_v53 = vadd.f32 1.0, %v5260_v52 }
 0x9d3   :  { %5263 = vrcp.f32 %v1187_v53 }
 0x9d9   :  { %v5262_v54 = vpop.eup %5261 }
 0x9da   :  { %v1094_v2 = vsub.f32 1.0, %v5262_v54  ;;  %v1100_v4 = vmul.f32 %v5262_v54, %v6057_v29  ;;  %v1314_v29 = vld [vmem:[#allocation5 + $0x6] sm:$0x3] }
 0x9dd   :  { %v5264_v57 = vpop.eup %5263 }
 0x9de   :  { %v1201_v8 = vsub.f32 1.0, %v5264_v57  ;;  %v1207_v11 = vmul.f32 %v5264_v57, %v6062_v35 }
 0xa30   :  { %v1085_v55 = vpop.permute.xlu0 %1084 }
 0xa31   :  { %v1087_v56 = vmul.f32 %v5262_v54, %v1085_v55 }
 0xa33   :  { %1089 = vrot.lane.b32.xlu0 %v1087_v56, %s5677_s20 }
 0xa34   :  { %v1192_v58 = vpop.permute.xlu1 %1191 }
 0xa35   :  { %v1194_v59 = vmul.f32 %v5264_v57, %v1192_v58 }
 0xa37   :  { %1196 = vrot.lane.b32.xlu1 %v1194_v59, %s5677_s20 }
 0xaa5   :  { %v1090_v60 = vpop.permute.xlu0 %1089 }
 0xaa6   :  { %v1092_v61 = vadd.f32 %v1090_v60, %v1003_v44 }
 0xaa8   :  { %5265 = vtanh.f32 %v1092_v61 }
 0xaa9   :  { %v1197_v62 = vpop.permute.xlu1 %1196 }
 0xaaa   :  { %v1199_v63 = vadd.f32 %v1197_v62, %v1107_v46 }
 0xaac   :  { %5267 = vtanh.f32 %v1199_v63 }
 0xab2   :  { %v5266_v0 = vpop.eup %5265 }
 0xab3   :  { %1096 = vrot.lane.b32.xlu0 %v5266_v0, %s5678_s27 }
 0xab6   :  { %v5268_v1 = vpop.eup %5267 }
 0xab7   :  { %1203 = vrot.lane.b32.xlu1 %v5268_v1, %s5678_s27 }
 0xb25   :  { %v1097_v3 = vpop.permute.xlu0 %1096 }
 0xb26   :  { %v1099_v5 = vmul.f32 %v1097_v3, %v1094_v2 }
 0xb28   :  { %v6092_v7 = vadd.f32 %v1100_v4, %v1099_v5  ;;  %v1417_v4 = vld [vmem:[#allocation4 + $0xa] sm:$0x3] }
 0xb29   :  { %v1204_v9 = vpop.permute.xlu1 %1203 }
 0xb2a   :  { %v1206_v14 = vmul.f32 %v1204_v9, %v1201_v8  ;;  %1103 = vrot.lane.b32.xlu0 %v6092_v7, %s5678_s27 }
 0xb2c   :  { %v6097_v15 = vadd.f32 %v1207_v11, %v1206_v14 }
 0xb2e   :  { %1316 = vrot.lane.b32.xlu1 %v6097_v15, %s5678_s27  ;;  %1209 = vst.msk [vmem:[#allocation2 + $0x8] sm:$0x3] %vm587_vm4, %v6097_v15 }
 0xb9c   :  { %v1104_v18 = vpop.permute.xlu0 %1103 }
 0xb9d   :  { %1106 = vst.msk [vmem:[#allocation2 + $0x6] sm:$0x3] %vm482_vm5, %v1104_v18  ;;  %4618 = vmatmul.mubr.msk.f32.vlgmr.msra.gmra.mrb[10].mxu0 %vm378_vm6, %v1104_v18 }
 0xb9e   :  { %5011 = vmatpush3.bf16.msra.mxu0 %v5922_v6  ;;  %4639 = vmatprep.mubr.msk.f32.mxu0 %vm5675_vm2, %v5676_v16 }
 0xb9f   :  { %5012 = vmatprep.subr.bf16.mxu0 %v5674_v10 }
 0xba0   :  { %v1317_v19 = vpop.permute.xlu1 %1316 }
 0xba1   :  { %4629 = vmatmul.mubr.msk.f32.vlgmr.msra.gmra.mrb[10].mxu1 %vm378_vm6, %v1317_v19 }
 0xba2   :  { %5014 = vmatpush3.bf16.msra.mxu0 %v5935_v12  ;;  %5017 = vmatpush3.bf16.msra.mxu1 %v5937_v13 }
 0xba3   :  { %5018 = vmatprep.subr.bf16.mxu1 %v5674_v10  ;;  %4650 = vmatprep.mubr.msk.f32.mxu1 %vm5675_vm2, %v5676_v16 }
 0xba4   :  { %5021 = vmatprep.subr.bf16.mxu0 %v5674_v10 }
 0xba6   :  { %5020 = vmatpush3.bf16.msra.mxu1 %v5946_v17 }
 0xba7   :  { %5027 = vmatprep.subr.bf16.mxu1 %v5674_v10 }
 0xc70   :  { %v1279_v20 = vpop.f32.mrb[10].mxu0 }
 0xc71   :  { %v1280_v21 = vadd.f32 %v5974_v28, %v1279_v20  ;;  %v4619_v22 = vpop.f32.mrb[11].mxu0 }
 0xc73   :  { %1291 = vrot.lane.b32.xlu0 %v1280_v21, %s5677_s20  ;;  %v1283_v27 = vadd.f32 %v1280_v21, %v1210_v26 }
 0xc74   :  { %v1386_v23 = vpop.f32.mrb[10].mxu1 }
 0xc75   :  { %v1387_v24 = vadd.f32 %v5979_v32, %v1386_v23  ;;  %v4630_v25 = vpop.f32.mrb[11].mxu1  ;;  %v4249_v30 = vmul.f32 -1.442695, %v1283_v27 }
 0xc77   :  { %1398 = vrot.lane.b32.xlu1 %v1387_v24, %s5677_s20  ;;  %v1390_v31 = vadd.f32 %v1387_v24, %v1314_v29  ;;  %5269 = vpow2.f32 %v4249_v30 }
 0xc79   :  { %v4251_v33 = vmul.f32 -1.442695, %v1390_v31 }
 0xc7b   :  { %5271 = vpow2.f32 %v4251_v33 }
 0xc81   :  { %v5270_v34 = vpop.eup %5269 }
 0xc82   :  { %v1287_v35 = vadd.f32 1.0, %v5270_v34 }
 0xc84   :  { %5273 = vrcp.f32 %v1287_v35 }
 0xc85   :  { %v5272_v36 = vpop.eup %5271 }
 0xc86   :  { %v1394_v37 = vadd.f32 1.0, %v5272_v36 }
 0xc88   :  { %5275 = vrcp.f32 %v1394_v37 }
 0xc8e   :  { %v5274_v38 = vpop.eup %5273 }
 0xc8f   :  { %v1301_v50 = vsub.f32 1.0, %v5274_v38  ;;  %v1307_v52 = vmul.f32 %v5274_v38, %v6092_v7  ;;  %v1521_v7 = vld [vmem:[#allocation5 + $0x4] sm:$0x3] }
 0xc92   :  { %v5276_v41 = vpop.eup %5275 }
 0xc93   :  { %v1408_v55 = vsub.f32 1.0, %v5276_v41  ;;  %v1414_v57 = vmul.f32 %v5276_v41, %v6097_v15 }
 0xce5   :  { %v1292_v39 = vpop.permute.xlu0 %1291 }
 0xce6   :  { %v1294_v40 = vmul.f32 %v5274_v38, %v1292_v39 }
 0xce8   :  { %1296 = vrot.lane.b32.xlu0 %v1294_v40, %s5677_s20 }
 0xce9   :  { %v1399_v42 = vpop.permute.xlu1 %1398 }
 0xcea   :  { %v1401_v43 = vmul.f32 %v5276_v41, %v1399_v42 }
 0xcec   :  { %1403 = vrot.lane.b32.xlu1 %v1401_v43, %s5677_s20 }
 0xd5a   :  { %v1297_v44 = vpop.permute.xlu0 %1296 }
 0xd5b   :  { %v1299_v45 = vadd.f32 %v1297_v44, %v1210_v26 }
 0xd5d   :  { %5277 = vtanh.f32 %v1299_v45 }
 0xd5e   :  { %v1404_v46 = vpop.permute.xlu1 %1403 }
 0xd5f   :  { %v1406_v47 = vadd.f32 %v1404_v46, %v1314_v29 }
 0xd61   :  { %5279 = vtanh.f32 %v1406_v47 }
 0xd67   :  { %v5278_v48 = vpop.eup %5277 }
 0xd68   :  { %1303 = vrot.lane.b32.xlu0 %v5278_v48, %s5678_s27 }
 0xd6b   :  { %v5280_v49 = vpop.eup %5279 }
 0xd6c   :  { %1410 = vrot.lane.b32.xlu1 %v5280_v49, %s5678_s27 }
 0xdda   :  { %v1304_v51 = vpop.permute.xlu0 %1303 }
 0xddb   :  { %v1306_v53 = vmul.f32 %v1304_v51, %v1301_v50  ;;  %v1728_v51 = vld [vmem:[#allocation5 + $0x2] sm:$0x3] }
 0xddd   :  { %v6127_v54 = vadd.f32 %v1307_v52, %v1306_v53 }
 0xdde   :  { %v1411_v56 = vpop.permute.xlu1 %1410 }
 0xddf   :  { %v1413_v58 = vmul.f32 %v1411_v56, %v1408_v55  ;;  %1310 = vrot.lane.b32.xlu0 %v6127_v54, %s5678_s27 }
 0xde1   :  { %v6132_v59 = vadd.f32 %v1414_v57, %v1413_v58 }
 0xde3   :  { %1416 = vst.msk [vmem:[#allocation2 + $0x6] sm:$0x3] %vm587_vm4, %v6132_v59  ;;  %1523 = vrot.lane.b32.xlu1 %v6132_v59, %s5678_s27 }
 0xe51   :  { %v1311_v60 = vpop.permute.xlu0 %1310 }
 0xe52   :  { %1313 = vst.msk [vmem:[#allocation2 + $0x8] sm:$0x3] %vm482_vm5, %v1311_v60  ;;  %4640 = vmatmul.mubr.msk.f32.vlgmr.msra.gmra.mrb[12].mxu0 %vm378_vm6, %v1311_v60 }
 0xe53   :  { %5023 = vmatpush3.bf16.msra.mxu0 %v5922_v6  ;;  %4661 = vmatprep.mubr.msk.f32.mxu0 %vm5675_vm2, %v5676_v16 }
 0xe54   :  { %5024 = vmatprep.subr.bf16.mxu0 %v5674_v10 }
 0xe55   :  { %v1524_v61 = vpop.permute.xlu1 %1523 }
 0xe56   :  { %4651 = vmatmul.mubr.msk.f32.vlgmr.msra.gmra.mrb[12].mxu1 %vm378_vm6, %v1524_v61 }
 0xe57   :  { %5026 = vmatpush3.bf16.msra.mxu0 %v5935_v12  ;;  %5029 = vmatpush3.bf16.msra.mxu1 %v5937_v13 }
 0xe58   :  { %5030 = vmatprep.subr.bf16.mxu1 %v5674_v10  ;;  %4672 = vmatprep.mubr.msk.f32.mxu1 %vm5675_vm2, %v5676_v16 }
 0xe59   :  { %5033 = vmatprep.subr.bf16.mxu0 %v5674_v10 }
 0xe5b   :  { %5032 = vmatpush3.bf16.msra.mxu1 %v5946_v17 }
 0xe5c   :  { %5039 = vmatprep.subr.bf16.mxu1 %v5674_v10 }
 0xf25   :  { %v1486_v62 = vpop.f32.mrb[12].mxu0 }
 0xf26   :  { %v1487_v63 = vadd.f32 %v5974_v28, %v1486_v62  ;;  %v4641_v0 = vpop.f32.mrb[13].mxu0 }
 0xf28   :  { %1498 = vrot.lane.b32.xlu0 %v1487_v63, %s5677_s20  ;;  %v1490_v5 = vadd.f32 %v1487_v63, %v1417_v4 }
 0xf29   :  { %v1593_v1 = vpop.f32.mrb[12].mxu1 }
 0xf2a   :  { %v1594_v2 = vadd.f32 %v5979_v32, %v1593_v1  ;;  %v4652_v3 = vpop.f32.mrb[13].mxu1  ;;  %v4253_v8 = vmul.f32 -1.442695, %v1490_v5 }
 0xf2c   :  { %1605 = vrot.lane.b32.xlu1 %v1594_v2, %s5677_s20  ;;  %v1597_v9 = vadd.f32 %v1594_v2, %v1521_v7  ;;  %5281 = vpow2.f32 %v4253_v8 }
 0xf2e   :  { %v4255_v11 = vmul.f32 -1.442695, %v1597_v9 }
 0xf30   :  { %5283 = vpow2.f32 %v4255_v11 }
 0xf36   :  { %v5282_v14 = vpop.eup %5281 }
 0xf37   :  { %v1494_v15 = vadd.f32 1.0, %v5282_v14 }
 0xf39   :  { %5285 = vrcp.f32 %v1494_v15 }
 0xf3a   :  { %v5284_v18 = vpop.eup %5283 }
 0xf3b   :  { %v1601_v19 = vadd.f32 1.0, %v5284_v18 }
 0xf3d   :  { %5287 = vrcp.f32 %v1601_v19 }
 0xf43   :  { %v5286_v20 = vpop.eup %5285 }
 0xf44   :  { %v1508_v34 = vsub.f32 1.0, %v5286_v20  ;;  %v1514_v36 = vmul.f32 %v5286_v20, %v6127_v54 }
 0xf47   :  { %v5288_v23 = vpop.eup %5287 }
 0xf48   :  { %v1615_v39 = vsub.f32 1.0, %v5288_v23  ;;  %v1621_v41 = vmul.f32 %v5288_v23, %v6132_v59 }
 0xf9a   :  { %v1499_v21 = vpop.permute.xlu0 %1498 }
 0xf9b   :  { %v1501_v22 = vmul.f32 %v5286_v20, %v1499_v21 }
 0xf9d   :  { %1503 = vrot.lane.b32.xlu0 %v1501_v22, %s5677_s20 }
 0xf9e   :  { %v1606_v24 = vpop.permute.xlu1 %1605 }
 0xf9f   :  { %v1608_v25 = vmul.f32 %v5288_v23, %v1606_v24 }
 0xfa1   :  { %1610 = vrot.lane.b32.xlu1 %v1608_v25, %s5677_s20 }
0x100f   :  { %v1504_v26 = vpop.permute.xlu0 %1503 }
0x1010   :  { %v1506_v27 = vadd.f32 %v1504_v26, %v1417_v4 }
0x1012   :  { %5289 = vtanh.f32 %v1506_v27 }
0x1013   :  { %v1611_v29 = vpop.permute.xlu1 %1610 }
0x1014   :  { %v1613_v30 = vadd.f32 %v1611_v29, %v1521_v7 }
0x1016   :  { %5291 = vtanh.f32 %v1613_v30 }
0x101c   :  { %v5290_v31 = vpop.eup %5289 }
0x101d   :  { %1510 = vrot.lane.b32.xlu0 %v5290_v31, %s5678_s27  ;;  %v1831_v31 = vld [vmem:[#allocation4 + $0xe] sm:$0x3] }
0x1020   :  { %v5292_v33 = vpop.eup %5291 }
0x1021   :  { %1617 = vrot.lane.b32.xlu1 %v5292_v33, %s5678_s27 }
0x108f   :  { %v1511_v35 = vpop.permute.xlu0 %1510 }
0x1090   :  { %v1513_v37 = vmul.f32 %v1511_v35, %v1508_v34  ;;  %v1935_v34 = vld [vmem:[#allocation5] sm:$0x3] }
0x1092   :  { %v6162_v38 = vadd.f32 %v1514_v36, %v1513_v37 }
0x1093   :  { %v1618_v40 = vpop.permute.xlu1 %1617 }
0x1094   :  { %v1620_v42 = vmul.f32 %v1618_v40, %v1615_v39  ;;  %1517 = vrot.lane.b32.xlu0 %v6162_v38, %s5678_s27 }
0x1096   :  { %v6167_v43 = vadd.f32 %v1621_v41, %v1620_v42 }
0x1098   :  { %1623 = vst.msk [vmem:[#allocation2 + $0x4] sm:$0x3] %vm587_vm4, %v6167_v43  ;;  %1730 = vrot.lane.b32.xlu1 %v6167_v43, %s5678_s27 }
0x1106   :  { %v1518_v44 = vpop.permute.xlu0 %1517 }
0x1107   :  { %1520 = vst.msk [vmem:[#allocation2 + $0xa] sm:$0x3] %vm482_vm5, %v1518_v44  ;;  %4662 = vmatmul.mubr.msk.f32.vlgmr.msra.gmra.mrb[14].mxu0 %vm378_vm6, %v1518_v44 }
0x1108   :  { %5035 = vmatpush3.bf16.msra.mxu0 %v5922_v6  ;;  %4683 = vmatprep.mubr.msk.f32.mxu0 %vm5675_vm2, %v5676_v16 }
0x1109   :  { %5036 = vmatprep.subr.bf16.mxu0 %v5674_v10 }
0x110a   :  { %v1731_v45 = vpop.permute.xlu1 %1730 }
0x110b   :  { %4673 = vmatmul.mubr.msk.f32.vlgmr.msra.gmra.mrb[14].mxu1 %vm378_vm6, %v1731_v45 }
0x110c   :  { %5038 = vmatpush3.bf16.msra.mxu0 %v5935_v12  ;;  %5041 = vmatpush3.bf16.msra.mxu1 %v5937_v13  ;;  %v1624_v12 = vld [vmem:[#allocation4 + $0xc] sm:$0x3] }
0x110d   :  { %5042 = vmatprep.subr.bf16.mxu1 %v5674_v10  ;;  %4694 = vmatprep.mubr.msk.f32.mxu1 %vm5675_vm2, %v5676_v16 }
0x1110   :  { %5044 = vmatpush3.bf16.msra.mxu1 %v5946_v17 }
0x11da   :  { %v1693_v6 = vpop.f32.mrb[14].mxu0 }
0x11db   :  { %v1694_v46 = vadd.f32 %v5974_v28, %v1693_v6  ;;  %v4663_v47 = vpop.f32.mrb[15].mxu0 }
0x11dd   :  { %1705 = vrot.lane.b32.xlu0 %v1694_v46, %s5677_s20  ;;  %v1697_v13 = vadd.f32 %v1694_v46, %v1624_v12 }
0x11de   :  { %v1800_v48 = vpop.f32.mrb[14].mxu1 }
0x11df   :  { %v1801_v49 = vadd.f32 %v5979_v32, %v1800_v48  ;;  %v4674_v50 = vpop.f32.mrb[15].mxu1  ;;  %v4257_v52 = vmul.f32 -1.442695, %v1697_v13  ;;  %v2041_v13 = vld [vmem:[%s6664_s9 + $0x8] sm:$0xff] }
0x11e1   :  { %1812 = vrot.lane.b32.xlu1 %v1801_v49, %s5677_s20  ;;  %v1804_v53 = vadd.f32 %v1801_v49, %v1728_v51  ;;  %5293 = vpow2.f32 %v4257_v52 }
0x11e3   :  { %v4259_v54 = vmul.f32 -1.442695, %v1804_v53  ;;  %v2145_v53 = vld [vmem:[%s6668_s13 + $0x8] sm:$0xff] }
0x11e5   :  { %5295 = vpow2.f32 %v4259_v54  ;;  %v2042_v54 = vld [vmem:[%s6664_s9 + $0x10] sm:$0xff] }
0x11eb   :  { %v5294_v17 = vpop.eup %5293 }
0x11ec   :  { %v1701_v55 = vadd.f32 1.0, %v5294_v17  ;;  %v2043_v17 = vld [vmem:[%s6664_s9 + $0x18] sm:$0xff] }
0x11ee   :  { %5297 = vrcp.f32 %v1701_v55 }
0x11ef   :  { %v5296_v56 = vpop.eup %5295 }
0x11f0   :  { %v1808_v57 = vadd.f32 1.0, %v5296_v56  ;;  %v5049_v56 = vpack.c.bf16 %v2043_v17, %v2042_v54 }
0x11f2   :  { %5299 = vrcp.f32 %v1808_v57  ;;  %v2146_v57 = vld [vmem:[%s6668_s13 + $0x10] sm:$0xff] }
0x11f8   :  { %v5298_v58 = vpop.eup %5297 }
0x11f9   :  { %v1715_v7 = vsub.f32 1.0, %v5298_v58  ;;  %v1721_v9 = vmul.f32 %v5298_v58, %v6162_v38 }
0x11fc   :  { %v5300_v61 = vpop.eup %5299 }
0x11fd   :  { %v1822_v15 = vsub.f32 1.0, %v5300_v61  ;;  %v1828_v19 = vmul.f32 %v5300_v61, %v6167_v43 }
0x124f   :  { %v1706_v59 = vpop.permute.xlu0 %1705 }
0x1250   :  { %v1708_v60 = vmul.f32 %v5298_v58, %v1706_v59  ;;  %v2147_v58 = vld [vmem:[%s6668_s13 + $0x18] sm:$0xff]  ;;  %v2044_v59 = vld [vmem:[%s6664_s9 + $0x20] sm:$0xff] }
0x1252   :  { %1710 = vrot.lane.b32.xlu0 %v1708_v60, %s5677_s20  ;;  %v5065_v60 = vpack.c.bf16 %v2147_v58, %v2146_v57 }
0x1253   :  { %v1813_v62 = vpop.permute.xlu1 %1812 }
0x1254   :  { %v1815_v63 = vmul.f32 %v5300_v61, %v1813_v62  ;;  %v2045_v61 = vld [vmem:[%s6664_s9 + $0x28] sm:$0xff] }
0x1255   :  { %v5053_v62 = vpack.c.bf16 %v2045_v61, %v2044_v59 }
0x1256   :  { %1817 = vrot.lane.b32.xlu1 %v1815_v63, %s5677_s20  ;;  %v2148_v63 = vld [vmem:[%s6668_s13 + $0x20] sm:$0xff] }
0x12c4   :  { %v1711_v0 = vpop.permute.xlu0 %1710 }
0x12c5   :  { %v1713_v1 = vadd.f32 %v1711_v0, %v1624_v12  ;;  %v2040_v12 = vld [vmem:[%s6664_s9] sm:$0xff]  ;;  %v2149_v0 = vld [vmem:[%s6668_s13 + $0x28] sm:$0xff] }
0x12c6   :  { %v5045_v52 = vpack.c.bf16 %v2041_v13, %v2040_v12 }
0x12c7   :  { %5301 = vtanh.f32 %v1713_v1  ;;  %v2046_v1 = vld [vmem:[%s6664_s9 + $0x30] sm:$0xff] }
0x12c8   :  { %v1818_v2 = vpop.permute.xlu1 %1817  ;;  %5046 = vmatprep.subr.bf16.mxu0 %v5045_v52 }
0x12c9   :  { %v1820_v3 = vadd.f32 %v1818_v2, %v1728_v51  ;;  %v2144_v51 = vld [vmem:[%s6668_s13] sm:$0xff]  ;;  %v5069_v2 = vpack.c.bf16 %v2149_v0, %v2148_v63 }
0x12ca   :  { %v5061_v55 = vpack.c.bf16 %v2145_v53, %v2144_v51 }
0x12cb   :  { %5303 = vtanh.f32 %v1820_v3  ;;  %v2047_v3 = vld [vmem:[%s6664_s9 + $0x38] sm:$0xff] }
0x12cc   :  { %5062 = vmatprep.subr.bf16.mxu1 %v5061_v55 }
0x12d1   :  { %v5302_v4 = vpop.eup %5301 }
0x12d2   :  { %1717 = vrot.lane.b32.xlu0 %v5302_v4, %s5678_s27  ;;  %v2150_v4 = vld [vmem:[%s6668_s13 + $0x30] sm:$0xff] }
0x12d5   :  { %v5304_v5 = vpop.eup %5303 }
0x12d6   :  { %1824 = vrot.lane.b32.xlu1 %v5304_v5, %s5678_s27  ;;  %v2151_v5 = vld [vmem:[%s6668_s13 + $0x38] sm:$0xff] }
0x1344   :  { %v1718_v8 = vpop.permute.xlu0 %1717 }
0x1345   :  { %v1720_v11 = vmul.f32 %v1718_v8, %v1715_v7  ;;  %v5057_v7 = vpack.c.bf16 %v2047_v3, %v2046_v1  ;;  %v5073_v8 = vpack.c.bf16 %v2151_v5, %v2150_v4 }
0x1347   :  { %v6195_v14 = vadd.f32 %v1721_v9, %v1720_v11 }
0x1348   :  { %v1825_v18 = vpop.permute.xlu1 %1824 }
0x1349   :  { %v1827_v20 = vmul.f32 %v1825_v18, %v1822_v15  ;;  %1724 = vrot.lane.b32.xlu0 %v6195_v14, %s5678_s27 }
0x134b   :  { %v6200_v21 = vadd.f32 %v1828_v19, %v1827_v20 }
0x134d   :  { %1830 = vst.msk [vmem:[#allocation2 + $0x2] sm:$0x3] %vm587_vm4, %v6200_v21  ;;  %1937 = vrot.lane.b32.xlu1 %v6200_v21, %s5678_s27 }
0x13bb   :  { %v1725_v22 = vpop.permute.xlu0 %1724 }
0x13bc   :  { %1727 = vst.msk [vmem:[#allocation2 + $0xc] sm:$0x3] %vm482_vm5, %v1725_v22  ;;  %4684 = vmatmul.mubr.msk.f32.vlgmr.msra.gmra.mrb[16].mxu0 %vm378_vm6, %v1725_v22 }
0x13bd   :  { %5048 = vmatpush3.bf16.msra.mxu0 %v5045_v52 }
0x13be   :  { %5050 = vmatprep.subr.bf16.mxu0 %v5049_v56 }
0x13bf   :  { %v1938_v23 = vpop.permute.xlu1 %1937 }
0x13c0   :  { %4695 = vmatmul.mubr.msk.f32.vlgmr.msra.gmra.mrb[16].mxu1 %vm378_vm6, %v1938_v23 }
0x13c1   :  { %5064 = vmatpush3.bf16.msra.mxu1 %v5061_v55  ;;  %5052 = vmatpush3.bf16.msra.mxu0 %v5049_v56 }
0x13c2   :  { %5066 = vmatprep.subr.bf16.mxu1 %v5065_v60  ;;  %5054 = vmatprep.subr.bf16.mxu0 %v5053_v62 }
0x13c5   :  { %5068 = vmatpush3.bf16.msra.mxu1 %v5065_v60  ;;  %5056 = vmatpush3.bf16.msra.mxu0 %v5053_v62 }
0x13c6   :  { %5070 = vmatprep.subr.bf16.mxu1 %v5069_v2  ;;  %5058 = vmatprep.subr.bf16.mxu0 %v5057_v7 }
0x13c9   :  { %5072 = vmatpush3.bf16.msra.mxu1 %v5069_v2  ;;  %5060 = vmatpush3.bf16.msra.mxu0 %v5057_v7 }
0x13ca   :  { %5074 = vmatprep.subr.bf16.mxu1 %v5073_v8  ;;  %5077 = vmatprep.subr.bf16.mxu0 %v5674_v10 }
0x13cd   :  { %5076 = vmatpush3.bf16.msra.mxu1 %v5073_v8 }
0x13ce   :  { %5083 = vmatprep.subr.bf16.mxu1 %v5674_v10 }
0x148f   :  { %v1900_v24 = vpop.f32.mrb[16].mxu0 }
0x1490   :  { %v1901_v25 = vadd.f32 %v5974_v28, %v1900_v24  ;;  %v4685_v26 = vpop.f32.mrb[17].mxu0 }
0x1492   :  { %1912 = vrot.lane.b32.xlu0 %v1901_v25, %s5677_s20  ;;  %v1904_v33 = vadd.f32 %v1901_v25, %v1831_v31 }
0x1493   :  { %v2007_v27 = vpop.f32.mrb[16].mxu1 }
0x1494   :  { %v2008_v29 = vadd.f32 %v5979_v32, %v2007_v27  ;;  %v4696_v30 = vpop.f32.mrb[17].mxu1  ;;  %v4261_v35 = vmul.f32 -1.442695, %v1904_v33  ;;  %v2139_v27 = vld [vmem:[%s6665_s10] sm:$0xff] }
0x1495   :  { %v2237_v30 = vld [vmem:[#allocation20 + $0x8] sm:$0xff] }
0x1496   :  { %2019 = vrot.lane.b32.xlu1 %v2008_v29, %s5677_s20  ;;  %v2011_v36 = vadd.f32 %v2008_v29, %v1935_v34  ;;  %5305 = vpow2.f32 %v4261_v35  ;;  %v2236_v29 = vld [vmem:[#allocation20] sm:$0xff]  ;;  %v2142_v35 = vld [vmem:[%s6665_s10 + $0x18] sm:$0xff] }
0x1497   :  { %v6292_v33 = vpack.c.bf16 %v2237_v30, %v2236_v29 }
0x1498   :  { %v4263_v37 = vmul.f32 -1.442695, %v2011_v36  ;;  %v2238_v36 = vld [vmem:[#allocation20 + $0x10] sm:$0xff] }
0x149a   :  { %5307 = vpow2.f32 %v4263_v37  ;;  %v2239_v37 = vld [vmem:[#allocation20 + $0x18] sm:$0xff] }
0x14a0   :  { %v5306_v38 = vpop.eup %5305 }
0x14a1   :  { %v1908_v39 = vadd.f32 1.0, %v5306_v38 }
0x14a3   :  { %5309 = vrcp.f32 %v1908_v39 }
0x14a4   :  { %v5308_v28 = vpop.eup %5307 }
0x14a5   :  { %v2015_v40 = vadd.f32 1.0, %v5308_v28  ;;  %v6306_v28 = vpack.c.bf16 %v2239_v37, %v2238_v36 }
0x14a7   :  { %5311 = vrcp.f32 %v2015_v40  ;;  %v4264_v40 = vld [vmem:[#allocation17] ss:$0 sm:$0xff] }
0x14ad   :  { %v6213_v41 = vpop.eup %5309 }
0x14ae   :  { %v1922_v9 = vsub.f32 1.0, %v6213_v41  ;;  %v1928_v15 = vmul.f32 %v6213_v41, %v6195_v14 }
0x14b1   :  { %v6217_v43 = vpop.eup %5311 }
0x14b2   :  { %v2029_v20 = vsub.f32 1.0, %v6217_v43  ;;  %v2035_v23 = vmul.f32 %v6217_v43, %v6200_v21  ;;  %v2140_v21 = vld [vmem:[%s6665_s10 + $0x8] sm:$0xff] }
0x1504   :  { %v1913_v32 = vpop.permute.xlu0 %1912 }
0x1505   :  { %v1915_v42 = vmul.f32 %v6213_v41, %v1913_v32  ;;  %v4267_v41 = vld [vmem:[%s6670_s15] ss:$0 sm:$0xff] }
0x1507   :  { %1917 = vrot.lane.b32.xlu0 %v1915_v42, %s5677_s20 }
0x1508   :  { %v2020_v44 = vpop.permute.xlu1 %2019 }
0x1509   :  { %v2022_v45 = vmul.f32 %v6217_v43, %v2020_v44 }
0x150b   :  { %2024 = vrot.lane.b32.xlu1 %v2022_v45, %s5677_s20 }
0x1579   :  { %v1918_v6 = vpop.permute.xlu0 %1917 }
0x157a   :  { %v1920_v46 = vadd.f32 %v1918_v6, %v1831_v31  ;;  %v6290_v31 = vpack.c.bf16 %v2140_v21, %v2139_v27 }
0x157c   :  { %5313 = vtanh.f32 %v1920_v46 }
0x157d   :  { %v2025_v47 = vpop.permute.xlu1 %2024 }
0x157e   :  { %v2027_v48 = vadd.f32 %v2025_v47, %v1935_v34  ;;  %v2141_v34 = vld [vmem:[%s6665_s10 + $0x10] sm:$0xff] }
0x157f   :  { %v6304_v39 = vpack.c.bf16 %v2142_v35, %v2141_v34 }
0x1580   :  { %5315 = vtanh.f32 %v2027_v48  ;;  %v6339_v48 = vld [vmem:[#allocation18] ss:$0 sm:$0xff] }
0x1586   :  { %v5314_v49 = vpop.eup %5313 }
0x1587   :  { %1924 = vrot.lane.b32.xlu0 %v5314_v49, %s5678_s27  ;;  %v6344_v49 = vld [vmem:[%s6671_s16] ss:$0 sm:$0xff] }
0x158a   :  { %v5316_v50 = vpop.eup %5315 }
0x158b   :  { %2031 = vrot.lane.b32.xlu1 %v5316_v50, %s5678_s27 }
0x15f9   :  { %v1925_v11 = vpop.permute.xlu0 %1924 }
0x15fa   :  { %v1927_v18 = vmul.f32 %v1925_v11, %v1922_v9 }
0x15fc   :  { %v1929_v19 = vadd.f32 %v1928_v15, %v1927_v18 }
0x15fd   :  { %v2032_v22 = vpop.permute.xlu1 %2031 }
0x15fe   :  { %v2034_v24 = vmul.f32 %v2032_v22, %v2029_v20  ;;  %1931 = vrot.lane.b32.xlu0 %v1929_v19, %s5678_s27 }
0x1600   :  { %v2036_v25 = vadd.f32 %v2035_v23, %v2034_v24 }
0x1602   :  { %2037 = vst.msk [vmem:[#allocation2] sm:$0x3] %vm587_vm4, %v2036_v25 }
0x1609   :  { %v2038_v26 = vld [vmem:[#allocation2] sm:$0xff] }
0x160a   :  { %4713 = vmatprep.mubr.msk.f32.mxu0 %vm2055_vm7, %v2038_v26  ;;  %4732 = vmatprep.mubr.msk.f32.mxu1 %vm2055_vm7, %v2038_v26 }
0x1670   :  { %v1932_v14 = vpop.permute.xlu0 %1931 }
0x1671   :  { %1934 = vst.msk [vmem:[#allocation2 + $0xe] sm:$0x3] %vm482_vm5, %v1932_v14 }
0x1678   :  { %v2039_v38 = vld [vmem:[#allocation2 + $0x8] sm:$0xff] }
0x1679   :  { %4714 = vmatmul.mubr.msk.f32.vlgmr.msra.gmra.mrb[18].mxu0 %vm2055_vm7, %v2039_v38  ;;  %4733 = vmatmul.mubr.msk.f32.vlgmr.msra.gmra.mrb[18].mxu1 %vm2055_vm7, %v2039_v38 }
0x167a   :  { %5079 = vmatpush3.bf16.msra.mxu0 %v6290_v31  ;;  %5085 = vmatpush3.bf16.msra.mxu1 %v6292_v33 }
0x167b   :  { %5080 = vmatprep.subr.bf16.mxu0 %v5674_v10  ;;  %5086 = vmatprep.subr.bf16.mxu1 %v5674_v10 }
0x167c   :  { %4743 = vmatprep.mubr.msk.f32.mxu0 %vm5675_vm2, %v5676_v16  ;;  %4754 = vmatprep.mubr.msk.f32.mxu1 %vm5675_vm2, %v5676_v16 }
0x167e   :  { %5082 = vmatpush3.bf16.msra.mxu0 %v6304_v39  ;;  %5088 = vmatpush3.bf16.msra.mxu1 %v6306_v28 }
0x167f   :  { %5089 = vmatprep.subr.bf16.mxu0 %v5674_v10  ;;  %5095 = vmatprep.subr.bf16.mxu1 %v5674_v10 }
0x1681   :  { %4744 = vmatmul.mubr.f32.vlgmr.msra.gmra.mrb[20].mxu0 %v5676_v16  ;;  %4755 = vmatmul.mubr.f32.vlgmr.msra.gmra.mrb[20].mxu1 %v5676_v16 }
0x1682   :  { %5091 = vmatpush3.bf16.msra.mxu0 %v6290_v31  ;;  %5097 = vmatpush3.bf16.msra.mxu1 %v6292_v33 }
0x1683   :  { %5092 = vmatprep.subr.bf16.mxu0 %v5674_v10  ;;  %5098 = vmatprep.subr.bf16.mxu1 %v5674_v10 }
0x1684   :  { %4776 = vmatprep.mubr.msk.f32.mxu1 %vm5675_vm2, %v5676_v16  ;;  %4765 = vmatprep.mubr.msk.f32.mxu0 %vm5675_vm2, %v5676_v16 }
0x1686   :  { %5094 = vmatpush3.bf16.msra.mxu0 %v6304_v39  ;;  %5100 = vmatpush3.bf16.msra.mxu1 %v6306_v28 }
0x1687   :  { %5101 = vmatprep.subr.bf16.mxu0 %v5674_v10  ;;  %5107 = vmatprep.subr.bf16.mxu1 %v5674_v10 }
0x174c   :  { %v4715_v32 = vpop.f32.mrb[18].mxu0  ;;  %v4734_v42 = vpop.f32.mrb[18].mxu1 }
0x174d   :  { %v2134_v43 = vadd.f32 %v4715_v32, %v4264_v40  ;;  %v2231_v44 = vadd.f32 %v4734_v42, %v4267_v41  ;;  %v2128_v45 = vpop.f32.mrb[19].mxu0  ;;  %v2225_v6 = vpop.f32.mrb[19].mxu1 }
0x174e   :  { %v2129_v46 = vadd.f32 %v4264_v40, %v2128_v45  ;;  %v2226_v47 = vadd.f32 %v4267_v41, %v2225_v6 }
0x174f   :  { %2138 = vst.msk [vmem:[#allocation4 + $0x8] sm:$0xff] %vm270_vm3, %v2134_v43  ;;  %2235 = vst.msk [vmem:[#allocation5 + $0x8] sm:$0xff] %vm270_vm3, %v2231_v44 }
0x1750   :  { %2137 = vst.msk [vmem:[#allocation4] sm:$0xff] %vm270_vm3, %v2129_v46  ;;  %2234 = vst.msk [vmem:[#allocation5] sm:$0xff] %vm270_vm3, %v2226_v47 }
0x1754   :  { %v2314_v50 = vpop.f32.mrb[20].mxu0  ;;  %v2422_v12 = vpop.f32.mrb[20].mxu1 }
0x1755   :  { %v2315_v13 = vadd.f32 %v6339_v48, %v2314_v50  ;;  %v2423_v51 = vadd.f32 %v6344_v49, %v2422_v12  ;;  %v4745_v52 = vpop.f32.mrb[21].mxu0  ;;  %v4756_v53 = vpop.f32.mrb[21].mxu1 }
0x1756   :  { %v2349_v54 = vld [vmem:[#allocation5 + $0xe] sm:$0x3]  ;;  %v2557_v40 = vld [vmem:[#allocation5 + $0xc] sm:$0x3] }
0x1757   :  { %2434 = vrot.lane.b32.xlu0 %v2423_v51, %s5677_s20  ;;  %2326 = vrot.lane.b32.xlu1 %v2315_v13, %s5677_s20  ;;  %v2241_v17 = vld [vmem:[#allocation4] sm:$0x3]  ;;  %v2426_v55 = vadd.f32 %v2423_v51, %v2349_v54  ;;  %v2453_v41 = vld [vmem:[#allocation4 + $0x2] sm:$0x3] }
0x1758   :  { %v2318_v56 = vadd.f32 %v2315_v13, %v2241_v17 }
0x1759   :  { %v4273_v57 = vmul.f32 -1.442695, %v2426_v55 }
0x175a   :  { %v4271_v58 = vmul.f32 -1.442695, %v2318_v56 }
0x175b   :  { %5317 = vpow2.f32 %v4273_v57 }
0x175c   :  { %5319 = vpow2.f32 %v4271_v58 }
0x1765   :  { %v5318_v59 = vpop.eup %5317 }
0x1766   :  { %v5320_v60 = vpop.eup %5319  ;;  %v2430_v61 = vadd.f32 1.0, %v5318_v59 }
0x1767   :  { %v2322_v62 = vadd.f32 1.0, %v5320_v60 }
0x1768   :  { %5321 = vrcp.f32 %v2430_v61 }
0x1769   :  { %5323 = vrcp.f32 %v2322_v62 }
0x1772   :  { %v5322_v63 = vpop.eup %5321 }
0x1773   :  { %v5324_v0 = vpop.eup %5323  ;;  %v2444_v18 = vsub.f32 1.0, %v5322_v63  ;;  %v2450_v22 = vmul.f32 0.0, %v5322_v63 }
0x1774   :  { %v2336_v20 = vsub.f32 1.0, %v5324_v0  ;;  %v2342_v25 = vmul.f32 0.0, %v5324_v0 }
0x17c9   :  { %v2435_v1 = vpop.permute.xlu0 %2434  ;;  %v2327_v2 = vpop.permute.xlu1 %2326 }
0x17ca   :  { %v2437_v3 = vmul.f32 %v5322_v63, %v2435_v1  ;;  %v2329_v4 = vmul.f32 %v5324_v0, %v2327_v2 }
0x17cc   :  { %2439 = vrot.lane.b32.xlu0 %v2437_v3, %s5677_s20  ;;  %2331 = vrot.lane.b32.xlu1 %v2329_v4, %s5677_s20 }
0x183e   :  { %v2440_v5 = vpop.permute.xlu0 %2439  ;;  %v2332_v7 = vpop.permute.xlu1 %2331 }
0x183f   :  { %v2442_v8 = vadd.f32 %v2440_v5, %v2349_v54  ;;  %v2334_v9 = vadd.f32 %v2332_v7, %v2241_v17 }
0x1841   :  { %5325 = vtanh.f32 %v2442_v8 }
0x1842   :  { %5327 = vtanh.f32 %v2334_v9 }
0x184b   :  { %v5326_v11 = vpop.eup %5325 }
0x184c   :  { %v5328_v15 = vpop.eup %5327  ;;  %2446 = vrot.lane.b32.xlu0 %v5326_v11, %s5678_s27 }
0x184d   :  { %2338 = vrot.lane.b32.xlu1 %v5328_v15, %s5678_s27 }
0x18be   :  { %v2447_v19 = vpop.permute.xlu0 %2446 }
0x18bf   :  { %v2449_v23 = vmul.f32 %v2447_v19, %v2444_v18  ;;  %v2339_v24 = vpop.permute.xlu1 %2338 }
0x18c0   :  { %v2341_v26 = vmul.f32 %v2339_v24, %v2336_v20  ;;  %v2764_v20 = vld [vmem:[#allocation5 + $0xa] sm:$0x3] }
0x18c1   :  { %v6354_v14 = vadd.f32 %v2450_v22, %v2449_v23  ;;  %v2660_v22 = vld [vmem:[#allocation4 + $0x4] sm:$0x3] }
0x18c2   :  { %v6356_v27 = vadd.f32 %v2342_v25, %v2341_v26 }
0x18c3   :  { %2452 = vst.msk [vmem:[#allocation2 + $0xe] sm:$0x3] %vm587_vm4, %v6354_v14  ;;  %2559 = vrot.lane.b32.xlu0 %v6354_v14, %s5678_s27 }
0x18c4   :  { %2345 = vrot.lane.b32.xlu1 %v6356_v27, %s5678_s27 }
0x1935   :  { %v2560_v21 = vpop.permute.xlu0 %2559 }
0x1936   :  { %v2346_v29 = vpop.permute.xlu1 %2345  ;;  %4777 = vmatmul.mubr.msk.f32.vlgmr.msra.gmra.mrb[22].mxu1 %vm378_vm6, %v2560_v21 }
0x1937   :  { %2348 = vst.msk [vmem:[#allocation2] sm:$0x3] %vm482_vm5, %v2346_v29  ;;  %4766 = vmatmul.mubr.msk.f32.vlgmr.msra.gmra.mrb[22].mxu0 %vm378_vm6, %v2346_v29  ;;  %5109 = vmatpush3.bf16.msra.mxu1 %v6292_v33 }
0x1938   :  { %5103 = vmatpush3.bf16.msra.mxu0 %v6290_v31  ;;  %5110 = vmatprep.subr.bf16.mxu1 %v5674_v10 }
0x1939   :  { %5104 = vmatprep.subr.bf16.mxu0 %v5674_v10  ;;  %4798 = vmatprep.mubr.msk.f32.mxu1 %vm5675_vm2, %v5676_v16 }
0x193a   :  { %4787 = vmatprep.mubr.msk.f32.mxu0 %vm5675_vm2, %v5676_v16 }
0x193b   :  { %5112 = vmatpush3.bf16.msra.mxu1 %v6306_v28 }
0x193c   :  { %5106 = vmatpush3.bf16.msra.mxu0 %v6304_v39  ;;  %5119 = vmatprep.subr.bf16.mxu1 %v5674_v10 }
0x193d   :  { %5113 = vmatprep.subr.bf16.mxu0 %v5674_v10 }
0x1a09   :  { %v2629_v30 = vpop.f32.mrb[22].mxu1 }
0x1a0a   :  { %v2522_v34 = vpop.f32.mrb[22].mxu0  ;;  %v2630_v35 = vadd.f32 %v6344_v49, %v2629_v30  ;;  %v4778_v36 = vpop.f32.mrb[23].mxu1 }
0x1a0b   :  { %v2523_v37 = vadd.f32 %v6339_v48, %v2522_v34  ;;  %v4767_v38 = vpop.f32.mrb[23].mxu0 }
0x1a0c   :  { %2641 = vrot.lane.b32.xlu0 %v2630_v35, %s5677_s20  ;;  %v2633_v32 = vadd.f32 %v2630_v35, %v2557_v40 }
0x1a0d   :  { %2534 = vrot.lane.b32.xlu1 %v2523_v37, %s5677_s20  ;;  %v2526_v42 = vadd.f32 %v2523_v37, %v2453_v41 }
0x1a0e   :  { %v4277_v43 = vmul.f32 -1.442695, %v2633_v32 }
0x1a0f   :  { %v4275_v44 = vmul.f32 -1.442695, %v2526_v42 }
0x1a10   :  { %5329 = vpow2.f32 %v4277_v43 }
0x1a11   :  { %5331 = vpow2.f32 %v4275_v44 }
0x1a1a   :  { %v5330_v45 = vpop.eup %5329 }
0x1a1b   :  { %v5332_v6 = vpop.eup %5331  ;;  %v2637_v46 = vadd.f32 1.0, %v5330_v45 }
0x1a1c   :  { %v2530_v47 = vadd.f32 1.0, %v5332_v6 }
0x1a1d   :  { %5333 = vrcp.f32 %v2637_v46 }
0x1a1e   :  { %5335 = vrcp.f32 %v2530_v47 }
0x1a27   :  { %v5334_v50 = vpop.eup %5333 }
0x1a28   :  { %v5336_v13 = vpop.eup %5335  ;;  %v2651_v59 = vsub.f32 1.0, %v5334_v50  ;;  %v2657_v62 = vmul.f32 %v5334_v50, %v6354_v14 }
0x1a29   :  { %v2544_v61 = vsub.f32 1.0, %v5336_v13  ;;  %v2550_v1 = vmul.f32 %v5336_v13, %v6356_v27 }
0x1a7e   :  { %v2642_v12 = vpop.permute.xlu0 %2641 }
0x1a7f   :  { %v2644_v51 = vmul.f32 %v5334_v50, %v2642_v12  ;;  %v2535_v52 = vpop.permute.xlu1 %2534 }
0x1a80   :  { %v2537_v53 = vmul.f32 %v5336_v13, %v2535_v52 }
0x1a81   :  { %2646 = vrot.lane.b32.xlu0 %v2644_v51, %s5677_s20 }
0x1a82   :  { %2539 = vrot.lane.b32.xlu1 %v2537_v53, %s5677_s20 }
0x1af3   :  { %v2647_v54 = vpop.permute.xlu0 %2646 }
0x1af4   :  { %v2649_v17 = vadd.f32 %v2647_v54, %v2557_v40  ;;  %v2540_v55 = vpop.permute.xlu1 %2539 }
0x1af5   :  { %v2542_v56 = vadd.f32 %v2540_v55, %v2453_v41 }
0x1af6   :  { %5337 = vtanh.f32 %v2649_v17 }
0x1af7   :  { %5339 = vtanh.f32 %v2542_v56 }
0x1b00   :  { %v5338_v57 = vpop.eup %5337 }
0x1b01   :  { %v5340_v58 = vpop.eup %5339  ;;  %2653 = vrot.lane.b32.xlu0 %v5338_v57, %s5678_s27 }
0x1b02   :  { %2546 = vrot.lane.b32.xlu1 %v5340_v58, %s5678_s27 }
0x1b73   :  { %v2654_v60 = vpop.permute.xlu0 %2653 }
0x1b74   :  { %v2656_v63 = vmul.f32 %v2654_v60, %v2651_v59  ;;  %v2547_v0 = vpop.permute.xlu1 %2546 }
0x1b75   :  { %v2549_v2 = vmul.f32 %v2547_v0, %v2544_v61  ;;  %v2971_v61 = vld [vmem:[#allocation5 + $0x8] sm:$0x3] }
0x1b76   :  { %v6389_v3 = vadd.f32 %v2657_v62, %v2656_v63  ;;  %v2867_v62 = vld [vmem:[#allocation4 + $0x6] sm:$0x3] }
0x1b77   :  { %v6391_v4 = vadd.f32 %v2550_v1, %v2549_v2 }
0x1b78   :  { %2659 = vst.msk [vmem:[#allocation2 + $0xc] sm:$0x3] %vm587_vm4, %v6389_v3  ;;  %2766 = vrot.lane.b32.xlu0 %v6389_v3, %s5678_s27 }
0x1b79   :  { %2553 = vrot.lane.b32.xlu1 %v6391_v4, %s5678_s27 }
0x1bea   :  { %v2767_v5 = vpop.permute.xlu0 %2766 }
0x1beb   :  { %v2554_v7 = vpop.permute.xlu1 %2553  ;;  %4799 = vmatmul.mubr.msk.f32.vlgmr.msra.gmra.mrb[24].mxu1 %vm378_vm6, %v2767_v5 }
0x1bec   :  { %2556 = vst.msk [vmem:[#allocation2 + $0x2] sm:$0x3] %vm482_vm5, %v2554_v7  ;;  %4788 = vmatmul.mubr.msk.f32.vlgmr.msra.gmra.mrb[24].mxu0 %vm378_vm6, %v2554_v7  ;;  %5121 = vmatpush3.bf16.msra.mxu1 %v6292_v33 }
0x1bed   :  { %5115 = vmatpush3.bf16.msra.mxu0 %v6290_v31  ;;  %5122 = vmatprep.subr.bf16.mxu1 %v5674_v10 }
0x1bee   :  { %5116 = vmatprep.subr.bf16.mxu0 %v5674_v10  ;;  %4820 = vmatprep.mubr.msk.f32.mxu1 %vm5675_vm2, %v5676_v16 }
0x1bef   :  { %4809 = vmatprep.mubr.msk.f32.mxu0 %vm5675_vm2, %v5676_v16 }
0x1bf0   :  { %5124 = vmatpush3.bf16.msra.mxu1 %v6306_v28 }
0x1bf1   :  { %5118 = vmatpush3.bf16.msra.mxu0 %v6304_v39  ;;  %5131 = vmatprep.subr.bf16.mxu1 %v5674_v10 }
0x1bf2   :  { %5125 = vmatprep.subr.bf16.mxu0 %v5674_v10 }
0x1cbe   :  { %v2836_v8 = vpop.f32.mrb[24].mxu1 }
0x1cbf   :  { %v2729_v9 = vpop.f32.mrb[24].mxu0  ;;  %v2837_v11 = vadd.f32 %v6344_v49, %v2836_v8  ;;  %v4800_v15 = vpop.f32.mrb[25].mxu1 }
0x1cc0   :  { %v2730_v18 = vadd.f32 %v6339_v48, %v2729_v9  ;;  %v4789_v19 = vpop.f32.mrb[25].mxu0 }
0x1cc1   :  { %2848 = vrot.lane.b32.xlu0 %v2837_v11, %s5677_s20  ;;  %v2840_v23 = vadd.f32 %v2837_v11, %v2764_v20 }
0x1cc2   :  { %2741 = vrot.lane.b32.xlu1 %v2730_v18, %s5677_s20  ;;  %v2733_v24 = vadd.f32 %v2730_v18, %v2660_v22 }
0x1cc3   :  { %v4281_v25 = vmul.f32 -1.442695, %v2840_v23 }
0x1cc4   :  { %v4279_v26 = vmul.f32 -1.442695, %v2733_v24 }
0x1cc5   :  { %5341 = vpow2.f32 %v4281_v25 }
0x1cc6   :  { %5343 = vpow2.f32 %v4279_v26 }
0x1ccf   :  { %v5342_v14 = vpop.eup %5341 }
0x1cd0   :  { %v5344_v27 = vpop.eup %5343  ;;  %v2844_v21 = vadd.f32 1.0, %v5342_v14 }
0x1cd1   :  { %v2737_v29 = vadd.f32 1.0, %v5344_v27 }
0x1cd2   :  { %5345 = vrcp.f32 %v2844_v21 }
0x1cd3   :  { %5347 = vrcp.f32 %v2737_v29 }
0x1cdc   :  { %v5346_v30 = vpop.eup %5345 }
0x1cdd   :  { %v5348_v35 = vpop.eup %5347  ;;  %v2858_v45 = vsub.f32 1.0, %v5346_v30  ;;  %v2864_v47 = vmul.f32 %v5346_v30, %v6389_v3 }
0x1cde   :  { %v2751_v46 = vsub.f32 1.0, %v5348_v35  ;;  %v2757_v13 = vmul.f32 %v5348_v35, %v6391_v4 }
0x1d33   :  { %v2849_v34 = vpop.permute.xlu0 %2848 }
0x1d34   :  { %v2851_v36 = vmul.f32 %v5346_v30, %v2849_v34  ;;  %v2742_v37 = vpop.permute.xlu1 %2741 }
0x1d35   :  { %v2744_v38 = vmul.f32 %v5348_v35, %v2742_v37 }
0x1d36   :  { %2853 = vrot.lane.b32.xlu0 %v2851_v36, %s5677_s20 }
0x1d37   :  { %2746 = vrot.lane.b32.xlu1 %v2744_v38, %s5677_s20 }
0x1da8   :  { %v2854_v40 = vpop.permute.xlu0 %2853 }
0x1da9   :  { %v2856_v41 = vadd.f32 %v2854_v40, %v2764_v20  ;;  %v2747_v32 = vpop.permute.xlu1 %2746 }
0x1daa   :  { %v2749_v42 = vadd.f32 %v2747_v32, %v2660_v22 }
0x1dab   :  { %5349 = vtanh.f32 %v2856_v41 }
0x1dac   :  { %5351 = vtanh.f32 %v2749_v42 }
0x1db5   :  { %v5350_v43 = vpop.eup %5349 }
0x1db6   :  { %v5352_v44 = vpop.eup %5351  ;;  %2860 = vrot.lane.b32.xlu0 %v5350_v43, %s5678_s27 }
0x1db7   :  { %2753 = vrot.lane.b32.xlu1 %v5352_v44, %s5678_s27 }
0x1e28   :  { %v2861_v6 = vpop.permute.xlu0 %2860 }
0x1e29   :  { %v2863_v50 = vmul.f32 %v2861_v6, %v2858_v45  ;;  %v2754_v12 = vpop.permute.xlu1 %2753 }
0x1e2a   :  { %v2756_v51 = vmul.f32 %v2754_v12, %v2751_v46  ;;  %v3178_v46 = vld [vmem:[#allocation5 + $0x6] sm:$0x3] }
0x1e2b   :  { %v6424_v52 = vadd.f32 %v2864_v47, %v2863_v50  ;;  %v3074_v47 = vld [vmem:[#allocation4 + $0x8] sm:$0x3] }
0x1e2c   :  { %v6426_v53 = vadd.f32 %v2757_v13, %v2756_v51 }
0x1e2d   :  { %2866 = vst.msk [vmem:[#allocation2 + $0xa] sm:$0x3] %vm587_vm4, %v6424_v52  ;;  %2973 = vrot.lane.b32.xlu0 %v6424_v52, %s5678_s27 }
0x1e2e   :  { %2760 = vrot.lane.b32.xlu1 %v6426_v53, %s5678_s27 }
0x1e9f   :  { %v2974_v54 = vpop.permute.xlu0 %2973 }
0x1ea0   :  { %v2761_v17 = vpop.permute.xlu1 %2760  ;;  %4821 = vmatmul.mubr.msk.f32.vlgmr.msra.gmra.mrb[26].mxu1 %vm378_vm6, %v2974_v54 }
0x1ea1   :  { %2763 = vst.msk [vmem:[#allocation2 + $0x4] sm:$0x3] %vm482_vm5, %v2761_v17  ;;  %4810 = vmatmul.mubr.msk.f32.vlgmr.msra.gmra.mrb[26].mxu0 %vm378_vm6, %v2761_v17  ;;  %5133 = vmatpush3.bf16.msra.mxu1 %v6292_v33 }
0x1ea2   :  { %5127 = vmatpush3.bf16.msra.mxu0 %v6290_v31  ;;  %5134 = vmatprep.subr.bf16.mxu1 %v5674_v10 }
0x1ea3   :  { %5128 = vmatprep.subr.bf16.mxu0 %v5674_v10  ;;  %4842 = vmatprep.mubr.msk.f32.mxu1 %vm5675_vm2, %v5676_v16 }
0x1ea4   :  { %4831 = vmatprep.mubr.msk.f32.mxu0 %vm5675_vm2, %v5676_v16 }
0x1ea5   :  { %5136 = vmatpush3.bf16.msra.mxu1 %v6306_v28 }
0x1ea6   :  { %5130 = vmatpush3.bf16.msra.mxu0 %v6304_v39  ;;  %5143 = vmatprep.subr.bf16.mxu1 %v5674_v10 }
0x1ea7   :  { %5137 = vmatprep.subr.bf16.mxu0 %v5674_v10 }
0x1f73   :  { %v3043_v55 = vpop.f32.mrb[26].mxu1 }
0x1f74   :  { %v2936_v56 = vpop.f32.mrb[26].mxu0  ;;  %v3044_v57 = vadd.f32 %v6344_v49, %v3043_v55  ;;  %v4822_v58 = vpop.f32.mrb[27].mxu1 }
0x1f75   :  { %v2937_v59 = vadd.f32 %v6339_v48, %v2936_v56  ;;  %v4811_v60 = vpop.f32.mrb[27].mxu0 }
0x1f76   :  { %3055 = vrot.lane.b32.xlu0 %v3044_v57, %s5677_s20  ;;  %v3047_v63 = vadd.f32 %v3044_v57, %v2971_v61 }
0x1f77   :  { %2948 = vrot.lane.b32.xlu1 %v2937_v59, %s5677_s20  ;;  %v2940_v0 = vadd.f32 %v2937_v59, %v2867_v62 }
0x1f78   :  { %v4285_v1 = vmul.f32 -1.442695, %v3047_v63 }
0x1f79   :  { %v4283_v2 = vmul.f32 -1.442695, %v2940_v0 }
0x1f7a   :  { %5353 = vpow2.f32 %v4285_v1 }
0x1f7b   :  { %5355 = vpow2.f32 %v4283_v2 }
0x1f84   :  { %v5354_v3 = vpop.eup %5353 }
0x1f85   :  { %v5356_v4 = vpop.eup %5355  ;;  %v3051_v5 = vadd.f32 1.0, %v5354_v3 }
0x1f86   :  { %v2944_v7 = vadd.f32 1.0, %v5356_v4 }
0x1f87   :  { %5357 = vrcp.f32 %v3051_v5 }
0x1f88   :  { %5359 = vrcp.f32 %v2944_v7 }
0x1f91   :  { %v5358_v8 = vpop.eup %5357 }
0x1f92   :  { %v5360_v11 = vpop.eup %5359  ;;  %v3065_v14 = vsub.f32 1.0, %v5358_v8  ;;  %v3071_v29 = vmul.f32 %v5358_v8, %v6424_v52 }
0x1f93   :  { %v2958_v21 = vsub.f32 1.0, %v5360_v11  ;;  %v2964_v35 = vmul.f32 %v5360_v11, %v6426_v53 }
0x1fe8   :  { %v3056_v9 = vpop.permute.xlu0 %3055 }
0x1fe9   :  { %v3058_v15 = vmul.f32 %v5358_v8, %v3056_v9  ;;  %v2949_v18 = vpop.permute.xlu1 %2948 }
0x1fea   :  { %v2951_v19 = vmul.f32 %v5360_v11, %v2949_v18 }
0x1feb   :  { %3060 = vrot.lane.b32.xlu0 %v3058_v15, %s5677_s20 }
0x1fec   :  { %2953 = vrot.lane.b32.xlu1 %v2951_v19, %s5677_s20 }
0x205d   :  { %v3061_v20 = vpop.permute.xlu0 %3060 }
0x205e   :  { %v3063_v22 = vadd.f32 %v3061_v20, %v2971_v61  ;;  %v2954_v23 = vpop.permute.xlu1 %2953 }
0x205f   :  { %v2956_v24 = vadd.f32 %v2954_v23, %v2867_v62 }
0x2060   :  { %5361 = vtanh.f32 %v3063_v22 }
0x2061   :  { %5363 = vtanh.f32 %v2956_v24 }
0x206a   :  { %v5362_v25 = vpop.eup %5361 }
0x206b   :  { %v5364_v26 = vpop.eup %5363  ;;  %3067 = vrot.lane.b32.xlu0 %v5362_v25, %s5678_s27 }
0x206c   :  { %2960 = vrot.lane.b32.xlu1 %v5364_v26, %s5678_s27 }
0x20dd   :  { %v3068_v27 = vpop.permute.xlu0 %3067 }
0x20de   :  { %v3070_v30 = vmul.f32 %v3068_v27, %v3065_v14  ;;  %v2961_v34 = vpop.permute.xlu1 %2960 }
0x20df   :  { %v2963_v36 = vmul.f32 %v2961_v34, %v2958_v21  ;;  %v3385_v21 = vld [vmem:[#allocation5 + $0x4] sm:$0x3] }
0x20e0   :  { %v6459_v37 = vadd.f32 %v3071_v29, %v3070_v30  ;;  %v3281_v29 = vld [vmem:[#allocation4 + $0xa] sm:$0x3] }
0x20e1   :  { %v6461_v38 = vadd.f32 %v2964_v35, %v2963_v36 }
0x20e2   :  { %3073 = vst.msk [vmem:[#allocation2 + $0x8] sm:$0x3] %vm587_vm4, %v6459_v37  ;;  %3180 = vrot.lane.b32.xlu0 %v6459_v37, %s5678_s27 }
0x20e3   :  { %2967 = vrot.lane.b32.xlu1 %v6461_v38, %s5678_s27 }
0x2154   :  { %v3181_v40 = vpop.permute.xlu0 %3180 }
0x2155   :  { %v2968_v41 = vpop.permute.xlu1 %2967  ;;  %4843 = vmatmul.mubr.msk.f32.vlgmr.msra.gmra.mrb[28].mxu1 %vm378_vm6, %v3181_v40 }
0x2156   :  { %2970 = vst.msk [vmem:[#allocation2 + $0x6] sm:$0x3] %vm482_vm5, %v2968_v41  ;;  %4832 = vmatmul.mubr.msk.f32.vlgmr.msra.gmra.mrb[28].mxu0 %vm378_vm6, %v2968_v41  ;;  %5145 = vmatpush3.bf16.msra.mxu1 %v6292_v33 }
0x2157   :  { %5139 = vmatpush3.bf16.msra.mxu0 %v6290_v31  ;;  %5146 = vmatprep.subr.bf16.mxu1 %v5674_v10 }
0x2158   :  { %5140 = vmatprep.subr.bf16.mxu0 %v5674_v10  ;;  %4864 = vmatprep.mubr.msk.f32.mxu1 %vm5675_vm2, %v5676_v16 }
0x2159   :  { %4853 = vmatprep.mubr.msk.f32.mxu0 %vm5675_vm2, %v5676_v16 }
0x215a   :  { %5148 = vmatpush3.bf16.msra.mxu1 %v6306_v28 }
0x215b   :  { %5142 = vmatpush3.bf16.msra.mxu0 %v6304_v39  ;;  %5155 = vmatprep.subr.bf16.mxu1 %v5674_v10 }
0x215c   :  { %5149 = vmatprep.subr.bf16.mxu0 %v5674_v10 }
0x2228   :  { %v3250_v32 = vpop.f32.mrb[28].mxu1 }
0x2229   :  { %v3143_v42 = vpop.f32.mrb[28].mxu0  ;;  %v3251_v43 = vadd.f32 %v6344_v49, %v3250_v32  ;;  %v4844_v44 = vpop.f32.mrb[29].mxu1 }
0x222a   :  { %v3144_v45 = vadd.f32 %v6339_v48, %v3143_v42  ;;  %v4833_v6 = vpop.f32.mrb[29].mxu0 }
0x222b   :  { %3262 = vrot.lane.b32.xlu0 %v3251_v43, %s5677_s20  ;;  %v3254_v50 = vadd.f32 %v3251_v43, %v3178_v46 }
0x222c   :  { %3155 = vrot.lane.b32.xlu1 %v3144_v45, %s5677_s20  ;;  %v3147_v12 = vadd.f32 %v3144_v45, %v3074_v47 }
0x222d   :  { %v4289_v13 = vmul.f32 -1.442695, %v3254_v50 }
0x222e   :  { %v4287_v51 = vmul.f32 -1.442695, %v3147_v12 }
0x222f   :  { %5365 = vpow2.f32 %v4289_v13 }
0x2230   :  { %5367 = vpow2.f32 %v4287_v51 }
0x2239   :  { %v5366_v52 = vpop.eup %5365 }
0x223a   :  { %v5368_v53 = vpop.eup %5367  ;;  %v3258_v54 = vadd.f32 1.0, %v5366_v52 }
0x223b   :  { %v3151_v17 = vadd.f32 1.0, %v5368_v53 }
0x223c   :  { %5369 = vrcp.f32 %v3258_v54 }
0x223d   :  { %5371 = vrcp.f32 %v3151_v17 }
0x2246   :  { %v5370_v55 = vpop.eup %5369 }
0x2247   :  { %v5372_v57 = vpop.eup %5371  ;;  %v3272_v3 = vsub.f32 1.0, %v5370_v55  ;;  %v3278_v7 = vmul.f32 %v5370_v55, %v6459_v37 }
0x2248   :  { %v3165_v5 = vsub.f32 1.0, %v5372_v57  ;;  %v3171_v11 = vmul.f32 %v5372_v57, %v6461_v38 }
0x229d   :  { %v3263_v56 = vpop.permute.xlu0 %3262 }
0x229e   :  { %v3265_v58 = vmul.f32 %v5370_v55, %v3263_v56  ;;  %v3156_v59 = vpop.permute.xlu1 %3155 }
0x229f   :  { %v3158_v60 = vmul.f32 %v5372_v57, %v3156_v59 }
0x22a0   :  { %3267 = vrot.lane.b32.xlu0 %v3265_v58, %s5677_s20 }
0x22a1   :  { %3160 = vrot.lane.b32.xlu1 %v3158_v60, %s5677_s20 }
0x2312   :  { %v3268_v61 = vpop.permute.xlu0 %3267 }
0x2313   :  { %v3270_v62 = vadd.f32 %v3268_v61, %v3178_v46  ;;  %v3161_v63 = vpop.permute.xlu1 %3160 }
0x2314   :  { %v3163_v0 = vadd.f32 %v3161_v63, %v3074_v47 }
0x2315   :  { %5373 = vtanh.f32 %v3270_v62 }
0x2316   :  { %5375 = vtanh.f32 %v3163_v0 }
0x231f   :  { %v5374_v1 = vpop.eup %5373 }
0x2320   :  { %v5376_v2 = vpop.eup %5375  ;;  %3274 = vrot.lane.b32.xlu0 %v5374_v1, %s5678_s27 }
0x2321   :  { %3167 = vrot.lane.b32.xlu1 %v5376_v2, %s5678_s27 }
0x2392   :  { %v3275_v4 = vpop.permute.xlu0 %3274 }
0x2393   :  { %v3277_v8 = vmul.f32 %v3275_v4, %v3272_v3  ;;  %v3168_v9 = vpop.permute.xlu1 %3167  ;;  %v3592_v3 = vld [vmem:[#allocation5 + $0x2] sm:$0x3]  ;;  %v3488_v4 = vld [vmem:[#allocation4 + $0xc] sm:$0x3] }
0x2394   :  { %v3170_v15 = vmul.f32 %v3168_v9, %v3165_v5 }
0x2395   :  { %v6494_v18 = vadd.f32 %v3278_v7, %v3277_v8 }
0x2396   :  { %v6496_v19 = vadd.f32 %v3171_v11, %v3170_v15 }
0x2397   :  { %3280 = vst.msk [vmem:[#allocation2 + $0x6] sm:$0x3] %vm587_vm4, %v6494_v18  ;;  %3387 = vrot.lane.b32.xlu0 %v6494_v18, %s5678_s27 }
0x2398   :  { %3174 = vrot.lane.b32.xlu1 %v6496_v19, %s5678_s27 }
0x2409   :  { %v3388_v20 = vpop.permute.xlu0 %3387 }
0x240a   :  { %v3175_v22 = vpop.permute.xlu1 %3174  ;;  %4865 = vmatmul.mubr.msk.f32.vlgmr.msra.gmra.mrb[30].mxu1 %vm378_vm6, %v3388_v20 }
0x240b   :  { %3177 = vst.msk [vmem:[#allocation2 + $0x8] sm:$0x3] %vm482_vm5, %v3175_v22  ;;  %4854 = vmatmul.mubr.msk.f32.vlgmr.msra.gmra.mrb[30].mxu0 %vm378_vm6, %v3175_v22  ;;  %5157 = vmatpush3.bf16.msra.mxu1 %v6292_v33 }
0x240c   :  { %5151 = vmatpush3.bf16.msra.mxu0 %v6290_v31  ;;  %5158 = vmatprep.subr.bf16.mxu1 %v5674_v10 }
0x240d   :  { %5152 = vmatprep.subr.bf16.mxu0 %v5674_v10  ;;  %4886 = vmatprep.mubr.msk.f32.mxu1 %vm5675_vm2, %v5676_v16 }
0x240e   :  { %4875 = vmatprep.mubr.msk.f32.mxu0 %vm5675_vm2, %v5676_v16 }
0x240f   :  { %5160 = vmatpush3.bf16.msra.mxu1 %v6306_v28 }
0x2410   :  { %5154 = vmatpush3.bf16.msra.mxu0 %v6304_v39  ;;  %5167 = vmatprep.subr.bf16.mxu1 %v5674_v10 }
0x2411   :  { %5161 = vmatprep.subr.bf16.mxu0 %v5674_v10 }
0x24dd   :  { %v3457_v23 = vpop.f32.mrb[30].mxu1 }
0x24de   :  { %v3350_v24 = vpop.f32.mrb[30].mxu0  ;;  %v3458_v25 = vadd.f32 %v6344_v49, %v3457_v23  ;;  %v4866_v26 = vpop.f32.mrb[31].mxu1 }
0x24df   :  { %v3351_v14 = vadd.f32 %v6339_v48, %v3350_v24  ;;  %v4855_v27 = vpop.f32.mrb[31].mxu0 }
0x24e0   :  { %3469 = vrot.lane.b32.xlu0 %v3458_v25, %s5677_s20  ;;  %v3461_v30 = vadd.f32 %v3458_v25, %v3385_v21 }
0x24e1   :  { %3362 = vrot.lane.b32.xlu1 %v3351_v14, %s5677_s20  ;;  %v3354_v34 = vadd.f32 %v3351_v14, %v3281_v29 }
0x24e2   :  { %v4293_v35 = vmul.f32 -1.442695, %v3461_v30 }
0x24e3   :  { %v4291_v36 = vmul.f32 -1.442695, %v3354_v34 }
0x24e4   :  { %5377 = vpow2.f32 %v4293_v35 }
0x24e5   :  { %5379 = vpow2.f32 %v4291_v36 }
0x24ee   :  { %v5378_v37 = vpop.eup %5377 }
0x24ef   :  { %v5380_v38 = vpop.eup %5379  ;;  %v3465_v40 = vadd.f32 1.0, %v5378_v37 }
0x24f0   :  { %v3358_v41 = vadd.f32 1.0, %v5380_v38 }
0x24f1   :  { %5381 = vrcp.f32 %v3465_v40 }
0x24f2   :  { %5383 = vrcp.f32 %v3358_v41 }
0x24fb   :  { %v5382_v32 = vpop.eup %5381 }
0x24fc   :  { %v5384_v43 = vpop.eup %5383  ;;  %v3479_v52 = vsub.f32 1.0, %v5382_v32  ;;  %v3485_v17 = vmul.f32 %v5382_v32, %v6494_v18 }
0x24fd   :  { %v3372_v54 = vsub.f32 1.0, %v5384_v43  ;;  %v3378_v57 = vmul.f32 %v5384_v43, %v6496_v19 }
0x2552   :  { %v3470_v42 = vpop.permute.xlu0 %3469 }
0x2553   :  { %v3472_v44 = vmul.f32 %v5382_v32, %v3470_v42  ;;  %v3363_v45 = vpop.permute.xlu1 %3362 }
0x2554   :  { %v3365_v6 = vmul.f32 %v5384_v43, %v3363_v45 }
0x2555   :  { %3474 = vrot.lane.b32.xlu0 %v3472_v44, %s5677_s20 }
0x2556   :  { %3367 = vrot.lane.b32.xlu1 %v3365_v6, %s5677_s20 }
0x25c7   :  { %v3475_v46 = vpop.permute.xlu0 %3474 }
0x25c8   :  { %v3477_v47 = vadd.f32 %v3475_v46, %v3385_v21  ;;  %v3368_v50 = vpop.permute.xlu1 %3367 }
0x25c9   :  { %v3370_v12 = vadd.f32 %v3368_v50, %v3281_v29 }
0x25ca   :  { %5385 = vtanh.f32 %v3477_v47 }
0x25cb   :  { %5387 = vtanh.f32 %v3370_v12 }
0x25d4   :  { %v5386_v13 = vpop.eup %5385 }
0x25d5   :  { %v5388_v51 = vpop.eup %5387  ;;  %3481 = vrot.lane.b32.xlu0 %v5386_v13, %s5678_s27  ;;  %v3799_v13 = vld [vmem:[#allocation5] sm:$0x3] }
0x25d6   :  { %3374 = vrot.lane.b32.xlu1 %v5388_v51, %s5678_s27  ;;  %v3695_v51 = vld [vmem:[#allocation4 + $0xe] sm:$0x3] }
0x2647   :  { %v3482_v53 = vpop.permute.xlu0 %3481 }
0x2648   :  { %v3484_v55 = vmul.f32 %v3482_v53, %v3479_v52  ;;  %v3375_v56 = vpop.permute.xlu1 %3374 }
0x2649   :  { %v3377_v58 = vmul.f32 %v3375_v56, %v3372_v54 }
0x264a   :  { %v3486_v59 = vadd.f32 %v3485_v17, %v3484_v55 }
0x264b   :  { %v6529_v60 = vadd.f32 %v3378_v57, %v3377_v58 }
0x264c   :  { %3487 = vst.msk [vmem:[#allocation2 + $0x4] sm:$0x3] %vm587_vm4, %v3486_v59  ;;  %3594 = vrot.lane.b32.xlu0 %v3486_v59, %s5678_s27 }
0x264d   :  { %3381 = vrot.lane.b32.xlu1 %v6529_v60, %s5678_s27 }
0x26be   :  { %v3595_v61 = vpop.permute.xlu0 %3594 }
0x26bf   :  { %v3382_v62 = vpop.permute.xlu1 %3381  ;;  %4887 = vmatmul.mubr.msk.f32.vlgmr.msra.gmra.mrb[32].mxu1 %vm378_vm6, %v3595_v61 }
0x26c0   :  { %3384 = vst.msk [vmem:[#allocation2 + $0xa] sm:$0x3] %vm482_vm5, %v3382_v62  ;;  %4876 = vmatmul.mubr.msk.f32.vlgmr.msra.gmra.mrb[32].mxu0 %vm378_vm6, %v3382_v62  ;;  %5169 = vmatpush3.bf16.msra.mxu1 %v6292_v33 }
0x26c1   :  { %5163 = vmatpush3.bf16.msra.mxu0 %v6290_v31  ;;  %5170 = vmatprep.subr.bf16.mxu1 %v5674_v10 }
0x26c2   :  { %5164 = vmatprep.subr.bf16.mxu0 %v5674_v10  ;;  %4908 = vmatprep.mubr.msk.f32.mxu1 %vm5675_vm2, %v5676_v16 }
0x26c3   :  { %4897 = vmatprep.mubr.msk.f32.mxu0 %vm5675_vm2, %v5676_v16 }
0x26c4   :  { %5172 = vmatpush3.bf16.msra.mxu1 %v6306_v28 }
0x26c5   :  { %5166 = vmatpush3.bf16.msra.mxu0 %v6304_v39  ;;  %5189 = vmatprep.subr.bf16.mxu1 %v5674_v10 }
0x2792   :  { %v3664_v63 = vpop.f32.mrb[32].mxu1 }
0x2793   :  { %v3557_v33 = vpop.f32.mrb[32].mxu0  ;;  %v3665_v31 = vadd.f32 %v6344_v49, %v3664_v63  ;;  %v4888_v0 = vpop.f32.mrb[33].mxu1 }
0x2794   :  { %v3558_v1 = vadd.f32 %v6339_v48, %v3557_v33  ;;  %v4877_v2 = vpop.f32.mrb[33].mxu0 }
0x2795   :  { %3676 = vrot.lane.b32.xlu0 %v3665_v31, %s5677_s20  ;;  %v3668_v5 = vadd.f32 %v3665_v31, %v3592_v3  ;;  %v3905_v2 = vld [vmem:[%s6672_s17 + $0x8] sm:$0xff] }
0x2796   :  { %3569 = vrot.lane.b32.xlu1 %v3558_v1, %s5677_s20  ;;  %v3561_v28 = vadd.f32 %v3558_v1, %v3488_v4  ;;  %v3904_v1 = vld [vmem:[%s6672_s17] sm:$0xff] }
0x2797   :  { %v4297_v7 = vmul.f32 -1.442695, %v3668_v5  ;;  %v5173_v5 = vpack.c.bf16 %v3905_v2, %v3904_v1 }
0x2798   :  { %v4295_v39 = vmul.f32 -1.442695, %v3561_v28  ;;  %v3907_v28 = vld [vmem:[%s6672_s17 + $0x18] sm:$0xff] }
0x2799   :  { %5389 = vpow2.f32 %v4297_v7  ;;  %5174 = vmatprep.subr.bf16.mxu0 %v5173_v5 }
0x279a   :  { %5391 = vpow2.f32 %v4295_v39  ;;  %v3908_v39 = vld [vmem:[%s6672_s17 + $0x20] sm:$0xff] }
0x27a3   :  { %v5390_v8 = vpop.eup %5389 }
0x27a4   :  { %v5392_v9 = vpop.eup %5391  ;;  %v3672_v11 = vadd.f32 1.0, %v5390_v8  ;;  %v3909_v8 = vld [vmem:[%s6672_s17 + $0x28] sm:$0xff] }
0x27a5   :  { %v3565_v15 = vadd.f32 1.0, %v5392_v9  ;;  %v3910_v9 = vld [vmem:[%s6672_s17 + $0x30] sm:$0xff] }
0x27a6   :  { %5393 = vrcp.f32 %v3672_v11  ;;  %v5181_v11 = vpack.c.bf16 %v3909_v8, %v3908_v39 }
0x27a7   :  { %5395 = vrcp.f32 %v3565_v15  ;;  %v3911_v15 = vld [vmem:[%s6672_s17 + $0x38] sm:$0xff] }
0x27b0   :  { %v5394_v18 = vpop.eup %5393 }
0x27b1   :  { %v5396_v20 = vpop.eup %5395  ;;  %v3686_v30 = vsub.f32 1.0, %v5394_v18  ;;  %v3692_v36 = vmul.f32 %v5394_v18, %v3486_v59 }
0x27b2   :  { %v3579_v35 = vsub.f32 1.0, %v5396_v20  ;;  %v3585_v40 = vmul.f32 %v5396_v20, %v6529_v60 }
0x2807   :  { %v3677_v19 = vpop.permute.xlu0 %3676 }
0x2808   :  { %v3679_v22 = vmul.f32 %v5394_v18, %v3677_v19  ;;  %v3570_v23 = vpop.permute.xlu1 %3569  ;;  %v5185_v18 = vpack.c.bf16 %v3911_v15, %v3910_v9 }
0x2809   :  { %v3572_v24 = vmul.f32 %v5396_v20, %v3570_v23 }
0x280a   :  { %3681 = vrot.lane.b32.xlu0 %v3679_v22, %s5677_s20 }
0x280b   :  { %3574 = vrot.lane.b32.xlu1 %v3572_v24, %s5677_s20 }
0x287c   :  { %v3682_v25 = vpop.permute.xlu0 %3681 }
0x287d   :  { %v3684_v26 = vadd.f32 %v3682_v25, %v3592_v3  ;;  %v3575_v14 = vpop.permute.xlu1 %3574  ;;  %v3906_v3 = vld [vmem:[%s6672_s17 + $0x10] sm:$0xff] }
0x287e   :  { %v3577_v27 = vadd.f32 %v3575_v14, %v3488_v4  ;;  %v5177_v7 = vpack.c.bf16 %v3907_v28, %v3906_v3 }
0x287f   :  { %5397 = vtanh.f32 %v3684_v26 }
0x2880   :  { %5399 = vtanh.f32 %v3577_v27 }
0x2889   :  { %v5398_v21 = vpop.eup %5397 }
0x288a   :  { %v5400_v29 = vpop.eup %5399  ;;  %3688 = vrot.lane.b32.xlu0 %v5398_v21, %s5678_s27 }
0x288b   :  { %3581 = vrot.lane.b32.xlu1 %v5400_v29, %s5678_s27 }
0x28fc   :  { %v3689_v34 = vpop.permute.xlu0 %3688 }
0x28fd   :  { %v3691_v37 = vmul.f32 %v3689_v34, %v3686_v30  ;;  %v3582_v38 = vpop.permute.xlu1 %3581 }
0x28fe   :  { %v3584_v41 = vmul.f32 %v3582_v38, %v3579_v35  ;;  %v5679_v35 = vmov 0  }
0x28ff   :  { %v6558_v32 = vadd.f32 %v3692_v36, %v3691_v37  ;;  %5220 = vset.pattern.permute.xlu1 %v5679_v35  ;;  %5219 = vset.pattern.permute.xlu0 %v5679_v35 }
0x2900   :  { %v6560_v42 = vadd.f32 %v3585_v40, %v3584_v41 }
0x2901   :  { %3694 = vst.msk [vmem:[#allocation2 + $0x2] sm:$0x3] %vm587_vm4, %v6558_v32  ;;  %3801 = vrot.lane.b32.xlu0 %v6558_v32, %s5678_s27 }
0x2902   :  { %3588 = vrot.lane.b32.xlu1 %v6560_v42, %s5678_s27 }
0x2973   :  { %v3802_v43 = vpop.permute.xlu0 %3801 }
0x2974   :  { %v3589_v44 = vpop.permute.xlu1 %3588  ;;  %4909 = vmatmul.mubr.msk.f32.vlgmr.msra.gmra.mrb[34].mxu1 %vm378_vm6, %v3802_v43 }
0x2975   :  { %3591 = vst.msk [vmem:[#allocation2 + $0xc] sm:$0x3] %vm482_vm5, %v3589_v44  ;;  %4898 = vmatmul.mubr.msk.f32.vlgmr.msra.gmra.mrb[34].mxu0 %vm378_vm6, %v3589_v44  ;;  %4946 = vmatprep.mubr.msk.f32.mxu1 %vm5675_vm2, %v5676_v16 }
0x2976   :  { %5176 = vmatpush3.bf16.msra.mxu0 %v5173_v5 }
0x2977   :  { %5178 = vmatprep.subr.bf16.mxu0 %v5177_v7 }
0x297a   :  { %5180 = vmatpush3.bf16.msra.mxu0 %v5177_v7 }
0x297b   :  { %5182 = vmatprep.subr.bf16.mxu0 %v5181_v11 }
0x297e   :  { %5184 = vmatpush3.bf16.msra.mxu0 %v5181_v11 }
0x297f   :  { %5186 = vmatprep.subr.bf16.mxu0 %v5185_v18 }
0x2982   :  { %5188 = vmatpush3.bf16.msra.mxu0 %v5185_v18 }
0x2a47   :  { %v3871_v45 = vpop.f32.mrb[34].mxu1 }
0x2a48   :  { %v3764_v6 = vpop.f32.mrb[34].mxu0  ;;  %v3872_v46 = vadd.f32 %v6344_v49, %v3871_v45  ;;  %v4910_v47 = vpop.f32.mrb[35].mxu1 }
0x2a49   :  { %v3765_v50 = vadd.f32 %v6339_v48, %v3764_v6  ;;  %v4899_v12 = vpop.f32.mrb[35].mxu0 }
0x2a4a   :  { %3883 = vrot.lane.b32.xlu0 %v3872_v46, %s5677_s20  ;;  %v3875_v52 = vadd.f32 %v3872_v46, %v3799_v13 }
0x2a4b   :  { %3776 = vrot.lane.b32.xlu1 %v3765_v50, %s5677_s20  ;;  %v3768_v53 = vadd.f32 %v3765_v50, %v3695_v51 }
0x2a4c   :  { %v4301_v54 = vmul.f32 -1.442695, %v3875_v52 }
0x2a4d   :  { %v4299_v17 = vmul.f32 -1.442695, %v3768_v53 }
0x2a4e   :  { %5401 = vpow2.f32 %v4301_v54 }
0x2a4f   :  { %5403 = vpow2.f32 %v4299_v17 }
0x2a58   :  { %v5402_v16 = vpop.eup %5401 }
0x2a59   :  { %v5404_v55 = vpop.eup %5403  ;;  %v3879_v56 = vadd.f32 1.0, %v5402_v16 }
0x2a5a   :  { %v3772_v49 = vadd.f32 1.0, %v5404_v55 }
0x2a5b   :  { %5405 = vrcp.f32 %v3879_v56 }
0x2a5c   :  { %5407 = vrcp.f32 %v3772_v49 }
0x2a65   :  { %v5406_v48 = vpop.eup %5405 }
0x2a66   :  { %v5408_v58 = vpop.eup %5407  ;;  %v3893_v19 = vsub.f32 1.0, %v5406_v48  ;;  %v3899_v23 = vmul.f32 %v5406_v48, %v6558_v32 }
0x2a67   :  { %v3786_v22 = vsub.f32 1.0, %v5408_v58  ;;  %v3792_v26 = vmul.f32 %v5408_v58, %v6560_v42 }
0x2abc   :  { %v3884_v57 = vpop.permute.xlu0 %3883 }
0x2abd   :  { %v3886_v59 = vmul.f32 %v5406_v48, %v3884_v57  ;;  %v3777_v60 = vpop.permute.xlu1 %3776 }
0x2abe   :  { %v3779_v61 = vmul.f32 %v5408_v58, %v3777_v60 }
0x2abf   :  { %3888 = vrot.lane.b32.xlu0 %v3886_v59, %s5677_s20 }
0x2ac0   :  { %3781 = vrot.lane.b32.xlu1 %v3779_v61, %s5677_s20  ;;  %s5629_s20 = scalar_lea.vmem %s4212_s11, 32 }
0x2ac1   :  { %p5630_p2 = scmp.ne.s32.totalorder %s4212_s11, %s5629_s20  ;;  %p5635_p4 = scmp.lt.s32.totalorder %s5629_s20, %s5629_s20 }
0x2ac3   :  { %p5636_p5 = por %p5635_p4, %p5634_p3 }
0x2ac5   :  { %p5637_p6 = pnand %p5636_p5, %p5630_p2 }
0x2b31   :  { %v3889_v62 = vpop.permute.xlu0 %3888 }
0x2b32   :  { %v3891_v63 = vadd.f32 %v3889_v62, %v3799_v13  ;;  %v3782_v33 = vpop.permute.xlu1 %3781 }
0x2b33   :  { %v3784_v31 = vadd.f32 %v3782_v33, %v3695_v51 }
0x2b34   :  { %5409 = vtanh.f32 %v3891_v63 }
0x2b35   :  { %5411 = vtanh.f32 %v3784_v31 }
0x2b3e   :  { %v5410_v0 = vpop.eup %5409 }
0x2b3f   :  { %v5412_v4 = vpop.eup %5411  ;;  %3895 = vrot.lane.b32.xlu0 %v5410_v0, %s5678_s27 }
0x2b40   :  { %3788 = vrot.lane.b32.xlu1 %v5412_v4, %s5678_s27 }
0x2bb1   :  { %v3896_v20 = vpop.permute.xlu0 %3895 }
0x2bb2   :  { %v3898_v24 = vmul.f32 %v3896_v20, %v3893_v19  ;;  %v3789_v25 = vpop.permute.xlu1 %3788 }
0x2bb3   :  { %v3791_v14 = vmul.f32 %v3789_v25, %v3786_v22  ;;  %v4116_v25 = vld [vmem:[%s6673_s18 + $0x8] sm:$0xff] }
0x2bb4   :  { %v3900_v27 = vadd.f32 %v3899_v23, %v3898_v24  ;;  %v4115_v24 = vld [vmem:[%s6673_s18] sm:$0xff] }
0x2bb5   :  { %v3793_v21 = vadd.f32 %v3792_v26, %v3791_v14  ;;  %v5190_v26 = vpack.c.bf16 %v4116_v25, %v4115_v24 }
0x2bb6   :  { %3901 = vst.msk [vmem:[#allocation2] sm:$0x3] %vm587_vm4, %v3900_v27 }
0x2bb7   :  { %3795 = vrot.lane.b32.xlu1 %v3793_v21, %s5678_s27  ;;  %5191 = vmatpush3.bf16.msra.mxu1 %v5190_v26  ;;  %v4117_v21 = vld [vmem:[%s6673_s18 + $0x10] sm:$0xff] }
0x2bb8   :  { %5192 = vmatprep.subr.bf16.mxu1 %v5674_v10 }
0x2bbd   :  { %v3902_v29 = vld [vmem:[#allocation2] sm:$0xff] }
0x2bbe   :  { %4927 = vmatprep.mubr.msk.f32.mxu0 %vm2055_vm7, %v3902_v29  ;;  %v4118_v29 = vld [vmem:[%s6673_s18 + $0x18] sm:$0xff] }
0x2c29   :  { %v3796_v30 = vpop.permute.xlu1 %3795 }
0x2c2a   :  { %3798 = vst.msk [vmem:[#allocation2 + $0xe] sm:$0x3] %vm482_vm5, %v3796_v30  ;;  %v5193_v30 = vpack.c.bf16 %v4118_v29, %v4117_v21 }
0x2c2c   :  { %5194 = vmatpush3.bf16.msra.mxu1 %v5193_v30 }
0x2c2d   :  { %5195 = vmatprep.subr.bf16.mxu1 %v5674_v10 }
0x2c31   :  { %v3903_v34 = vld [vmem:[#allocation2 + $0x8] sm:$0xff] }
0x2c32   :  { %4928 = vmatmul.mubr.msk.f32.vlgmr.msra.gmra.mrb[36].mxu0 %vm2055_vm7, %v3903_v34 }
0x2d05   :  { %v4929_v36 = vpop.f32.mrb[36].mxu0 }
0x2d06   :  { %3995 = vst.msk [vmem:[#allocation3 + $0x8] sm:$0xff] %vm3993_vm8, %v4929_v36  ;;  %v3984_v37 = vpop.f32.mrb[37].mxu0  ;;  %v4119_v36 = vld [vmem:[%s6673_s18 + $0x20] sm:$0xff] }
0x2d07   :  { %3994 = vst.msk [vmem:[#allocation3] sm:$0xff] %vm3993_vm8, %v3984_v37  ;;  %v4120_v37 = vld [vmem:[%s6673_s18 + $0x28] sm:$0xff] }
0x2d0d   :  { %v4000_v45 = vld [vmem:[#allocation3 + $0x8] sm:$0x3]  ;;  %v4001_v46 = vld [vmem:[#allocation3 + $0xa] sm:$0x3]  ;;  %v4002_v50 = vld [vmem:[#allocation3 + $0xc] sm:$0x3] }
0x2d0e   :  { %v3996_v38 = vld [vmem:[#allocation3] sm:$0x3]  ;;  %v3997_v40 = vld [vmem:[#allocation3 + $0x2] sm:$0x3]  ;;  %v3998_v32 = vld [vmem:[#allocation3 + $0x4] sm:$0x3] }
0x2d0f   :  { %v4004_v41 = vmax.f32 %v3996_v38, %v3997_v40  ;;  %v3999_v43 = vld [vmem:[#allocation3 + $0x6] sm:$0x3]  ;;  %v4003_v13 = vld [vmem:[#allocation3 + $0xe] sm:$0x3] }
0x2d11   :  { %v4005_v42 = vmax.f32 %v4004_v41, %v3998_v32  ;;  %v4122_v41 = vld [vmem:[%s6673_s18 + $0x38] sm:$0xff] }
0x2d13   :  { %v4006_v44 = vmax.f32 %v4005_v42, %v3999_v43  ;;  %v4053_v42 = vld [vmem:[#allocation2 + $0x2] sm:$0x3] }
0x2d15   :  { %v4007_v6 = vmax.f32 %v4006_v44, %v4000_v45  ;;  %v4045_v44 = vld [vmem:[#allocation2] sm:$0x3] }
0x2d17   :  { %v4008_v47 = vmax.f32 %v4007_v6, %v4001_v46 }
0x2d19   :  { %v4009_v12 = vmax.f32 %v4008_v47, %v4002_v50  ;;  %v4062_v47 = vld [vmem:[#allocation2 + $0x4] sm:$0x3] }
0x2d1b   :  { %v4010_v51 = vmax.f32 %v4009_v12, %v4003_v13 }
0x2d1d   :  { %v4011_v52 = vsub.f32 %v3996_v38, %v4010_v51  ;;  %v4014_v53 = vsub.f32 %v3997_v40, %v4010_v51  ;;  %v4017_v54 = vsub.f32 %v3998_v32, %v4010_v51  ;;  %v4020_v17 = vsub.f32 %v3999_v43, %v4010_v51  ;;  %v4121_v40 = vld [vmem:[%s6673_s18 + $0x30] sm:$0xff] }
0x2d1e   :  { %v4023_v49 = vsub.f32 %v4000_v45, %v4010_v51  ;;  %v4026_v57 = vsub.f32 %v4001_v46, %v4010_v51  ;;  %v4029_v59 = vsub.f32 %v4002_v50, %v4010_v51  ;;  %v4032_v61 = vsub.f32 %v4003_v13, %v4010_v51  ;;  %v4071_v51 = vld [vmem:[#allocation2 + $0x6] sm:$0x3] }
0x2d1f   :  { %v4012_v16 = vmul.f32 1.442695, %v4011_v52  ;;  %v4015_v55 = vmul.f32 1.442695, %v4014_v53  ;;  %v4018_v56 = vmul.f32 1.442695, %v4017_v54  ;;  %v5196_v38 = vpack.c.bf16 %v4120_v37, %v4119_v36 }
0x2d20   :  { %v4021_v48 = vmul.f32 1.442695, %v4020_v17  ;;  %v4024_v58 = vmul.f32 1.442695, %v4023_v49  ;;  %v4027_v60 = vmul.f32 1.442695, %v4026_v57  ;;  %v5199_v32 = vpack.c.bf16 %v4122_v41, %v4121_v40 }
0x2d21   :  { %5413 = vpow2.f32 %v4012_v16  ;;  %v4030_v62 = vmul.f32 1.442695, %v4029_v59  ;;  %v4033_v63 = vmul.f32 1.442695, %v4032_v61  ;;  %5197 = vmatpush3.bf16.msra.mxu1 %v5196_v38  ;;  %v4080_v54 = vld [vmem:[#allocation2 + $0x8] sm:$0x3] }
0x2d22   :  { %5415 = vpow2.f32 %v4015_v55  ;;  %5198 = vmatprep.subr.bf16.mxu1 %v5674_v10  ;;  %v4089_v49 = vld [vmem:[#allocation2 + $0xa] sm:$0x3] }
0x2d23   :  { %5417 = vpow2.f32 %v4018_v56 }
0x2d24   :  { %5419 = vpow2.f32 %v4021_v48 }
0x2d25   :  { %5421 = vpow2.f32 %v4024_v58  ;;  %5200 = vmatpush3.bf16.msra.mxu1 %v5199_v32  ;;  %v4098_v58 = vld [vmem:[#allocation2 + $0xc] sm:$0x3] }
0x2d26   :  { %5423 = vpow2.f32 %v4027_v60 }
0x2d27   :  { %5425 = vpow2.f32 %v4030_v62 }
0x2d28   :  { %5427 = vpow2.f32 %v4033_v63  ;;  %v4107_v63 = vld [vmem:[#allocation2 + $0xe] sm:$0x3] }
0x2d2b   :  { %v5414_v33 = vpop.eup %5413 }
0x2d2c   :  { %v5416_v31 = vpop.eup %5415 }
0x2d2d   :  { %v4035_v0 = vadd.f32 %v5416_v31, %v5414_v33  ;;  %v5418_v1 = vpop.eup %5417 }
0x2d2e   :  { %v5420_v3 = vpop.eup %5419 }
0x2d2f   :  { %v4036_v2 = vadd.f32 %v5418_v1, %v4035_v0  ;;  %v5422_v5 = vpop.eup %5421 }
0x2d30   :  { %v5424_v7 = vpop.eup %5423 }
0x2d31   :  { %v4037_v4 = vadd.f32 %v5420_v3, %v4036_v2  ;;  %v5426_v8 = vpop.eup %5425 }
0x2d32   :  { %v5428_v11 = vpop.eup %5427 }
0x2d33   :  { %v4038_v28 = vadd.f32 %v5422_v5, %v4037_v4 }
0x2d35   :  { %v4039_v39 = vadd.f32 %v5424_v7, %v4038_v28 }
0x2d37   :  { %v4040_v9 = vadd.f32 %v5426_v8, %v4039_v39 }
0x2d39   :  { %v4041_v15 = vadd.f32 %v5428_v11, %v4040_v9 }
0x2d3b   :  { %5429 = vrcp.f32 %v4041_v15 }
0x2d45   :  { %v5430_v18 = vpop.eup %5429 }
0x2d46   :  { %v4052_v19 = vmul.f32 %v5430_v18, %v5416_v31  ;;  %v4044_v20 = vmul.f32 %v5430_v18, %v5414_v33  ;;  %v4061_v22 = vmul.f32 %v5430_v18, %v5418_v1  ;;  %v4070_v23 = vmul.f32 %v5430_v18, %v5420_v3  ;;  %v4304_v1 = vld [vmem:[%s6674_s19] ss:$0 sm:$0xff] }
0x2d47   :  { %v4079_v14 = vmul.f32 %v5430_v18, %v5422_v5  ;;  %v4088_v27 = vmul.f32 %v5430_v18, %v5424_v7  ;;  %v4097_v34 = vmul.f32 %v5430_v18, %v5426_v8  ;;  %v4106_v35 = vmul.f32 %v5430_v18, %v5428_v11 }
0x2d48   :  { %4056 = vperm.xlu1 %5220, %v4052_v19   ;;  %4048 = vperm.xlu0 %5219, %v4044_v20  }
0x2d4c   :  { %4065 = vperm.xlu1 %5220, %v4061_v22   ;;  %4074 = vperm.xlu0 %5219, %v4070_v23  }
0x2d50   :  { %4083 = vperm.xlu1 %5220, %v4079_v14   ;;  %4092 = vperm.xlu0 %5219, %v4088_v27  }
0x2d54   :  { %4101 = vperm.xlu1 %5220, %v4097_v34   ;;  %4110 = vperm.xlu0 %5219, %v4106_v35  }
0x2dc7   :  { %v4057_v43 = vpop.permute.xlu1 %4056  ;;  %v4049_v45 = vpop.permute.xlu0 %4048 }
0x2dc8   :  { %v4059_v6 = vmul.f32 %v4057_v43, %v4053_v42  ;;  %v4051_v46 = vmul.f32 %v4049_v45, %v4045_v44 }
0x2dca   :  { %v4060_v10 = vadd.f32 %v4059_v6, %v4051_v46 }
0x2dcb   :  { %v4066_v50 = vpop.permute.xlu1 %4065  ;;  %v4075_v12 = vpop.permute.xlu0 %4074 }
0x2dcc   :  { %v4068_v13 = vmul.f32 %v4066_v50, %v4062_v47  ;;  %v4077_v53 = vmul.f32 %v4075_v12, %v4071_v51 }
0x2dce   :  { %v4069_v52 = vadd.f32 %v4068_v13, %v4060_v10 }
0x2dcf   :  { %v4084_v17 = vpop.permute.xlu1 %4083  ;;  %v4093_v16 = vpop.permute.xlu0 %4092 }
0x2dd0   :  { %v4078_v55 = vadd.f32 %v4077_v53, %v4069_v52  ;;  %v4086_v56 = vmul.f32 %v4084_v17, %v4080_v54  ;;  %v4095_v57 = vmul.f32 %v4093_v16, %v4089_v49 }
0x2dd2   :  { %v4087_v48 = vadd.f32 %v4086_v56, %v4078_v55 }
0x2dd3   :  { %v4102_v59 = vpop.permute.xlu1 %4101  ;;  %v4111_v60 = vpop.permute.xlu0 %4110 }
0x2dd4   :  { %v4096_v61 = vadd.f32 %v4095_v57, %v4087_v48  ;;  %v4104_v62 = vmul.f32 %v4102_v59, %v4098_v58  ;;  %v4113_v31 = vmul.f32 %v4111_v60, %v4107_v63 }
0x2dd6   :  { %v4105_v33 = vadd.f32 %v4104_v62, %v4096_v61 }
0x2dd8   :  { %v4114_v0 = vadd.f32 %v4113_v31, %v4105_v33 }
0x2dda   :  { %4947 = vmatmul.mubr.msk.f32.vlgmr.msra.gmra.mrb[36].mxu1 %vm2055_vm7, %v4114_v0 }
0x2ead   :  { %v4199_v2 = vpop.f32.mrb[36].mxu1 }
0x2eae   :  { %v4200_v3 = vadd.f32 %v4304_v1, %v4199_v2  ;;  %v4948_v4 = vpop.f32.mrb[37].mxu1 }
0x2eb0   :  { %4204 = vst.msk [vmem:[#allocation21] sm:$0x3] %vm4203_vm9, %v4200_v3 }
0x2eb1   :  { %5640 = shalt.err (!%p5637_p6)
}
0x2eb2   :  { %s6692_s4 = sld [smem:[#allocation33_spill]] }
0x2eb8   :  { %s5641_s2 = scalar_lea.hbm %s6692_s4, 32 }
0x2eb9   :  { %p5642_p7 = scmp.ne.s32.totalorder %s6692_s4, %s5641_s2  ;;  %p5645_p8 = scmp.lt.u32.totalorder %s5641_s2, %s6692_s4 }
0x2ebb   :  { %p5647_p9 = pnand %p5645_p8, %p5642_p7 }
0x2ebd   :  { %5650 = shalt.err (!%p5647_p9)
}
0x2ebe   :  { %4214 = dma.vmem_to_hbm [thread:$0]  %s4212_s11, 32, %s6692_s4, [#allocation8]  }
0x2ebf   :  { %5661 = dma.done.wait [#allocation8], 32  }
0x2ec0   :  { %5662 = vsyncadd [#allocation8], 4294967264 }
0x2ec1   :  { %4218 = vsyncpa [#allocation7], 1 }
0x2ec2   :  { %4219 = vsyncpa [#allocation10], 1 }
0x2ec3   :  { %4220 = vsyncpa [#allocation13], 1 }
0x2ec4   :  { %4221 = vsyncpa [#allocation16], 1 }
0x2ec5   :  { %4222 = vsyncpa [#allocation19], 1 }
0x2ec6   :  { %4223 = vsyncpa [#allocation8], 1 }

</bundles_post_ra>
